<compile_context>
chip_gen: v5e
topology: v5e:2x2
jax: 0.10.0
libtpu: 0.0.40
codegen_flags: <defaults>
</compile_context>

<pallas_src>
import functools

import numpy as np
import jax
import jax.numpy as jnp
from jax import lax
from jax.experimental import pallas as pl
from jax.experimental.pallas import tpu as pltpu


# ----------------------------------------------------------------------------
# In-kernel building blocks (all operate on VMEM-resident values, f32 unless
# noted; matmul operands are cast to bf16 with f32 accumulation)
# ----------------------------------------------------------------------------

def _batch_norm(x, eps=1e-5):
    # TODO(synk): reference applies nn.BatchNorm2d(embed_dim) to a 3-D tensor
    # (runtime error in PyTorch); implemented as training-mode per-embed-
    # channel batch norm over (batch*seq) with default gamma=1 / beta=0 and
    # biased variance.  Padded channels are all-zero -> normalise to zero.
    mean = jnp.mean(x, axis=0, keepdims=True)
    var = jnp.mean(jnp.square(x - mean), axis=0, keepdims=True)
    return (x - mean) * lax.rsqrt(var + eps)


def _self_attention(x, wqkv, bqkv, batch, seq):
    """Custom MultiHeadAttention: fused ReLU'd QKV projection, then
    softmax(Q K^T / sqrt(E)) with PyTorch Softmax(dim=None) -> dim 0 on 3-D."""
    m_rows, ep = x.shape
    # One MXU pass (bf16 x bf16 -> f32) for all three projections; .chunk(3)
    # of the input and the 1/sqrt(E) scale are folded into the padded weights.
    qkv = jnp.maximum(
        jnp.dot(x.astype(wqkv.dtype), wqkv,
                preferred_element_type=jnp.float32) + bqkv, 0.0)
    q = qkv[:, 0 * ep:1 * ep].reshape(batch, seq, ep)
    k = qkv[:, 1 * ep:2 * ep].reshape(batch, seq, ep)
    v = qkv[:, 2 * ep:3 * ep].reshape(batch, seq, ep)
    s = jnp.einsum('bqd,bkd->bqk',
                   q.astype(jnp.bfloat16), k.astype(jnp.bfloat16),
                   preferred_element_type=jnp.float32)
    # Softmax over the batch*head axis (dim 0) — intentional reference quirk.
    mx = jnp.max(s, axis=0, keepdims=True)
    e = jnp.exp(s - mx)
    p = e * pl.reciprocal(jnp.sum(e, axis=0, keepdims=True), approx=True)
    attn = jnp.einsum('bqk,bkd->bqd',
                      p.astype(jnp.bfloat16), v.astype(jnp.bfloat16),
                      preferred_element_type=jnp.float32)
    return attn.reshape(m_rows, ep)


def _per_channel_attention(q, k, v):
    """Emulates nn.MultiheadAttention(E, num_heads=E): E heads of head_dim 1,
    scale 1/sqrt(1)=1, softmax over key positions, per batch element."""
    # q, k, v: (B, S, EP).  Vectorised via a (B, Sq, Sk, EP) broadcast; kept
    # in f32 (elementwise / EUP path).  TODO(synk): stream over Sk if SEQ grows.
    logits = q[:, :, None, :] * k[:, None, :, :]
    mx = jnp.max(logits, axis=2, keepdims=True)
    e = jnp.exp(logits - mx)
    p = e * pl.reciprocal(jnp.sum(e, axis=2, keepdims=True), approx=True)
    return jnp.sum(p * v[:, None, :, :], axis=2)          # (B, S, EP)


# ----------------------------------------------------------------------------
# Single fused whole-model kernel
# ----------------------------------------------------------------------------

def _transformer_kernel(tok_ref, pos_ref,
                        enc_emb_ref, dec_emb_ref,
                        ewqkv_ref, ebqkv_ref, ewffn_ref, ebffn_ref,
                        dwqkv_ref, dbqkv_ref,
                        wq2_ref, bq2_ref, wk2_ref, bk2_ref,
                        wv2_ref, bv2_ref, wo2_ref, bo2_ref,
                        dwffn_ref, dbffn_ref, wout_ref, bout_ref,
                        o_ref, *, n_layers, batch, seq):
    m_rows, ep = o_ref.shape
    vpad = enc_emb_ref.shape[0]

    # ---- in-kernel embedding gather (exact one-hot f32 matmul on the MXU) ----
    iota = lax.broadcasted_iota(jnp.int32, (m_rows, vpad), 1)
    onehot = (iota == tok_ref[...]).astype(jnp.float32)          # (m_rows, vpad)
    emb_e = jnp.dot(onehot, enc_emb_ref[...],
                    preferred_element_type=jnp.float32)          # (m_rows, ep)
    emb_d = jnp.dot(onehot, dec_emb_ref[...],
                    preferred_element_type=jnp.float32)

    # positional encoding, first `seq` rows tiled over batch
    pos = jnp.concatenate([pos_ref[0:seq, :]] * batch, axis=0)   # (m_rows, ep)

    # ---------------------------- encoder ----------------------------
    # input_multi = embed + (embed + P)   (reference double-add)
    ewqkv, ebqkv = ewqkv_ref[...], ebqkv_ref[...]
    ewffn, ebffn = ewffn_ref[...], ebffn_ref[...]
    x = 2.0 * emb_e + pos
    for _ in range(n_layers):   # same weights each iteration (as in reference)
        attn = _self_attention(x, ewqkv, ebqkv, batch, seq)
        t = _batch_norm(x + attn)
        ffn = jnp.dot(t.astype(ewffn.dtype), ewffn,
                      preferred_element_type=jnp.float32) + ebffn
        x = _batch_norm(t + ffn)
    enc = x                     # stays in VMEM, consumed directly below

    # ---------------------------- decoder ----------------------------
    # TODO(synk): nn.MultiheadAttention(E, E, num_heads) is called with E//2-
    # wide q/k and dropout=num_heads (shape/usage errors); emulated as eval-
    # mode attention with E heads of dim 1.  encod.chunk(2,-1) is folded into
    # the row offsets of wq2 / wk2, and since encod is loop-invariant the q/k
    # in-projections are hoisted out of the layer loop.
    dwqkv, dbqkv = dwqkv_ref[...], dbqkv_ref[...]
    wv2, bv2 = wv2_ref[...], bv2_ref[...]
    wo2, bo2 = wo2_ref[...], bo2_ref[...]
    dwffn, dbffn = dwffn_ref[...], dbffn_ref[...]

    enc_bf = enc.astype(jnp.bfloat16)
    q2 = (jnp.dot(enc_bf, wq2_ref[...], preferred_element_type=jnp.float32)
          + bq2_ref[...]).reshape(batch, seq, ep)
    k2 = (jnp.dot(enc_bf, wk2_ref[...], preferred_element_type=jnp.float32)
          + bk2_ref[...]).reshape(batch, seq, ep)

    x = 2.0 * emb_d + pos
    for _ in range(n_layers):
        attn = _self_attention(x, dwqkv, dbqkv, batch, seq)
        t = _batch_norm(x + attn)
        v2 = (jnp.dot(t.astype(jnp.bfloat16), wv2,
                      preferred_element_type=jnp.float32)
              + bv2).reshape(batch, seq, ep)
        attn2 = _per_channel_attention(q2, k2, v2).reshape(m_rows, ep)
        m2 = jnp.dot(attn2.astype(jnp.bfloat16), wo2,
                     preferred_element_type=jnp.float32) + bo2
        t = _batch_norm(m2 + t)
        ffn = jnp.dot(t.astype(jnp.bfloat16), dwffn,
                      preferred_element_type=jnp.float32) + dbffn
        x = _batch_norm(t + ffn)

    # ---------------------------- output head ----------------------------
    # Linear(E, E) then nn.Softmax() with dim=None on a 3-D tensor -> softmax
    # over dim 0 (batch).  Exact f32 division so columns sum to 1 along batch.
    y = (jnp.dot(x.astype(jnp.bfloat16), wout_ref[...],
                 preferred_element_type=jnp.float32)
         + bout_ref[...]).reshape(batch, seq, ep)
    mx = jnp.max(y, axis=0, keepdims=True)
    e = jnp.exp(y - mx)
    o_ref[...] = (e / jnp.sum(e, axis=0, keepdims=True)).reshape(m_rows, ep)


# ----------------------------------------------------------------------------
# pallas_call wrapper
# ----------------------------------------------------------------------------

def _full_spec(shape):
    return pl.BlockSpec(shape, lambda i: (0,) * len(shape))


def transformer_forward(tokens, params, pos_pad, *, n_layers, embed_dim):
    batch, seq = tokens.shape
    max_steps, ep = pos_pad.shape
    m_rows = batch * seq
    enc, dec = params["enc"], params["dec"]
    vpad = enc["emb"].shape[0]

    tok_col = tokens.reshape(m_rows, 1).astype(jnp.int32)

    act = _full_spec((m_rows, ep))
    mat = _full_spec((ep, ep))
    vec = _full_spec((1, ep))
    qkv_m = _full_spec((ep, 3 * ep))
    qkv_v = _full_spec((1, 3 * ep))

    out = pl.pallas_call(
        functools.partial(_transformer_kernel, n_layers=n_layers,
                          batch=batch, seq=seq),
        out_shape=jax.ShapeDtypeStruct((m_rows, ep), jnp.float32),
        grid=(1,),
        in_specs=[
            _full_spec((m_rows, 1)),        # tokens
            _full_spec((max_steps, ep)),    # positional encoding table
            _full_spec((vpad, ep)),         # encoder embedding table
            _full_spec((vpad, ep)),         # decoder embedding table
            qkv_m, qkv_v, mat, vec,         # encoder weights
            qkv_m, qkv_v,                   # decoder self-attn qkv
            mat, vec, mat, vec, mat, vec, mat, vec,   # cross-attn q2/k2/v2/o2
            mat, vec,                       # decoder ffn
            mat, vec,                       # output head
        ],
        out_specs=act,
        compiler_params=pltpu.CompilerParams(
            dimension_semantics=("arbitrary",)),
    )(tok_col, pos_pad,
      enc["emb"], dec["emb"],
      enc["wqkv"], enc["bqkv"], enc["wffn"], enc["bffn"],
      dec["wqkv"], dec["bqkv"],
      dec["wq2"], dec["bq2"], dec["wk2"], dec["bk2"],
      dec["wv2"], dec["bv2"], dec["wo2"], dec["bo2"],
      dec["wffn"], dec["bffn"],
      params["out_w"], params["out_b"])

    # drop the zero-padded lanes
    return out.reshape(batch, seq, ep)[:, :, :embed_dim]


# ----------------------------------------------------------------------------
# Deterministic parameter / positional-encoding initialisation
# ----------------------------------------------------------------------------

def make_pos_encoding(max_steps, max_dims):
    if max_dims % 2 == 1:
        max_dims += 1
    p, i = np.meshgrid(np.arange(max_steps), np.arange(max_dims // 2))
    pos_emb = np.zeros((1, max_steps, max_dims))
    pos_emb[0, :, ::2] = np.sin(p / 10000 ** (2 * i / max_dims)).T
    pos_emb[0, :, 1::2] = np.cos(p / 10000 ** (2 * i / max_dims)).T
    return jnp.asarray(pos_emb, dtype=jnp.float32)


def _init_linear(key, fan_in, fan_out):
    kw, kb = jax.random.split(key)
    bound = 1.0 / np.sqrt(fan_in)
    w = jax.random.uniform(kw, (fan_in, fan_out), jnp.float32, -bound, bound)
    b = jax.random.uniform(kb, (fan_out,), jnp.float32, -bound, bound)
    return w, b


def init_params(key, embed_dim, vocab_size, ep, vpad):
    """Weights are zero-padded to lane-dense (..., 128) kernel-ready matrices,
    stored bf16 (MXU fast path); biases stay f32.  torch-style .chunk()
    offsets and the 1/sqrt(E) attention scale are folded in."""
    E, V = embed_dim, vocab_size
    keys = iter(jax.random.split(key, 24))

    def lin(fan_in, fan_out):
        return _init_linear(next(keys), fan_in, fan_out)

    def pad_lin(w, b, row_off=0):
        wp = jnp.zeros((ep, ep), jnp.float32)
        wp = wp.at[row_off:row_off + w.shape[0], 0:w.shape[1]].set(w)
        bp = jnp.zeros((1, ep), jnp.float32).at[0, 0:b.shape[0]].set(b)
        return wp.astype(jnp.bfloat16), bp

    def fused_qkv():
        # TODO(synk): reference declares Linear(embed_dim, embed_dim) but feeds
        # it embed_dim//3-wide chunks (shape error); projections use in=E//3,
        # and num_heads is fixed to 1 so residual adds stay shape-consistent.
        C = E // 3
        scale = 1.0 / np.sqrt(E)      # relu(s*z) == s*relu(z) for s > 0
        wq, bq = lin(C, E)
        wk, bk = lin(C, E)
        wv, bv = lin(C, E)
        w = jnp.zeros((ep, 3 * ep), jnp.float32)
        b = jnp.zeros((1, 3 * ep), jnp.float32)
        w = w.at[0:C, 0:E].set(wq * scale)
        w = w.at[C:2 * C, ep:ep + E].set(wk)
        w = w.at[2 * C:3 * C, 2 * ep:2 * ep + E].set(wv)
        b = b.at[0, 0:E].set(bq * scale)
        b = b.at[0, ep:ep + E].set(bk)
        b = b.at[0, 2 * ep:2 * ep + E].set(bv)
        return w.astype(jnp.bfloat16), b

    def pad_embedding():
        emb = jax.random.normal(next(keys), (V, E), jnp.float32)
        return jnp.zeros((vpad, ep), jnp.float32).at[0:V, 0:E].set(emb)

    enc = {"emb": pad_embedding()}
    enc["wqkv"], enc["bqkv"] = fused_qkv()
    enc["wffn"], enc["bffn"] = pad_lin(*lin(E, E))

    dec = {"emb": pad_embedding()}
    dec["wqkv"], dec["bqkv"] = fused_qkv()
    # cross-attention (nn.MultiheadAttention misuse): q/k in-proj sized to the
    # E//2-wide encod chunks, chunk(2) folded into the padded row offsets.
    dec["wq2"], dec["bq2"] = pad_lin(*lin(E // 2, E), row_off=0)
    dec["wk2"], dec["bk2"] = pad_lin(*lin(E // 2, E), row_off=E // 2)
    dec["wv2"], dec["bv2"] = pad_lin(*lin(E, E))
    dec["wo2"], dec["bo2"] = pad_lin(*lin(E, E))
    dec["wffn"], dec["bffn"] = pad_lin(*lin(E, E))

    out_w, out_b = pad_lin(*lin(E, E))
    return {"enc": enc, "dec": dec, "out_w": out_w, "out_b": out_b}


# ----------------------------------------------------------------------------
# Main
# ----------------------------------------------------------------------------

if __name__ == "__main__":
    EMBED_DIM = 48       # divisible by 3 (chunk) and by 2 (pos-enc / chunk)
    PADDED_DIM = 128     # lane-dense padding of the embedding axis
    VOCAB_PAD = 64       # vocab rows padded to a sublane-friendly multiple
    MAX_STEPS = 16
    VOCAB_SIZE = 50
    N_LAYERS = 2
    BATCH = 2
    SEQ = 8

    key = jax.random.PRNGKey(0)
    k_params, k_tokens = jax.random.split(key)

    params = init_params(k_params, EMBED_DIM, VOCAB_SIZE, PADDED_DIM, VOCAB_PAD)
    pos_pad = jnp.pad(make_pos_encoding(MAX_STEPS, EMBED_DIM),
                      ((0, 0), (0, 0), (0, PADDED_DIM - EMBED_DIM)))
    pos_pad = pos_pad.reshape(MAX_STEPS, PADDED_DIM)
    tokens = jax.random.randint(k_tokens, (BATCH, SEQ), 0, VOCAB_SIZE)

    fwd = jax.jit(functools.partial(transformer_forward,
                                    n_layers=N_LAYERS, embed_dim=EMBED_DIM))
    out = jax.block_until_ready(fwd(tokens, params, pos_pad))

    out_np = np.asarray(out)
    assert out_np.shape == (BATCH, SEQ, EMBED_DIM)
    assert np.all(np.isfinite(out_np))
    # final Softmax is over dim 0 (batch) -> columns sum to 1 along batch.
    assert np.allclose(out_np.sum(axis=0), 1.0, atol=1e-4)

    print("KERNEL_OK")
</pallas_src>

<mosaic_0001>
module attributes {stable_mosaic.version = 11 : i64} {
  func.func @_transformer_kernel(%arg0: i32, %arg1: memref<16x1xi32, #tpu.memory_space<vmem>>, %arg2: memref<16x128xf32, #tpu.memory_space<vmem>>, %arg3: memref<64x128xf32, #tpu.memory_space<vmem>>, %arg4: memref<64x128xf32, #tpu.memory_space<vmem>>, %arg5: memref<128x384xbf16, #tpu.memory_space<vmem>>, %arg6: memref<1x384xf32, #tpu.memory_space<vmem>>, %arg7: memref<128x128xbf16, #tpu.memory_space<vmem>>, %arg8: memref<1x128xf32, #tpu.memory_space<vmem>>, %arg9: memref<128x384xbf16, #tpu.memory_space<vmem>>, %arg10: memref<1x384xf32, #tpu.memory_space<vmem>>, %arg11: memref<128x128xbf16, #tpu.memory_space<vmem>>, %arg12: memref<1x128xf32, #tpu.memory_space<vmem>>, %arg13: memref<128x128xbf16, #tpu.memory_space<vmem>>, %arg14: memref<1x128xf32, #tpu.memory_space<vmem>>, %arg15: memref<128x128xbf16, #tpu.memory_space<vmem>>, %arg16: memref<1x128xf32, #tpu.memory_space<vmem>>, %arg17: memref<128x128xbf16, #tpu.memory_space<vmem>>, %arg18: memref<1x128xf32, #tpu.memory_space<vmem>>, %arg19: memref<128x128xbf16, #tpu.memory_space<vmem>>, %arg20: memref<1x128xf32, #tpu.memory_space<vmem>>, %arg21: memref<128x128xbf16, #tpu.memory_space<vmem>>, %arg22: memref<1x128xf32, #tpu.memory_space<vmem>>, %arg23: memref<16x128xf32, #tpu.memory_space<vmem>>) attributes {dimension_semantics = [#tpu.dimension_semantics<arbitrary>], iteration_bounds = array<i64: 1>, scalar_prefetch = 0 : i64, scratch_operands = 0 : i64, tpu.core_type = #tpu.core_type<tc>, window_params = [{pipeline_mode = #tpu.pipeline_mode<synchronous>, transform_indices = @transform_0, window_bounds = array<i64: 16, 1>}, {pipeline_mode = #tpu.pipeline_mode<synchronous>, transform_indices = @transform_1, window_bounds = array<i64: 16, 128>}, {pipeline_mode = #tpu.pipeline_mode<synchronous>, transform_indices = @transform_2, window_bounds = array<i64: 64, 128>}, {pipeline_mode = #tpu.pipeline_mode<synchronous>, transform_indices = @transform_3, window_bounds = array<i64: 64, 128>}, {pipeline_mode = #tpu.pipeline_mode<synchronous>, transform_indices = @transform_4, window_bounds = array<i64: 128, 384>}, {pipeline_mode = #tpu.pipeline_mode<synchronous>, transform_indices = @transform_5, window_bounds = array<i64: 1, 384>}, {pipeline_mode = #tpu.pipeline_mode<synchronous>, transform_indices = @transform_6, window_bounds = array<i64: 128, 128>}, {pipeline_mode = #tpu.pipeline_mode<synchronous>, transform_indices = @transform_7, window_bounds = array<i64: 1, 128>}, {pipeline_mode = #tpu.pipeline_mode<synchronous>, transform_indices = @transform_8, window_bounds = array<i64: 128, 384>}, {pipeline_mode = #tpu.pipeline_mode<synchronous>, transform_indices = @transform_9, window_bounds = array<i64: 1, 384>}, {pipeline_mode = #tpu.pipeline_mode<synchronous>, transform_indices = @transform_10, window_bounds = array<i64: 128, 128>}, {pipeline_mode = #tpu.pipeline_mode<synchronous>, transform_indices = @transform_11, window_bounds = array<i64: 1, 128>}, {pipeline_mode = #tpu.pipeline_mode<synchronous>, transform_indices = @transform_12, window_bounds = array<i64: 128, 128>}, {pipeline_mode = #tpu.pipeline_mode<synchronous>, transform_indices = @transform_13, window_bounds = array<i64: 1, 128>}, {pipeline_mode = #tpu.pipeline_mode<synchronous>, transform_indices = @transform_14, window_bounds = array<i64: 128, 128>}, {pipeline_mode = #tpu.pipeline_mode<synchronous>, transform_indices = @transform_15, window_bounds = array<i64: 1, 128>}, {pipeline_mode = #tpu.pipeline_mode<synchronous>, transform_indices = @transform_16, window_bounds = array<i64: 128, 128>}, {pipeline_mode = #tpu.pipeline_mode<synchronous>, transform_indices = @transform_17, window_bounds = array<i64: 1, 128>}, {pipeline_mode = #tpu.pipeline_mode<synchronous>, transform_indices = @transform_18, window_bounds = array<i64: 128, 128>}, {pipeline_mode = #tpu.pipeline_mode<synchronous>, transform_indices = @transform_19, window_bounds = array<i64: 1, 128>}, {pipeline_mode = #tpu.pipeline_mode<synchronous>, transform_indices = @transform_20, window_bounds = array<i64: 128, 128>}, {pipeline_mode = #tpu.pipeline_mode<synchronous>, transform_indices = @transform_21, window_bounds = array<i64: 1, 128>}, {pipeline_mode = #tpu.pipeline_mode<synchronous>, transform_indices = @transform_22, window_bounds = array<i64: 16, 128>}]} {
    %0 = tpu.iota {dimensions = array<i32: 1>} : vector<16x64xi32>
    %c0 = arith.constant 0 : index
    %c0_0 = arith.constant 0 : index
    %1 = vector.load %arg1[%c0, %c0_0] : memref<16x1xi32, #tpu.memory_space<vmem>>, vector<16x1xi32>
    %2 = vector.broadcast %1 : vector<16x1xi32> to vector<16x64xi32>
    %3 = arith.cmpi eq, %0, %2 : vector<16x64xi32>
    %4 = arith.extui %3 : vector<16x64xi1> to vector<16x64xi32>
    %5 = arith.sitofp %4 : vector<16x64xi32> to vector<16x64xf32>
    %c0_1 = arith.constant 0 : index
    %c0_2 = arith.constant 0 : index
    %6 = vector.load %arg3[%c0_1, %c0_2] : memref<64x128xf32, #tpu.memory_space<vmem>>, vector<64x128xf32>
    %cst = arith.constant dense<0.000000e+00> : vector<16x128xf32>
    %7 = tpu.matmul %5, %6, %cst {dimension_numbers = #tpu.dot_dimension_numbers<[1], [0], [0], [1], [0, 0, 1, 1], [], []>} : vector<16x64xf32>, vector<64x128xf32>, vector<16x128xf32> -> vector<16x128xf32>
    %c0_3 = arith.constant 0 : index
    %c0_4 = arith.constant 0 : index
    %8 = vector.load %arg4[%c0_3, %c0_4] : memref<64x128xf32, #tpu.memory_space<vmem>>, vector<64x128xf32>
    %cst_5 = arith.constant dense<0.000000e+00> : vector<16x128xf32>
    %9 = tpu.matmul %5, %8, %cst_5 {dimension_numbers = #tpu.dot_dimension_numbers<[1], [0], [0], [1], [0, 0, 1, 1], [], []>} : vector<16x64xf32>, vector<64x128xf32>, vector<16x128xf32> -> vector<16x128xf32>
    %c0_6 = arith.constant 0 : index
    %c0_7 = arith.constant 0 : index
    %10 = vector.load %arg2[%c0_6, %c0_7] : memref<16x128xf32, #tpu.memory_space<vmem>>, vector<8x128xf32>
    %11 = tpu.concatenate %10, %10 in 0 : vector<8x128xf32>, vector<8x128xf32> -> vector<16x128xf32>
    %c0_8 = arith.constant 0 : index
    %c0_9 = arith.constant 0 : index
    %12 = vector.load %arg5[%c0_8, %c0_9] : memref<128x384xbf16, #tpu.memory_space<vmem>>, vector<128x384xbf16>
    %c0_10 = arith.constant 0 : index
    %c0_11 = arith.constant 0 : index
    %13 = vector.load %arg6[%c0_10, %c0_11] : memref<1x384xf32, #tpu.memory_space<vmem>>, vector<1x384xf32>
    %c0_12 = arith.constant 0 : index
    %c0_13 = arith.constant 0 : index
    %14 = vector.load %arg7[%c0_12, %c0_13] : memref<128x128xbf16, #tpu.memory_space<vmem>>, vector<128x128xbf16>
    %c0_14 = arith.constant 0 : index
    %c0_15 = arith.constant 0 : index
    %15 = vector.load %arg8[%c0_14, %c0_15] : memref<1x128xf32, #tpu.memory_space<vmem>>, vector<1x128xf32>
    %cst_16 = arith.constant 2.000000e+00 : f32
    %16 = vector.broadcast %cst_16 : f32 to vector<16x128xf32>
    %17 = arith.mulf %16, %7 : vector<16x128xf32>
    %18 = arith.addf %17, %11 : vector<16x128xf32>
    %19 = arith.truncf %18 : vector<16x128xf32> to vector<16x128xbf16>
    %cst_17 = arith.constant dense<0.000000e+00> : vector<16x384xf32>
    %20 = tpu.matmul %19, %12, %cst_17 {dimension_numbers = #tpu.dot_dimension_numbers<[1], [0], [0], [1], [0, 0, 1, 1], [], []>} : vector<16x128xbf16>, vector<128x384xbf16>, vector<16x384xf32> -> vector<16x384xf32>
    %21 = vector.broadcast %13 : vector<1x384xf32> to vector<16x384xf32>
    %22 = arith.addf %20, %21 : vector<16x384xf32>
    %cst_18 = arith.constant 0.000000e+00 : f32
    %23 = vector.broadcast %cst_18 : f32 to vector<16x384xf32>
    %24 = arith.maximumf %22, %23 : vector<16x384xf32>
    %25 = vector.extract_strided_slice %24 {offsets = [0, 0], sizes = [16, 128], strides = [1, 1]} : vector<16x384xf32> to vector<16x128xf32>
    %26 = vector.shape_cast %25 : vector<16x128xf32> to vector<2x8x128xf32>
    %27 = vector.extract_strided_slice %24 {offsets = [0, 128], sizes = [16, 128], strides = [1, 1]} : vector<16x384xf32> to vector<16x128xf32>
    %28 = vector.shape_cast %27 : vector<16x128xf32> to vector<2x8x128xf32>
    %29 = vector.extract_strided_slice %24 {offsets = [0, 256], sizes = [16, 128], strides = [1, 1]} : vector<16x384xf32> to vector<16x128xf32>
    %30 = vector.shape_cast %29 : vector<16x128xf32> to vector<2x8x128xf32>
    %31 = arith.truncf %26 : vector<2x8x128xf32> to vector<2x8x128xbf16>
    %32 = arith.truncf %28 : vector<2x8x128xf32> to vector<2x8x128xbf16>
    "tpu.trace_start"() <{level = 10 : i32, message = "bqd,bkd->bqk"}> : () -> ()
    %cst_19 = arith.constant dense<0.000000e+00> : vector<2x8x8xf32>
    %33 = tpu.matmul %31, %32, %cst_19 {dimension_numbers = #tpu.dot_dimension_numbers<[2], [2], [1], [1], [0, 0, 0, 1, 1, 1], [0], [0]>} : vector<2x8x128xbf16>, vector<2x8x128xbf16>, vector<2x8x8xf32> -> vector<2x8x8xf32>
    "tpu.trace_stop"() : () -> ()
    %cst_20 = arith.constant dense<0xFF800000> : vector<8x8xf32>
    %34 = vector.multi_reduction <maximumf>, %33, %cst_20 [0] : vector<2x8x8xf32> to vector<8x8xf32>
    %35 = vector.shape_cast %34 : vector<8x8xf32> to vector<1x8x8xf32>
    %36 = vector.broadcast %35 : vector<1x8x8xf32> to vector<2x8x8xf32>
    %37 = arith.subf %33, %36 : vector<2x8x8xf32>
    %38 = math.exp %37 : vector<2x8x8xf32>
    %cst_21 = arith.constant dense<0.000000e+00> : vector<8x8xf32>
    %39 = vector.multi_reduction <add>, %38, %cst_21 [0] : vector<2x8x8xf32> to vector<8x8xf32>
    %40 = vector.shape_cast %39 : vector<8x8xf32> to vector<1x8x8xf32>
    %41 = tpu.reciprocal %40 {approx = true} : vector<1x8x8xf32> -> vector<1x8x8xf32>
    %42 = vector.broadcast %41 : vector<1x8x8xf32> to vector<2x8x8xf32>
    %43 = arith.mulf %38, %42 : vector<2x8x8xf32>
    %44 = arith.truncf %43 : vector<2x8x8xf32> to vector<2x8x8xbf16>
    %45 = arith.truncf %30 : vector<2x8x128xf32> to vector<2x8x128xbf16>
    "tpu.trace_start"() <{level = 10 : i32, message = "bqk,bkd->bqd"}> : () -> ()
    %cst_22 = arith.constant dense<0.000000e+00> : vector<2x8x128xf32>
    %46 = tpu.matmul %44, %45, %cst_22 {dimension_numbers = #tpu.dot_dimension_numbers<[2], [1], [1], [2], [0, 0, 0, 1, 1, 2], [0], [0]>} : vector<2x8x8xbf16>, vector<2x8x128xbf16>, vector<2x8x128xf32> -> vector<2x8x128xf32>
    "tpu.trace_stop"() : () -> ()
    %47 = vector.shape_cast %46 : vector<2x8x128xf32> to vector<16x128xf32>
    %48 = arith.addf %18, %47 : vector<16x128xf32>
    %cst_23 = arith.constant dense<0.000000e+00> : vector<128xf32>
    %49 = vector.multi_reduction <add>, %48, %cst_23 [0] : vector<16x128xf32> to vector<128xf32>
    %50 = vector.shape_cast %49 : vector<128xf32> to vector<1x128xf32>
    %cst_24 = arith.constant 1.600000e+01 : f32
    %51 = vector.broadcast %cst_24 : f32 to vector<1x128xf32>
    %52 = arith.divf %50, %51 : vector<1x128xf32>
    %53 = vector.broadcast %52 : vector<1x128xf32> to vector<16x128xf32>
    %54 = arith.subf %48, %53 : vector<16x128xf32>
    %55 = arith.mulf %54, %54 : vector<16x128xf32>
    %cst_25 = arith.constant dense<0.000000e+00> : vector<128xf32>
    %56 = vector.multi_reduction <add>, %55, %cst_25 [0] : vector<16x128xf32> to vector<128xf32>
    %57 = vector.shape_cast %56 : vector<128xf32> to vector<1x128xf32>
    %cst_26 = arith.constant 1.600000e+01 : f32
    %58 = vector.broadcast %cst_26 : f32 to vector<1x128xf32>
    %59 = arith.divf %57, %58 : vector<1x128xf32>
    %60 = vector.broadcast %52 : vector<1x128xf32> to vector<16x128xf32>
    %61 = arith.subf %48, %60 : vector<16x128xf32>
    %cst_27 = arith.constant 9.99999974E-6 : f32
    %62 = vector.broadcast %cst_27 : f32 to vector<1x128xf32>
    %63 = arith.addf %59, %62 : vector<1x128xf32>
    %64 = math.rsqrt %63 : vector<1x128xf32>
    %65 = vector.broadcast %64 : vector<1x128xf32> to vector<16x128xf32>
    %66 = arith.mulf %61, %65 : vector<16x128xf32>
    %67 = arith.truncf %66 : vector<16x128xf32> to vector<16x128xbf16>
    %cst_28 = arith.constant dense<0.000000e+00> : vector<16x128xf32>
    %68 = tpu.matmul %67, %14, %cst_28 {dimension_numbers = #tpu.dot_dimension_numbers<[1], [0], [0], [1], [0, 0, 1, 1], [], []>} : vector<16x128xbf16>, vector<128x128xbf16>, vector<16x128xf32> -> vector<16x128xf32>
    %69 = vector.broadcast %15 : vector<1x128xf32> to vector<16x128xf32>
    %70 = arith.addf %68, %69 : vector<16x128xf32>
    %71 = arith.addf %66, %70 : vector<16x128xf32>
    %cst_29 = arith.constant dense<0.000000e+00> : vector<128xf32>
    %72 = vector.multi_reduction <add>, %71, %cst_29 [0] : vector<16x128xf32> to vector<128xf32>
    %73 = vector.shape_cast %72 : vector<128xf32> to vector<1x128xf32>
    %cst_30 = arith.constant 1.600000e+01 : f32
    %74 = vector.broadcast %cst_30 : f32 to vector<1x128xf32>
    %75 = arith.divf %73, %74 : vector<1x128xf32>
    %76 = vector.broadcast %75 : vector<1x128xf32> to vector<16x128xf32>
    %77 = arith.subf %71, %76 : vector<16x128xf32>
    %78 = arith.mulf %77, %77 : vector<16x128xf32>
    %cst_31 = arith.constant dense<0.000000e+00> : vector<128xf32>
    %79 = vector.multi_reduction <add>, %78, %cst_31 [0] : vector<16x128xf32> to vector<128xf32>
    %80 = vector.shape_cast %79 : vector<128xf32> to vector<1x128xf32>
    %cst_32 = arith.constant 1.600000e+01 : f32
    %81 = vector.broadcast %cst_32 : f32 to vector<1x128xf32>
    %82 = arith.divf %80, %81 : vector<1x128xf32>
    %83 = vector.broadcast %75 : vector<1x128xf32> to vector<16x128xf32>
    %84 = arith.subf %71, %83 : vector<16x128xf32>
    %cst_33 = arith.constant 9.99999974E-6 : f32
    %85 = vector.broadcast %cst_33 : f32 to vector<1x128xf32>
    %86 = arith.addf %82, %85 : vector<1x128xf32>
    %87 = math.rsqrt %86 : vector<1x128xf32>
    %88 = vector.broadcast %87 : vector<1x128xf32> to vector<16x128xf32>
    %89 = arith.mulf %84, %88 : vector<16x128xf32>
    %90 = arith.truncf %89 : vector<16x128xf32> to vector<16x128xbf16>
    %cst_34 = arith.constant dense<0.000000e+00> : vector<16x384xf32>
    %91 = tpu.matmul %90, %12, %cst_34 {dimension_numbers = #tpu.dot_dimension_numbers<[1], [0], [0], [1], [0, 0, 1, 1], [], []>} : vector<16x128xbf16>, vector<128x384xbf16>, vector<16x384xf32> -> vector<16x384xf32>
    %92 = vector.broadcast %13 : vector<1x384xf32> to vector<16x384xf32>
    %93 = arith.addf %91, %92 : vector<16x384xf32>
    %cst_35 = arith.constant 0.000000e+00 : f32
    %94 = vector.broadcast %cst_35 : f32 to vector<16x384xf32>
    %95 = arith.maximumf %93, %94 : vector<16x384xf32>
    %96 = vector.extract_strided_slice %95 {offsets = [0, 0], sizes = [16, 128], strides = [1, 1]} : vector<16x384xf32> to vector<16x128xf32>
    %97 = vector.shape_cast %96 : vector<16x128xf32> to vector<2x8x128xf32>
    %98 = vector.extract_strided_slice %95 {offsets = [0, 128], sizes = [16, 128], strides = [1, 1]} : vector<16x384xf32> to vector<16x128xf32>
    %99 = vector.shape_cast %98 : vector<16x128xf32> to vector<2x8x128xf32>
    %100 = vector.extract_strided_slice %95 {offsets = [0, 256], sizes = [16, 128], strides = [1, 1]} : vector<16x384xf32> to vector<16x128xf32>
    %101 = vector.shape_cast %100 : vector<16x128xf32> to vector<2x8x128xf32>
    %102 = arith.truncf %97 : vector<2x8x128xf32> to vector<2x8x128xbf16>
    %103 = arith.truncf %99 : vector<2x8x128xf32> to vector<2x8x128xbf16>
    "tpu.trace_start"() <{level = 10 : i32, message = "bqd,bkd->bqk"}> : () -> ()
    %cst_36 = arith.constant dense<0.000000e+00> : vector<2x8x8xf32>
    %104 = tpu.matmul %102, %103, %cst_36 {dimension_numbers = #tpu.dot_dimension_numbers<[2], [2], [1], [1], [0, 0, 0, 1, 1, 1], [0], [0]>} : vector<2x8x128xbf16>, vector<2x8x128xbf16>, vector<2x8x8xf32> -> vector<2x8x8xf32>
    "tpu.trace_stop"() : () -> ()
    %cst_37 = arith.constant dense<0xFF800000> : vector<8x8xf32>
    %105 = vector.multi_reduction <maximumf>, %104, %cst_37 [0] : vector<2x8x8xf32> to vector<8x8xf32>
    %106 = vector.shape_cast %105 : vector<8x8xf32> to vector<1x8x8xf32>
    %107 = vector.broadcast %106 : vector<1x8x8xf32> to vector<2x8x8xf32>
    %108 = arith.subf %104, %107 : vector<2x8x8xf32>
    %109 = math.exp %108 : vector<2x8x8xf32>
    %cst_38 = arith.constant dense<0.000000e+00> : vector<8x8xf32>
    %110 = vector.multi_reduction <add>, %109, %cst_38 [0] : vector<2x8x8xf32> to vector<8x8xf32>
    %111 = vector.shape_cast %110 : vector<8x8xf32> to vector<1x8x8xf32>
    %112 = tpu.reciprocal %111 {approx = true} : vector<1x8x8xf32> -> vector<1x8x8xf32>
    %113 = vector.broadcast %112 : vector<1x8x8xf32> to vector<2x8x8xf32>
    %114 = arith.mulf %109, %113 : vector<2x8x8xf32>
    %115 = arith.truncf %114 : vector<2x8x8xf32> to vector<2x8x8xbf16>
    %116 = arith.truncf %101 : vector<2x8x128xf32> to vector<2x8x128xbf16>
    "tpu.trace_start"() <{level = 10 : i32, message = "bqk,bkd->bqd"}> : () -> ()
    %cst_39 = arith.constant dense<0.000000e+00> : vector<2x8x128xf32>
    %117 = tpu.matmul %115, %116, %cst_39 {dimension_numbers = #tpu.dot_dimension_numbers<[2], [1], [1], [2], [0, 0, 0, 1, 1, 2], [0], [0]>} : vector<2x8x8xbf16>, vector<2x8x128xbf16>, vector<2x8x128xf32> -> vector<2x8x128xf32>
    "tpu.trace_stop"() : () -> ()
    %118 = vector.shape_cast %117 : vector<2x8x128xf32> to vector<16x128xf32>
    %119 = arith.addf %89, %118 : vector<16x128xf32>
    %cst_40 = arith.constant dense<0.000000e+00> : vector<128xf32>
    %120 = vector.multi_reduction <add>, %119, %cst_40 [0] : vector<16x128xf32> to vector<128xf32>
    %121 = vector.shape_cast %120 : vector<128xf32> to vector<1x128xf32>
    %cst_41 = arith.constant 1.600000e+01 : f32
    %122 = vector.broadcast %cst_41 : f32 to vector<1x128xf32>
    %123 = arith.divf %121, %122 : vector<1x128xf32>
    %124 = vector.broadcast %123 : vector<1x128xf32> to vector<16x128xf32>
    %125 = arith.subf %119, %124 : vector<16x128xf32>
    %126 = arith.mulf %125, %125 : vector<16x128xf32>
    %cst_42 = arith.constant dense<0.000000e+00> : vector<128xf32>
    %127 = vector.multi_reduction <add>, %126, %cst_42 [0] : vector<16x128xf32> to vector<128xf32>
    %128 = vector.shape_cast %127 : vector<128xf32> to vector<1x128xf32>
    %cst_43 = arith.constant 1.600000e+01 : f32
    %129 = vector.broadcast %cst_43 : f32 to vector<1x128xf32>
    %130 = arith.divf %128, %129 : vector<1x128xf32>
    %131 = vector.broadcast %123 : vector<1x128xf32> to vector<16x128xf32>
    %132 = arith.subf %119, %131 : vector<16x128xf32>
    %cst_44 = arith.constant 9.99999974E-6 : f32
    %133 = vector.broadcast %cst_44 : f32 to vector<1x128xf32>
    %134 = arith.addf %130, %133 : vector<1x128xf32>
    %135 = math.rsqrt %134 : vector<1x128xf32>
    %136 = vector.broadcast %135 : vector<1x128xf32> to vector<16x128xf32>
    %137 = arith.mulf %132, %136 : vector<16x128xf32>
    %138 = arith.truncf %137 : vector<16x128xf32> to vector<16x128xbf16>
    %cst_45 = arith.constant dense<0.000000e+00> : vector<16x128xf32>
    %139 = tpu.matmul %138, %14, %cst_45 {dimension_numbers = #tpu.dot_dimension_numbers<[1], [0], [0], [1], [0, 0, 1, 1], [], []>} : vector<16x128xbf16>, vector<128x128xbf16>, vector<16x128xf32> -> vector<16x128xf32>
    %140 = vector.broadcast %15 : vector<1x128xf32> to vector<16x128xf32>
    %141 = arith.addf %139, %140 : vector<16x128xf32>
    %142 = arith.addf %137, %141 : vector<16x128xf32>
    %cst_46 = arith.constant dense<0.000000e+00> : vector<128xf32>
    %143 = vector.multi_reduction <add>, %142, %cst_46 [0] : vector<16x128xf32> to vector<128xf32>
    %144 = vector.shape_cast %143 : vector<128xf32> to vector<1x128xf32>
    %cst_47 = arith.constant 1.600000e+01 : f32
    %145 = vector.broadcast %cst_47 : f32 to vector<1x128xf32>
    %146 = arith.divf %144, %145 : vector<1x128xf32>
    %147 = vector.broadcast %146 : vector<1x128xf32> to vector<16x128xf32>
    %148 = arith.subf %142, %147 : vector<16x128xf32>
    %149 = arith.mulf %148, %148 : vector<16x128xf32>
    %cst_48 = arith.constant dense<0.000000e+00> : vector<128xf32>
    %150 = vector.multi_reduction <add>, %149, %cst_48 [0] : vector<16x128xf32> to vector<128xf32>
    %151 = vector.shape_cast %150 : vector<128xf32> to vector<1x128xf32>
    %cst_49 = arith.constant 1.600000e+01 : f32
    %152 = vector.broadcast %cst_49 : f32 to vector<1x128xf32>
    %153 = arith.divf %151, %152 : vector<1x128xf32>
    %154 = vector.broadcast %146 : vector<1x128xf32> to vector<16x128xf32>
    %155 = arith.subf %142, %154 : vector<16x128xf32>
    %cst_50 = arith.constant 9.99999974E-6 : f32
    %156 = vector.broadcast %cst_50 : f32 to vector<1x128xf32>
    %157 = arith.addf %153, %156 : vector<1x128xf32>
    %158 = math.rsqrt %157 : vector<1x128xf32>
    %159 = vector.broadcast %158 : vector<1x128xf32> to vector<16x128xf32>
    %160 = arith.mulf %155, %159 : vector<16x128xf32>
    %c0_51 = arith.constant 0 : index
    %c0_52 = arith.constant 0 : index
    %161 = vector.load %arg9[%c0_51, %c0_52] : memref<128x384xbf16, #tpu.memory_space<vmem>>, vector<128x384xbf16>
    %c0_53 = arith.constant 0 : index
    %c0_54 = arith.constant 0 : index
    %162 = vector.load %arg10[%c0_53, %c0_54] : memref<1x384xf32, #tpu.memory_space<vmem>>, vector<1x384xf32>
    %c0_55 = arith.constant 0 : index
    %c0_56 = arith.constant 0 : index
    %163 = vector.load %arg15[%c0_55, %c0_56] : memref<128x128xbf16, #tpu.memory_space<vmem>>, vector<128x128xbf16>
    %c0_57 = arith.constant 0 : index
    %c0_58 = arith.constant 0 : index
    %164 = vector.load %arg16[%c0_57, %c0_58] : memref<1x128xf32, #tpu.memory_space<vmem>>, vector<1x128xf32>
    %c0_59 = arith.constant 0 : index
    %c0_60 = arith.constant 0 : index
    %165 = vector.load %arg17[%c0_59, %c0_60] : memref<128x128xbf16, #tpu.memory_space<vmem>>, vector<128x128xbf16>
    %c0_61 = arith.constant 0 : index
    %c0_62 = arith.constant 0 : index
    %166 = vector.load %arg18[%c0_61, %c0_62] : memref<1x128xf32, #tpu.memory_space<vmem>>, vector<1x128xf32>
    %c0_63 = arith.constant 0 : index
    %c0_64 = arith.constant 0 : index
    %167 = vector.load %arg19[%c0_63, %c0_64] : memref<128x128xbf16, #tpu.memory_space<vmem>>, vector<128x128xbf16>
    %c0_65 = arith.constant 0 : index
    %c0_66 = arith.constant 0 : index
    %168 = vector.load %arg20[%c0_65, %c0_66] : memref<1x128xf32, #tpu.memory_space<vmem>>, vector<1x128xf32>
    %169 = arith.truncf %160 : vector<16x128xf32> to vector<16x128xbf16>
    %c0_67 = arith.constant 0 : index
    %c0_68 = arith.constant 0 : index
    %170 = vector.load %arg11[%c0_67, %c0_68] : memref<128x128xbf16, #tpu.memory_space<vmem>>, vector<128x128xbf16>
    %cst_69 = arith.constant dense<0.000000e+00> : vector<16x128xf32>
    %171 = tpu.matmul %169, %170, %cst_69 {dimension_numbers = #tpu.dot_dimension_numbers<[1], [0], [0], [1], [0, 0, 1, 1], [], []>} : vector<16x128xbf16>, vector<128x128xbf16>, vector<16x128xf32> -> vector<16x128xf32>
    %c0_70 = arith.constant 0 : index
    %c0_71 = arith.constant 0 : index
    %172 = vector.load %arg12[%c0_70, %c0_71] : memref<1x128xf32, #tpu.memory_space<vmem>>, vector<1x128xf32>
    %173 = vector.broadcast %172 : vector<1x128xf32> to vector<16x128xf32>
    %174 = arith.addf %171, %173 : vector<16x128xf32>
    %175 = vector.shape_cast %174 : vector<16x128xf32> to vector<2x8x128xf32>
    %c0_72 = arith.constant 0 : index
    %c0_73 = arith.constant 0 : index
    %176 = vector.load %arg13[%c0_72, %c0_73] : memref<128x128xbf16, #tpu.memory_space<vmem>>, vector<128x128xbf16>
    %cst_74 = arith.constant dense<0.000000e+00> : vector<16x128xf32>
    %177 = tpu.matmul %169, %176, %cst_74 {dimension_numbers = #tpu.dot_dimension_numbers<[1], [0], [0], [1], [0, 0, 1, 1], [], []>} : vector<16x128xbf16>, vector<128x128xbf16>, vector<16x128xf32> -> vector<16x128xf32>
    %c0_75 = arith.constant 0 : index
    %c0_76 = arith.constant 0 : index
    %178 = vector.load %arg14[%c0_75, %c0_76] : memref<1x128xf32, #tpu.memory_space<vmem>>, vector<1x128xf32>
    %179 = vector.broadcast %178 : vector<1x128xf32> to vector<16x128xf32>
    %180 = arith.addf %177, %179 : vector<16x128xf32>
    %181 = vector.shape_cast %180 : vector<16x128xf32> to vector<2x8x128xf32>
    %cst_77 = arith.constant 2.000000e+00 : f32
    %182 = vector.broadcast %cst_77 : f32 to vector<16x128xf32>
    %183 = arith.mulf %182, %9 : vector<16x128xf32>
    %184 = arith.addf %183, %11 : vector<16x128xf32>
    %185 = arith.truncf %184 : vector<16x128xf32> to vector<16x128xbf16>
    %cst_78 = arith.constant dense<0.000000e+00> : vector<16x384xf32>
    %186 = tpu.matmul %185, %161, %cst_78 {dimension_numbers = #tpu.dot_dimension_numbers<[1], [0], [0], [1], [0, 0, 1, 1], [], []>} : vector<16x128xbf16>, vector<128x384xbf16>, vector<16x384xf32> -> vector<16x384xf32>
    %187 = vector.broadcast %162 : vector<1x384xf32> to vector<16x384xf32>
    %188 = arith.addf %186, %187 : vector<16x384xf32>
    %cst_79 = arith.constant 0.000000e+00 : f32
    %189 = vector.broadcast %cst_79 : f32 to vector<16x384xf32>
    %190 = arith.maximumf %188, %189 : vector<16x384xf32>
    %191 = vector.extract_strided_slice %190 {offsets = [0, 0], sizes = [16, 128], strides = [1, 1]} : vector<16x384xf32> to vector<16x128xf32>
    %192 = vector.shape_cast %191 : vector<16x128xf32> to vector<2x8x128xf32>
    %193 = vector.extract_strided_slice %190 {offsets = [0, 128], sizes = [16, 128], strides = [1, 1]} : vector<16x384xf32> to vector<16x128xf32>
    %194 = vector.shape_cast %193 : vector<16x128xf32> to vector<2x8x128xf32>
    %195 = vector.extract_strided_slice %190 {offsets = [0, 256], sizes = [16, 128], strides = [1, 1]} : vector<16x384xf32> to vector<16x128xf32>
    %196 = vector.shape_cast %195 : vector<16x128xf32> to vector<2x8x128xf32>
    %197 = arith.truncf %192 : vector<2x8x128xf32> to vector<2x8x128xbf16>
    %198 = arith.truncf %194 : vector<2x8x128xf32> to vector<2x8x128xbf16>
    "tpu.trace_start"() <{level = 10 : i32, message = "bqd,bkd->bqk"}> : () -> ()
    %cst_80 = arith.constant dense<0.000000e+00> : vector<2x8x8xf32>
    %199 = tpu.matmul %197, %198, %cst_80 {dimension_numbers = #tpu.dot_dimension_numbers<[2], [2], [1], [1], [0, 0, 0, 1, 1, 1], [0], [0]>} : vector<2x8x128xbf16>, vector<2x8x128xbf16>, vector<2x8x8xf32> -> vector<2x8x8xf32>
    "tpu.trace_stop"() : () -> ()
    %cst_81 = arith.constant dense<0xFF800000> : vector<8x8xf32>
    %200 = vector.multi_reduction <maximumf>, %199, %cst_81 [0] : vector<2x8x8xf32> to vector<8x8xf32>
    %201 = vector.shape_cast %200 : vector<8x8xf32> to vector<1x8x8xf32>
    %202 = vector.broadcast %201 : vector<1x8x8xf32> to vector<2x8x8xf32>
    %203 = arith.subf %199, %202 : vector<2x8x8xf32>
    %204 = math.exp %203 : vector<2x8x8xf32>
    %cst_82 = arith.constant dense<0.000000e+00> : vector<8x8xf32>
    %205 = vector.multi_reduction <add>, %204, %cst_82 [0] : vector<2x8x8xf32> to vector<8x8xf32>
    %206 = vector.shape_cast %205 : vector<8x8xf32> to vector<1x8x8xf32>
    %207 = tpu.reciprocal %206 {approx = true} : vector<1x8x8xf32> -> vector<1x8x8xf32>
    %208 = vector.broadcast %207 : vector<1x8x8xf32> to vector<2x8x8xf32>
    %209 = arith.mulf %204, %208 : vector<2x8x8xf32>
    %210 = arith.truncf %209 : vector<2x8x8xf32> to vector<2x8x8xbf16>
    %211 = arith.truncf %196 : vector<2x8x128xf32> to vector<2x8x128xbf16>
    "tpu.trace_start"() <{level = 10 : i32, message = "bqk,bkd->bqd"}> : () -> ()
    %cst_83 = arith.constant dense<0.000000e+00> : vector<2x8x128xf32>
    %212 = tpu.matmul %210, %211, %cst_83 {dimension_numbers = #tpu.dot_dimension_numbers<[2], [1], [1], [2], [0, 0, 0, 1, 1, 2], [0], [0]>} : vector<2x8x8xbf16>, vector<2x8x128xbf16>, vector<2x8x128xf32> -> vector<2x8x128xf32>
    "tpu.trace_stop"() : () -> ()
    %213 = vector.shape_cast %212 : vector<2x8x128xf32> to vector<16x128xf32>
    %214 = arith.addf %184, %213 : vector<16x128xf32>
    %cst_84 = arith.constant dense<0.000000e+00> : vector<128xf32>
    %215 = vector.multi_reduction <add>, %214, %cst_84 [0] : vector<16x128xf32> to vector<128xf32>
    %216 = vector.shape_cast %215 : vector<128xf32> to vector<1x128xf32>
    %cst_85 = arith.constant 1.600000e+01 : f32
    %217 = vector.broadcast %cst_85 : f32 to vector<1x128xf32>
    %218 = arith.divf %216, %217 : vector<1x128xf32>
    %219 = vector.broadcast %218 : vector<1x128xf32> to vector<16x128xf32>
    %220 = arith.subf %214, %219 : vector<16x128xf32>
    %221 = arith.mulf %220, %220 : vector<16x128xf32>
    %cst_86 = arith.constant dense<0.000000e+00> : vector<128xf32>
    %222 = vector.multi_reduction <add>, %221, %cst_86 [0] : vector<16x128xf32> to vector<128xf32>
    %223 = vector.shape_cast %222 : vector<128xf32> to vector<1x128xf32>
    %cst_87 = arith.constant 1.600000e+01 : f32
    %224 = vector.broadcast %cst_87 : f32 to vector<1x128xf32>
    %225 = arith.divf %223, %224 : vector<1x128xf32>
    %226 = vector.broadcast %218 : vector<1x128xf32> to vector<16x128xf32>
    %227 = arith.subf %214, %226 : vector<16x128xf32>
    %cst_88 = arith.constant 9.99999974E-6 : f32
    %228 = vector.broadcast %cst_88 : f32 to vector<1x128xf32>
    %229 = arith.addf %225, %228 : vector<1x128xf32>
    %230 = math.rsqrt %229 : vector<1x128xf32>
    %231 = vector.broadcast %230 : vector<1x128xf32> to vector<16x128xf32>
    %232 = arith.mulf %227, %231 : vector<16x128xf32>
    %233 = arith.truncf %232 : vector<16x128xf32> to vector<16x128xbf16>
    %cst_89 = arith.constant dense<0.000000e+00> : vector<16x128xf32>
    %234 = tpu.matmul %233, %163, %cst_89 {dimension_numbers = #tpu.dot_dimension_numbers<[1], [0], [0], [1], [0, 0, 1, 1], [], []>} : vector<16x128xbf16>, vector<128x128xbf16>, vector<16x128xf32> -> vector<16x128xf32>
    %235 = vector.broadcast %164 : vector<1x128xf32> to vector<16x128xf32>
    %236 = arith.addf %234, %235 : vector<16x128xf32>
    %237 = vector.shape_cast %236 : vector<16x128xf32> to vector<2x8x128xf32>
    %238 = vector.shape_cast %175 : vector<2x8x128xf32> to vector<2x8x1x128xf32>
    %239 = vector.shape_cast %181 : vector<2x8x128xf32> to vector<2x1x8x128xf32>
    %240 = vector.broadcast %238 : vector<2x8x1x128xf32> to vector<2x8x8x128xf32>
    %241 = vector.broadcast %239 : vector<2x1x8x128xf32> to vector<2x8x8x128xf32>
    %242 = arith.mulf %240, %241 : vector<2x8x8x128xf32>
    %cst_90 = arith.constant dense<0xFF800000> : vector<2x8x128xf32>
    %243 = vector.multi_reduction <maximumf>, %242, %cst_90 [2] : vector<2x8x8x128xf32> to vector<2x8x128xf32>
    %244 = vector.shape_cast %243 : vector<2x8x128xf32> to vector<2x8x1x128xf32>
    %245 = vector.broadcast %244 : vector<2x8x1x128xf32> to vector<2x8x8x128xf32>
    %246 = arith.subf %242, %245 : vector<2x8x8x128xf32>
    %247 = math.exp %246 : vector<2x8x8x128xf32>
    %cst_91 = arith.constant dense<0.000000e+00> : vector<2x8x128xf32>
    %248 = vector.multi_reduction <add>, %247, %cst_91 [2] : vector<2x8x8x128xf32> to vector<2x8x128xf32>
    %249 = vector.shape_cast %248 : vector<2x8x128xf32> to vector<2x8x1x128xf32>
    %250 = tpu.reciprocal %249 {approx = true} : vector<2x8x1x128xf32> -> vector<2x8x1x128xf32>
    %251 = vector.broadcast %250 : vector<2x8x1x128xf32> to vector<2x8x8x128xf32>
    %252 = arith.mulf %247, %251 : vector<2x8x8x128xf32>
    %253 = vector.shape_cast %237 : vector<2x8x128xf32> to vector<2x1x8x128xf32>
    %254 = vector.broadcast %253 : vector<2x1x8x128xf32> to vector<2x8x8x128xf32>
    %255 = arith.mulf %252, %254 : vector<2x8x8x128xf32>
    %cst_92 = arith.constant dense<0.000000e+00> : vector<2x8x128xf32>
    %256 = vector.multi_reduction <add>, %255, %cst_92 [2] : vector<2x8x8x128xf32> to vector<2x8x128xf32>
    %257 = vector.shape_cast %256 : vector<2x8x128xf32> to vector<16x128xf32>
    %258 = arith.truncf %257 : vector<16x128xf32> to vector<16x128xbf16>
    %cst_93 = arith.constant dense<0.000000e+00> : vector<16x128xf32>
    %259 = tpu.matmul %258, %165, %cst_93 {dimension_numbers = #tpu.dot_dimension_numbers<[1], [0], [0], [1], [0, 0, 1, 1], [], []>} : vector<16x128xbf16>, vector<128x128xbf16>, vector<16x128xf32> -> vector<16x128xf32>
    %260 = vector.broadcast %166 : vector<1x128xf32> to vector<16x128xf32>
    %261 = arith.addf %259, %260 : vector<16x128xf32>
    %262 = arith.addf %261, %232 : vector<16x128xf32>
    %cst_94 = arith.constant dense<0.000000e+00> : vector<128xf32>
    %263 = vector.multi_reduction <add>, %262, %cst_94 [0] : vector<16x128xf32> to vector<128xf32>
    %264 = vector.shape_cast %263 : vector<128xf32> to vector<1x128xf32>
    %cst_95 = arith.constant 1.600000e+01 : f32
    %265 = vector.broadcast %cst_95 : f32 to vector<1x128xf32>
    %266 = arith.divf %264, %265 : vector<1x128xf32>
    %267 = vector.broadcast %266 : vector<1x128xf32> to vector<16x128xf32>
    %268 = arith.subf %262, %267 : vector<16x128xf32>
    %269 = arith.mulf %268, %268 : vector<16x128xf32>
    %cst_96 = arith.constant dense<0.000000e+00> : vector<128xf32>
    %270 = vector.multi_reduction <add>, %269, %cst_96 [0] : vector<16x128xf32> to vector<128xf32>
    %271 = vector.shape_cast %270 : vector<128xf32> to vector<1x128xf32>
    %cst_97 = arith.constant 1.600000e+01 : f32
    %272 = vector.broadcast %cst_97 : f32 to vector<1x128xf32>
    %273 = arith.divf %271, %272 : vector<1x128xf32>
    %274 = vector.broadcast %266 : vector<1x128xf32> to vector<16x128xf32>
    %275 = arith.subf %262, %274 : vector<16x128xf32>
    %cst_98 = arith.constant 9.99999974E-6 : f32
    %276 = vector.broadcast %cst_98 : f32 to vector<1x128xf32>
    %277 = arith.addf %273, %276 : vector<1x128xf32>
    %278 = math.rsqrt %277 : vector<1x128xf32>
    %279 = vector.broadcast %278 : vector<1x128xf32> to vector<16x128xf32>
    %280 = arith.mulf %275, %279 : vector<16x128xf32>
    %281 = arith.truncf %280 : vector<16x128xf32> to vector<16x128xbf16>
    %cst_99 = arith.constant dense<0.000000e+00> : vector<16x128xf32>
    %282 = tpu.matmul %281, %167, %cst_99 {dimension_numbers = #tpu.dot_dimension_numbers<[1], [0], [0], [1], [0, 0, 1, 1], [], []>} : vector<16x128xbf16>, vector<128x128xbf16>, vector<16x128xf32> -> vector<16x128xf32>
    %283 = vector.broadcast %168 : vector<1x128xf32> to vector<16x128xf32>
    %284 = arith.addf %282, %283 : vector<16x128xf32>
    %285 = arith.addf %280, %284 : vector<16x128xf32>
    %cst_100 = arith.constant dense<0.000000e+00> : vector<128xf32>
    %286 = vector.multi_reduction <add>, %285, %cst_100 [0] : vector<16x128xf32> to vector<128xf32>
    %287 = vector.shape_cast %286 : vector<128xf32> to vector<1x128xf32>
    %cst_101 = arith.constant 1.600000e+01 : f32
    %288 = vector.broadcast %cst_101 : f32 to vector<1x128xf32>
    %289 = arith.divf %287, %288 : vector<1x128xf32>
    %290 = vector.broadcast %289 : vector<1x128xf32> to vector<16x128xf32>
    %291 = arith.subf %285, %290 : vector<16x128xf32>
    %292 = arith.mulf %291, %291 : vector<16x128xf32>
    %cst_102 = arith.constant dense<0.000000e+00> : vector<128xf32>
    %293 = vector.multi_reduction <add>, %292, %cst_102 [0] : vector<16x128xf32> to vector<128xf32>
    %294 = vector.shape_cast %293 : vector<128xf32> to vector<1x128xf32>
    %cst_103 = arith.constant 1.600000e+01 : f32
    %295 = vector.broadcast %cst_103 : f32 to vector<1x128xf32>
    %296 = arith.divf %294, %295 : vector<1x128xf32>
    %297 = vector.broadcast %289 : vector<1x128xf32> to vector<16x128xf32>
    %298 = arith.subf %285, %297 : vector<16x128xf32>
    %cst_104 = arith.constant 9.99999974E-6 : f32
    %299 = vector.broadcast %cst_104 : f32 to vector<1x128xf32>
    %300 = arith.addf %296, %299 : vector<1x128xf32>
    %301 = math.rsqrt %300 : vector<1x128xf32>
    %302 = vector.broadcast %301 : vector<1x128xf32> to vector<16x128xf32>
    %303 = arith.mulf %298, %302 : vector<16x128xf32>
    %304 = arith.truncf %303 : vector<16x128xf32> to vector<16x128xbf16>
    %cst_105 = arith.constant dense<0.000000e+00> : vector<16x384xf32>
    %305 = tpu.matmul %304, %161, %cst_105 {dimension_numbers = #tpu.dot_dimension_numbers<[1], [0], [0], [1], [0, 0, 1, 1], [], []>} : vector<16x128xbf16>, vector<128x384xbf16>, vector<16x384xf32> -> vector<16x384xf32>
    %306 = vector.broadcast %162 : vector<1x384xf32> to vector<16x384xf32>
    %307 = arith.addf %305, %306 : vector<16x384xf32>
    %cst_106 = arith.constant 0.000000e+00 : f32
    %308 = vector.broadcast %cst_106 : f32 to vector<16x384xf32>
    %309 = arith.maximumf %307, %308 : vector<16x384xf32>
    %310 = vector.extract_strided_slice %309 {offsets = [0, 0], sizes = [16, 128], strides = [1, 1]} : vector<16x384xf32> to vector<16x128xf32>
    %311 = vector.shape_cast %310 : vector<16x128xf32> to vector<2x8x128xf32>
    %312 = vector.extract_strided_slice %309 {offsets = [0, 128], sizes = [16, 128], strides = [1, 1]} : vector<16x384xf32> to vector<16x128xf32>
    %313 = vector.shape_cast %312 : vector<16x128xf32> to vector<2x8x128xf32>
    %314 = vector.extract_strided_slice %309 {offsets = [0, 256], sizes = [16, 128], strides = [1, 1]} : vector<16x384xf32> to vector<16x128xf32>
    %315 = vector.shape_cast %314 : vector<16x128xf32> to vector<2x8x128xf32>
    %316 = arith.truncf %311 : vector<2x8x128xf32> to vector<2x8x128xbf16>
    %317 = arith.truncf %313 : vector<2x8x128xf32> to vector<2x8x128xbf16>
    "tpu.trace_start"() <{level = 10 : i32, message = "bqd,bkd->bqk"}> : () -> ()
    %cst_107 = arith.constant dense<0.000000e+00> : vector<2x8x8xf32>
    %318 = tpu.matmul %316, %317, %cst_107 {dimension_numbers = #tpu.dot_dimension_numbers<[2], [2], [1], [1], [0, 0, 0, 1, 1, 1], [0], [0]>} : vector<2x8x128xbf16>, vector<2x8x128xbf16>, vector<2x8x8xf32> -> vector<2x8x8xf32>
    "tpu.trace_stop"() : () -> ()
    %cst_108 = arith.constant dense<0xFF800000> : vector<8x8xf32>
    %319 = vector.multi_reduction <maximumf>, %318, %cst_108 [0] : vector<2x8x8xf32> to vector<8x8xf32>
    %320 = vector.shape_cast %319 : vector<8x8xf32> to vector<1x8x8xf32>
    %321 = vector.broadcast %320 : vector<1x8x8xf32> to vector<2x8x8xf32>
    %322 = arith.subf %318, %321 : vector<2x8x8xf32>
    %323 = math.exp %322 : vector<2x8x8xf32>
    %cst_109 = arith.constant dense<0.000000e+00> : vector<8x8xf32>
    %324 = vector.multi_reduction <add>, %323, %cst_109 [0] : vector<2x8x8xf32> to vector<8x8xf32>
    %325 = vector.shape_cast %324 : vector<8x8xf32> to vector<1x8x8xf32>
    %326 = tpu.reciprocal %325 {approx = true} : vector<1x8x8xf32> -> vector<1x8x8xf32>
    %327 = vector.broadcast %326 : vector<1x8x8xf32> to vector<2x8x8xf32>
    %328 = arith.mulf %323, %327 : vector<2x8x8xf32>
    %329 = arith.truncf %328 : vector<2x8x8xf32> to vector<2x8x8xbf16>
    %330 = arith.truncf %315 : vector<2x8x128xf32> to vector<2x8x128xbf16>
    "tpu.trace_start"() <{level = 10 : i32, message = "bqk,bkd->bqd"}> : () -> ()
    %cst_110 = arith.constant dense<0.000000e+00> : vector<2x8x128xf32>
    %331 = tpu.matmul %329, %330, %cst_110 {dimension_numbers = #tpu.dot_dimension_numbers<[2], [1], [1], [2], [0, 0, 0, 1, 1, 2], [0], [0]>} : vector<2x8x8xbf16>, vector<2x8x128xbf16>, vector<2x8x128xf32> -> vector<2x8x128xf32>
    "tpu.trace_stop"() : () -> ()
    %332 = vector.shape_cast %331 : vector<2x8x128xf32> to vector<16x128xf32>
    %333 = arith.addf %303, %332 : vector<16x128xf32>
    %cst_111 = arith.constant dense<0.000000e+00> : vector<128xf32>
    %334 = vector.multi_reduction <add>, %333, %cst_111 [0] : vector<16x128xf32> to vector<128xf32>
    %335 = vector.shape_cast %334 : vector<128xf32> to vector<1x128xf32>
    %cst_112 = arith.constant 1.600000e+01 : f32
    %336 = vector.broadcast %cst_112 : f32 to vector<1x128xf32>
    %337 = arith.divf %335, %336 : vector<1x128xf32>
    %338 = vector.broadcast %337 : vector<1x128xf32> to vector<16x128xf32>
    %339 = arith.subf %333, %338 : vector<16x128xf32>
    %340 = arith.mulf %339, %339 : vector<16x128xf32>
    %cst_113 = arith.constant dense<0.000000e+00> : vector<128xf32>
    %341 = vector.multi_reduction <add>, %340, %cst_113 [0] : vector<16x128xf32> to vector<128xf32>
    %342 = vector.shape_cast %341 : vector<128xf32> to vector<1x128xf32>
    %cst_114 = arith.constant 1.600000e+01 : f32
    %343 = vector.broadcast %cst_114 : f32 to vector<1x128xf32>
    %344 = arith.divf %342, %343 : vector<1x128xf32>
    %345 = vector.broadcast %337 : vector<1x128xf32> to vector<16x128xf32>
    %346 = arith.subf %333, %345 : vector<16x128xf32>
    %cst_115 = arith.constant 9.99999974E-6 : f32
    %347 = vector.broadcast %cst_115 : f32 to vector<1x128xf32>
    %348 = arith.addf %344, %347 : vector<1x128xf32>
    %349 = math.rsqrt %348 : vector<1x128xf32>
    %350 = vector.broadcast %349 : vector<1x128xf32> to vector<16x128xf32>
    %351 = arith.mulf %346, %350 : vector<16x128xf32>
    %352 = arith.truncf %351 : vector<16x128xf32> to vector<16x128xbf16>
    %cst_116 = arith.constant dense<0.000000e+00> : vector<16x128xf32>
    %353 = tpu.matmul %352, %163, %cst_116 {dimension_numbers = #tpu.dot_dimension_numbers<[1], [0], [0], [1], [0, 0, 1, 1], [], []>} : vector<16x128xbf16>, vector<128x128xbf16>, vector<16x128xf32> -> vector<16x128xf32>
    %354 = vector.broadcast %164 : vector<1x128xf32> to vector<16x128xf32>
    %355 = arith.addf %353, %354 : vector<16x128xf32>
    %356 = vector.shape_cast %355 : vector<16x128xf32> to vector<2x8x128xf32>
    %357 = vector.shape_cast %175 : vector<2x8x128xf32> to vector<2x8x1x128xf32>
    %358 = vector.shape_cast %181 : vector<2x8x128xf32> to vector<2x1x8x128xf32>
    %359 = vector.broadcast %357 : vector<2x8x1x128xf32> to vector<2x8x8x128xf32>
    %360 = vector.broadcast %358 : vector<2x1x8x128xf32> to vector<2x8x8x128xf32>
    %361 = arith.mulf %359, %360 : vector<2x8x8x128xf32>
    %cst_117 = arith.constant dense<0xFF800000> : vector<2x8x128xf32>
    %362 = vector.multi_reduction <maximumf>, %361, %cst_117 [2] : vector<2x8x8x128xf32> to vector<2x8x128xf32>
    %363 = vector.shape_cast %362 : vector<2x8x128xf32> to vector<2x8x1x128xf32>
    %364 = vector.broadcast %363 : vector<2x8x1x128xf32> to vector<2x8x8x128xf32>
    %365 = arith.subf %361, %364 : vector<2x8x8x128xf32>
    %366 = math.exp %365 : vector<2x8x8x128xf32>
    %cst_118 = arith.constant dense<0.000000e+00> : vector<2x8x128xf32>
    %367 = vector.multi_reduction <add>, %366, %cst_118 [2] : vector<2x8x8x128xf32> to vector<2x8x128xf32>
    %368 = vector.shape_cast %367 : vector<2x8x128xf32> to vector<2x8x1x128xf32>
    %369 = tpu.reciprocal %368 {approx = true} : vector<2x8x1x128xf32> -> vector<2x8x1x128xf32>
    %370 = vector.broadcast %369 : vector<2x8x1x128xf32> to vector<2x8x8x128xf32>
    %371 = arith.mulf %366, %370 : vector<2x8x8x128xf32>
    %372 = vector.shape_cast %356 : vector<2x8x128xf32> to vector<2x1x8x128xf32>
    %373 = vector.broadcast %372 : vector<2x1x8x128xf32> to vector<2x8x8x128xf32>
    %374 = arith.mulf %371, %373 : vector<2x8x8x128xf32>
    %cst_119 = arith.constant dense<0.000000e+00> : vector<2x8x128xf32>
    %375 = vector.multi_reduction <add>, %374, %cst_119 [2] : vector<2x8x8x128xf32> to vector<2x8x128xf32>
    %376 = vector.shape_cast %375 : vector<2x8x128xf32> to vector<16x128xf32>
    %377 = arith.truncf %376 : vector<16x128xf32> to vector<16x128xbf16>
    %cst_120 = arith.constant dense<0.000000e+00> : vector<16x128xf32>
    %378 = tpu.matmul %377, %165, %cst_120 {dimension_numbers = #tpu.dot_dimension_numbers<[1], [0], [0], [1], [0, 0, 1, 1], [], []>} : vector<16x128xbf16>, vector<128x128xbf16>, vector<16x128xf32> -> vector<16x128xf32>
    %379 = vector.broadcast %166 : vector<1x128xf32> to vector<16x128xf32>
    %380 = arith.addf %378, %379 : vector<16x128xf32>
    %381 = arith.addf %380, %351 : vector<16x128xf32>
    %cst_121 = arith.constant dense<0.000000e+00> : vector<128xf32>
    %382 = vector.multi_reduction <add>, %381, %cst_121 [0] : vector<16x128xf32> to vector<128xf32>
    %383 = vector.shape_cast %382 : vector<128xf32> to vector<1x128xf32>
    %cst_122 = arith.constant 1.600000e+01 : f32
    %384 = vector.broadcast %cst_122 : f32 to vector<1x128xf32>
    %385 = arith.divf %383, %384 : vector<1x128xf32>
    %386 = vector.broadcast %385 : vector<1x128xf32> to vector<16x128xf32>
    %387 = arith.subf %381, %386 : vector<16x128xf32>
    %388 = arith.mulf %387, %387 : vector<16x128xf32>
    %cst_123 = arith.constant dense<0.000000e+00> : vector<128xf32>
    %389 = vector.multi_reduction <add>, %388, %cst_123 [0] : vector<16x128xf32> to vector<128xf32>
    %390 = vector.shape_cast %389 : vector<128xf32> to vector<1x128xf32>
    %cst_124 = arith.constant 1.600000e+01 : f32
    %391 = vector.broadcast %cst_124 : f32 to vector<1x128xf32>
    %392 = arith.divf %390, %391 : vector<1x128xf32>
    %393 = vector.broadcast %385 : vector<1x128xf32> to vector<16x128xf32>
    %394 = arith.subf %381, %393 : vector<16x128xf32>
    %cst_125 = arith.constant 9.99999974E-6 : f32
    %395 = vector.broadcast %cst_125 : f32 to vector<1x128xf32>
    %396 = arith.addf %392, %395 : vector<1x128xf32>
    %397 = math.rsqrt %396 : vector<1x128xf32>
    %398 = vector.broadcast %397 : vector<1x128xf32> to vector<16x128xf32>
    %399 = arith.mulf %394, %398 : vector<16x128xf32>
    %400 = arith.truncf %399 : vector<16x128xf32> to vector<16x128xbf16>
    %cst_126 = arith.constant dense<0.000000e+00> : vector<16x128xf32>
    %401 = tpu.matmul %400, %167, %cst_126 {dimension_numbers = #tpu.dot_dimension_numbers<[1], [0], [0], [1], [0, 0, 1, 1], [], []>} : vector<16x128xbf16>, vector<128x128xbf16>, vector<16x128xf32> -> vector<16x128xf32>
    %402 = vector.broadcast %168 : vector<1x128xf32> to vector<16x128xf32>
    %403 = arith.addf %401, %402 : vector<16x128xf32>
    %404 = arith.addf %399, %403 : vector<16x128xf32>
    %cst_127 = arith.constant dense<0.000000e+00> : vector<128xf32>
    %405 = vector.multi_reduction <add>, %404, %cst_127 [0] : vector<16x128xf32> to vector<128xf32>
    %406 = vector.shape_cast %405 : vector<128xf32> to vector<1x128xf32>
    %cst_128 = arith.constant 1.600000e+01 : f32
    %407 = vector.broadcast %cst_128 : f32 to vector<1x128xf32>
    %408 = arith.divf %406, %407 : vector<1x128xf32>
    %409 = vector.broadcast %408 : vector<1x128xf32> to vector<16x128xf32>
    %410 = arith.subf %404, %409 : vector<16x128xf32>
    %411 = arith.mulf %410, %410 : vector<16x128xf32>
    %cst_129 = arith.constant dense<0.000000e+00> : vector<128xf32>
    %412 = vector.multi_reduction <add>, %411, %cst_129 [0] : vector<16x128xf32> to vector<128xf32>
    %413 = vector.shape_cast %412 : vector<128xf32> to vector<1x128xf32>
    %cst_130 = arith.constant 1.600000e+01 : f32
    %414 = vector.broadcast %cst_130 : f32 to vector<1x128xf32>
    %415 = arith.divf %413, %414 : vector<1x128xf32>
    %416 = vector.broadcast %408 : vector<1x128xf32> to vector<16x128xf32>
    %417 = arith.subf %404, %416 : vector<16x128xf32>
    %cst_131 = arith.constant 9.99999974E-6 : f32
    %418 = vector.broadcast %cst_131 : f32 to vector<1x128xf32>
    %419 = arith.addf %415, %418 : vector<1x128xf32>
    %420 = math.rsqrt %419 : vector<1x128xf32>
    %421 = vector.broadcast %420 : vector<1x128xf32> to vector<16x128xf32>
    %422 = arith.mulf %417, %421 : vector<16x128xf32>
    %423 = arith.truncf %422 : vector<16x128xf32> to vector<16x128xbf16>
    %c0_132 = arith.constant 0 : index
    %c0_133 = arith.constant 0 : index
    %424 = vector.load %arg21[%c0_132, %c0_133] : memref<128x128xbf16, #tpu.memory_space<vmem>>, vector<128x128xbf16>
    %cst_134 = arith.constant dense<0.000000e+00> : vector<16x128xf32>
    %425 = tpu.matmul %423, %424, %cst_134 {dimension_numbers = #tpu.dot_dimension_numbers<[1], [0], [0], [1], [0, 0, 1, 1], [], []>} : vector<16x128xbf16>, vector<128x128xbf16>, vector<16x128xf32> -> vector<16x128xf32>
    %c0_135 = arith.constant 0 : index
    %c0_136 = arith.constant 0 : index
    %426 = vector.load %arg22[%c0_135, %c0_136] : memref<1x128xf32, #tpu.memory_space<vmem>>, vector<1x128xf32>
    %427 = vector.broadcast %426 : vector<1x128xf32> to vector<16x128xf32>
    %428 = arith.addf %425, %427 : vector<16x128xf32>
    %429 = vector.shape_cast %428 : vector<16x128xf32> to vector<2x8x128xf32>
    %cst_137 = arith.constant dense<0xFF800000> : vector<8x128xf32>
    %430 = vector.multi_reduction <maximumf>, %429, %cst_137 [0] : vector<2x8x128xf32> to vector<8x128xf32>
    %431 = vector.shape_cast %430 : vector<8x128xf32> to vector<1x8x128xf32>
    %432 = vector.broadcast %431 : vector<1x8x128xf32> to vector<2x8x128xf32>
    %433 = arith.subf %429, %432 : vector<2x8x128xf32>
    %434 = math.exp %433 : vector<2x8x128xf32>
    %cst_138 = arith.constant dense<0.000000e+00> : vector<8x128xf32>
    %435 = vector.multi_reduction <add>, %434, %cst_138 [0] : vector<2x8x128xf32> to vector<8x128xf32>
    %436 = vector.shape_cast %435 : vector<8x128xf32> to vector<1x8x128xf32>
    %437 = vector.broadcast %436 : vector<1x8x128xf32> to vector<2x8x128xf32>
    %438 = arith.divf %434, %437 : vector<2x8x128xf32>
    %439 = vector.shape_cast %438 : vector<2x8x128xf32> to vector<16x128xf32>
    %c0_139 = arith.constant 0 : index
    %c0_140 = arith.constant 0 : index
    %440 = vector.load %arg23[%c0_139, %c0_140] : memref<16x128xf32, #tpu.memory_space<vmem>>, vector<16x128xf32>
    tpu.vector_store %arg23[%c0_139, %c0_140], %439 {strides = array<i32>} : memref<16x128xf32, #tpu.memory_space<vmem>>, vector<16x128xf32>,
    return
  }
  func.func @transform_0(%arg0: i32) -> (i32, i32) {
    %c0_i32 = arith.constant 0 : i32
    %c0_i32_0 = arith.constant 0 : i32
    %c0_i32_1 = arith.constant 0 : i32
    return %c0_i32, %c0_i32_0 : i32, i32
  }
  func.func @transform_1(%arg0: i32) -> (i32, i32) {
    %c0_i32 = arith.constant 0 : i32
    %c0_i32_0 = arith.constant 0 : i32
    %c0_i32_1 = arith.constant 0 : i32
    return %c0_i32, %c0_i32_0 : i32, i32
  }
  func.func @transform_2(%arg0: i32) -> (i32, i32) {
    %c0_i32 = arith.constant 0 : i32
    %c0_i32_0 = arith.constant 0 : i32
    %c0_i32_1 = arith.constant 0 : i32
    return %c0_i32, %c0_i32_0 : i32, i32
  }
  func.func @transform_3(%arg0: i32) -> (i32, i32) {
    %c0_i32 = arith.constant 0 : i32
    %c0_i32_0 = arith.constant 0 : i32
    %c0_i32_1 = arith.constant 0 : i32
    return %c0_i32, %c0_i32_0 : i32, i32
  }
  func.func @transform_4(%arg0: i32) -> (i32, i32) {
    %c0_i32 = arith.constant 0 : i32
    %c0_i32_0 = arith.constant 0 : i32
    %c0_i32_1 = arith.constant 0 : i32
    return %c0_i32, %c0_i32_0 : i32, i32
  }
  func.func @transform_5(%arg0: i32) -> (i32, i32) {
    %c0_i32 = arith.constant 0 : i32
    %c0_i32_0 = arith.constant 0 : i32
    %c0_i32_1 = arith.constant 0 : i32
    return %c0_i32, %c0_i32_0 : i32, i32
  }
  func.func @transform_6(%arg0: i32) -> (i32, i32) {
    %c0_i32 = arith.constant 0 : i32
    %c0_i32_0 = arith.constant 0 : i32
    %c0_i32_1 = arith.constant 0 : i32
    return %c0_i32, %c0_i32_0 : i32, i32
  }
  func.func @transform_7(%arg0: i32) -> (i32, i32) {
    %c0_i32 = arith.constant 0 : i32
    %c0_i32_0 = arith.constant 0 : i32
    %c0_i32_1 = arith.constant 0 : i32
    return %c0_i32, %c0_i32_0 : i32, i32
  }
  func.func @transform_8(%arg0: i32) -> (i32, i32) {
    %c0_i32 = arith.constant 0 : i32
    %c0_i32_0 = arith.constant 0 : i32
    %c0_i32_1 = arith.constant 0 : i32
    return %c0_i32, %c0_i32_0 : i32, i32
  }
  func.func @transform_9(%arg0: i32) -> (i32, i32) {
    %c0_i32 = arith.constant 0 : i32
    %c0_i32_0 = arith.constant 0 : i32
    %c0_i32_1 = arith.constant 0 : i32
    return %c0_i32, %c0_i32_0 : i32, i32
  }
  func.func @transform_10(%arg0: i32) -> (i32, i32) {
    %c0_i32 = arith.constant 0 : i32
    %c0_i32_0 = arith.constant 0 : i32
    %c0_i32_1 = arith.constant 0 : i32
    return %c0_i32, %c0_i32_0 : i32, i32
  }
  func.func @transform_11(%arg0: i32) -> (i32, i32) {
    %c0_i32 = arith.constant 0 : i32
    %c0_i32_0 = arith.constant 0 : i32
    %c0_i32_1 = arith.constant 0 : i32
    return %c0_i32, %c0_i32_0 : i32, i32
  }
  func.func @transform_12(%arg0: i32) -> (i32, i32) {
    %c0_i32 = arith.constant 0 : i32
    %c0_i32_0 = arith.constant 0 : i32
    %c0_i32_1 = arith.constant 0 : i32
    return %c0_i32, %c0_i32_0 : i32, i32
  }
  func.func @transform_13(%arg0: i32) -> (i32, i32) {
    %c0_i32 = arith.constant 0 : i32
    %c0_i32_0 = arith.constant 0 : i32
    %c0_i32_1 = arith.constant 0 : i32
    return %c0_i32, %c0_i32_0 : i32, i32
  }
  func.func @transform_14(%arg0: i32) -> (i32, i32) {
    %c0_i32 = arith.constant 0 : i32
    %c0_i32_0 = arith.constant 0 : i32
    %c0_i32_1 = arith.constant 0 : i32
    return %c0_i32, %c0_i32_0 : i32, i32
  }
  func.func @transform_15(%arg0: i32) -> (i32, i32) {
    %c0_i32 = arith.constant 0 : i32
    %c0_i32_0 = arith.constant 0 : i32
    %c0_i32_1 = arith.constant 0 : i32
    return %c0_i32, %c0_i32_0 : i32, i32
  }
  func.func @transform_16(%arg0: i32) -> (i32, i32) {
    %c0_i32 = arith.constant 0 : i32
    %c0_i32_0 = arith.constant 0 : i32
    %c0_i32_1 = arith.constant 0 : i32
    return %c0_i32, %c0_i32_0 : i32, i32
  }
  func.func @transform_17(%arg0: i32) -> (i32, i32) {
    %c0_i32 = arith.constant 0 : i32
    %c0_i32_0 = arith.constant 0 : i32
    %c0_i32_1 = arith.constant 0 : i32
    return %c0_i32, %c0_i32_0 : i32, i32
  }
  func.func @transform_18(%arg0: i32) -> (i32, i32) {
    %c0_i32 = arith.constant 0 : i32
    %c0_i32_0 = arith.constant 0 : i32
    %c0_i32_1 = arith.constant 0 : i32
    return %c0_i32, %c0_i32_0 : i32, i32
  }
  func.func @transform_19(%arg0: i32) -> (i32, i32) {
    %c0_i32 = arith.constant 0 : i32
    %c0_i32_0 = arith.constant 0 : i32
    %c0_i32_1 = arith.constant 0 : i32
    return %c0_i32, %c0_i32_0 : i32, i32
  }
  func.func @transform_20(%arg0: i32) -> (i32, i32) {
    %c0_i32 = arith.constant 0 : i32
    %c0_i32_0 = arith.constant 0 : i32
    %c0_i32_1 = arith.constant 0 : i32
    return %c0_i32, %c0_i32_0 : i32, i32
  }
  func.func @transform_21(%arg0: i32) -> (i32, i32) {
    %c0_i32 = arith.constant 0 : i32
    %c0_i32_0 = arith.constant 0 : i32
    %c0_i32_1 = arith.constant 0 : i32
    return %c0_i32, %c0_i32_0 : i32, i32
  }
  func.func @transform_22(%arg0: i32) -> (i32, i32) {
    %c0_i32 = arith.constant 0 : i32
    %c0_i32_0 = arith.constant 0 : i32
    %c0_i32_1 = arith.constant 0 : i32
    return %c0_i32, %c0_i32_0 : i32, i32
  }
}

</mosaic_0001>

<bundles_post_ra>
// kernel: transformer_forward.1
= control target key start
LH: loop header
LB: loop body
LE: loop exit
PB: predicated region body
PF: predicated region fallthrough
CT: control target
= control target key end

     0   :  { %s4951_s0 = inlined_call_operand.vmem [shape: s32[16,1], index: 0, kind: input, shape index: {}]   ;;  %s4952_s1 = inlined_call_operand.vmem [shape: f32[16,128], index: 1, kind: input, shape index: {}]   ;;  %s4953_s2 = inlined_call_operand.hbm [shape: f32[64,128], index: 2, kind: input, shape index: {}]   ;;  %s4954_s3 = inlined_call_operand.hbm [shape: f32[64,128], index: 3, kind: input, shape index: {}]   ;;  %s4955_s4 = inlined_call_operand.hbm [shape: bf16[128,384], index: 4, kind: input, shape index: {}]   ;;  %s4956_s5 = inlined_call_operand.vmem [shape: f32[1,384], index: 5, kind: input, shape index: {}]   ;;  %s4957_s6 = inlined_call_operand.hbm [shape: bf16[128,128], index: 6, kind: input, shape index: {}]   ;;  %s4958_s7 = inlined_call_operand.vmem [shape: f32[1,128], index: 7, kind: input, shape index: {}]   ;;  %s4959_s8 = inlined_call_operand.hbm [shape: bf16[128,384], index: 8, kind: input, shape index: {}]   ;;  %s4960_s9 = inlined_call_operand.vmem [shape: f32[1,384], index: 9, kind: input, shape index: {}]   ;;  %s4961_s10 = inlined_call_operand.hbm [shape: bf16[128,128], index: 10, kind: input, shape index: {}]   ;;  %s4962_s11 = inlined_call_operand.vmem [shape: f32[1,128], index: 11, kind: input, shape index: {}]   ;;  %s4963_s12 = inlined_call_operand.hbm [shape: bf16[128,128], index: 12, kind: input, shape index: {}]   ;;  %s4964_s13 = inlined_call_operand.vmem [shape: f32[1,128], index: 13, kind: input, shape index: {}]   ;;  %s4965_s14 = inlined_call_operand.hbm [shape: bf16[128,128], index: 14, kind: input, shape index: {}]   ;;  %s4966_s15 = inlined_call_operand.vmem [shape: f32[1,128], index: 15, kind: input, shape index: {}]   ;;  %s4967_s16 = inlined_call_operand.hbm [shape: bf16[128,128], index: 16, kind: input, shape index: {}]   ;;  %s4968_s17 = inlined_call_operand.vmem [shape: f32[1,128], index: 17, kind: input, shape index: {}]   ;;  %s4969_s18 = inlined_call_operand.hbm [shape: bf16[128,128], index: 18, kind: input, shape index: {}]   ;;  %s4970_s19 = inlined_call_operand.vmem [shape: f32[1,128], index: 19, kind: input, shape index: {}]   ;;  %s4971_s20 = inlined_call_operand.hbm [shape: bf16[128,128], index: 20, kind: input, shape index: {}]   ;;  %s4972_s21 = inlined_call_operand.vmem [shape: f32[1,128], index: 21, kind: input, shape index: {}]   ;;  %s4973_s22 = inlined_call_operand.hbm [shape: f32[16,128], index: 22, kind: output, shape index: {}]  }
   0x1   :  { %5003 = sst [smem:[#allocation47_spill]] %s4951_s0 }
   0x2   :  { %5004 = sst [smem:[#allocation48_spill]] %s4952_s1 }
   0x3   :  { %5005 = sst [smem:[#allocation49_spill]] %s4953_s2 }
   0x4   :  { %5006 = sst [smem:[#allocation50_spill]] %s4954_s3 }
   0x5   :  { %5007 = sst [smem:[#allocation51_spill]] %s4955_s4 }
   0x6   :  { %5008 = sst [smem:[#allocation52_spill]] %s4956_s5 }
   0x7   :  { %5009 = sst [smem:[#allocation53_spill]] %s4957_s6 }
   0x8   :  { %27 = vsyncpa [#allocation3], 0 }
   0x9   :  { %28 = vsyncpa [#allocation6], 0 }
   0xa   :  { %29 = vsyncpa [#allocation9], 0 }
   0xb   :  { %30 = vsyncpa [#allocation12], 0 }
   0xc   :  { %31 = vsyncpa [#allocation15], 0 }
   0xd   :  { %32 = vsyncpa [#allocation18], 0 }
   0xe   :  { %33 = vsyncpa [#allocation4], 0  ;;  %s5010_s29 = sld [smem:[#allocation50_spill]]  ;;  %s3941_s4 = smov [#allocation5]  }
   0xf   :  { %s57_s0 = sshll.u32 %s3941_s4, 4  ;;  %s5011_s5 = sld [smem:[#allocation53_spill]]  ;;  %s58_s0 = int_to_ptr.vmem [resolvable:$true] %s57_s0 }
  0x10   :  { %s4975_s6 = smov 128   ;;  %s4979_s25 = smov 8  }
  0x11   :  { %s3944_s26 = smov [#allocation8]   ;;  %s4977_s27 = smov 64  }
  0x12   :  { %s85_s2 = sshll.u32 %s3944_s26, 4  ;;  %s3946_s3 = smov 4   ;;  %s86_s2 = int_to_ptr.vmem [resolvable:$true] %s85_s2 }
  0x13   :  { %s113_s4 = sshll.u32 %s4961_s10, 4  ;;  %s3947_s23 = smov [#allocation11]   ;;  %s114_s4 = int_to_ptr.hbm [resolvable:$true] %s113_s4 }
  0x14   :  { %s55_s30 = sshll.u32 %s5010_s29, 4  ;;  %s115_s1 = sshll.u32 %s3947_s23, 4  ;;  %s56_s30 = int_to_ptr.hbm [resolvable:$true] %s55_s30  ;;  %s116_s1 = int_to_ptr.vmem [resolvable:$true] %s115_s1 }
  0x15   :  { %s83_s24 = sshll.u32 %s5011_s5, 4  ;;  %s3948_s26 = smov [#allocation14]   ;;  %s84_s24 = int_to_ptr.hbm [resolvable:$true] %s83_s24 }
  0x16   :  { %63 = dma.hbm_to_vmem [thread:$0]  %s56_s30, 1024, %s58_s0, [#allocation6], %s4975_s6, %s4975_s6, %s4979_s25  }
  0x17   :  { %91 = dma.hbm_to_vmem [thread:$0]  %s84_s24, 1024, %s86_s2, [#allocation9], %s4977_s27, %s4977_s27, %s3946_s3  }
  0x18   :  { %s143_s0 = sshll.u32 %s4965_s14, 4  ;;  %s145_s6 = sshll.u32 %s3948_s26, 4  ;;  %s144_s0 = int_to_ptr.hbm [resolvable:$true] %s143_s0  ;;  %s146_s6 = int_to_ptr.vmem [resolvable:$true] %s145_s6 }
  0x19   :  { %121 = dma.hbm_to_vmem [thread:$0]  %s114_s4, 1024, %s116_s1, [#allocation12], %s4977_s27, %s4977_s27, %s3946_s3  }
  0x1a   :  { %s173_s28 = sshll.u32 %s4969_s18, 4  ;;  %s5012_s14 = sld [smem:[#allocation49_spill]]  ;;  %s174_s28 = int_to_ptr.hbm [resolvable:$true] %s173_s28 }
  0x1b   :  { %151 = dma.hbm_to_vmem [thread:$0]  %s144_s0, 1024, %s146_s6, [#allocation15], %s4977_s27, %s4977_s27, %s3946_s3  }
  0x1c   :  { %s3949_s5 = smov [#allocation17]   ;;  %s3950_s4 = smov [#allocation2]  }
  0x1d   :  { %s175_s30 = sshll.u32 %s3949_s5, 4  ;;  %s44_s18 = sshll.u32 %s3950_s4, 4  ;;  %s176_s30 = int_to_ptr.vmem [resolvable:$true] %s175_s30  ;;  %s45_s18 = int_to_ptr.vmem [resolvable:$true] %s44_s18 }
  0x1e   :  { %181 = dma.hbm_to_vmem [thread:$0]  %s174_s28, 1024, %s176_s30, [#allocation18], %s4977_s27, %s4977_s27, %s3946_s3  }
  0x1f   :  { %s5013_s24 = sld [smem:[#allocation51_spill]]  ;;  %s5014_s6 = smov 128  }
  0x20   :  { %s42_s23 = sshll.u32 %s5012_s14, 4  ;;  %s3951_s0 = smov [#allocation7]   ;;  %s43_s23 = int_to_ptr.hbm [resolvable:$true] %s42_s23 }
  0x21   :  { %50 = dma.hbm_to_vmem [thread:$0]  %s43_s23, 1024, %s45_s18, [#allocation3], %s5014_s6, %s5014_s6, %s4979_s25  }
  0x22   :  { %s70_s10 = sshll.u32 %s3951_s0, 4  ;;  %s98_s5 = sshll.u32 %s4959_s8, 4  ;;  %s71_s10 = int_to_ptr.vmem [resolvable:$true] %s70_s10  ;;  %s99_s5 = int_to_ptr.hbm [resolvable:$true] %s98_s5 }
  0x23   :  { %s3952_s28 = smov 192   ;;  %s3953_s30 = smov 12  }
  0x24   :  { %s3954_s4 = smov [#allocation10]   ;;  %s128_s27 = sshll.u32 %s4963_s12, 4  ;;  %s129_s27 = int_to_ptr.hbm [resolvable:$true] %s128_s27 }
  0x25   :  { %s68_s2 = sshll.u32 %s5013_s24, 4  ;;  %s100_s1 = sshll.u32 %s3954_s4, 4  ;;  %s69_s2 = int_to_ptr.hbm [resolvable:$true] %s68_s2  ;;  %s101_s1 = int_to_ptr.vmem [resolvable:$true] %s100_s1 }
  0x26   :  { %76 = dma.hbm_to_vmem [thread:$0]  %s69_s2, 3072, %s71_s10, [#allocation6], %s3952_s28, %s3952_s28, %s3953_s30  }
  0x27   :  { %106 = dma.hbm_to_vmem [thread:$0]  %s99_s5, 3072, %s101_s1, [#allocation9], %s3952_s28, %s3952_s28, %s3953_s30  }
  0x28   :  { %s158_s0 = sshll.u32 %s4967_s16, 4  ;;  %s3955_s25 = smov [#allocation13]   ;;  %s159_s0 = int_to_ptr.hbm [resolvable:$true] %s158_s0 }
  0x29   :  { %s130_s29 = sshll.u32 %s3955_s25, 4  ;;  %s5015_s8 = smov 64   ;;  %s131_s29 = int_to_ptr.vmem [resolvable:$true] %s130_s29 }
  0x2a   :  { %136 = dma.hbm_to_vmem [thread:$0]  %s129_s27, 1024, %s131_s29, [#allocation12], %s5015_s8, %s5015_s8, %s3946_s3  }
  0x2b   :  { %s3956_s2 = smov [#allocation16]   ;;  %s188_s12 = sshll.u32 %s4971_s20, 4  ;;  %s189_s12 = int_to_ptr.hbm [resolvable:$true] %s188_s12 }
  0x2c   :  { %s160_s10 = sshll.u32 %s3956_s2, 4  ;;  %s3957_s16 = smov [#allocation19]   ;;  %s161_s10 = int_to_ptr.vmem [resolvable:$true] %s160_s10 }
  0x2d   :  { %166 = dma.hbm_to_vmem [thread:$0]  %s159_s0, 1024, %s161_s10, [#allocation15], %s5015_s8, %s5015_s8, %s3946_s3  }
  0x2e   :  { %s190_s25 = sshll.u32 %s3957_s16, 4  ;;  %s191_s25 = int_to_ptr.vmem [resolvable:$true] %s190_s25 }
  0x2f   :  { %196 = dma.hbm_to_vmem [thread:$0]  %s189_s12, 1024, %s191_s25, [#allocation18], %s5015_s8, %s5015_s8, %s3946_s3  }
  0x30   :  { %3927 = dma.done.wait [#allocation3], 1024  }
  0x31   :  { %3928 = vsyncadd [#allocation3], 4294966272 }
  0x32   :  { %3929 = dma.done.wait [#allocation6], 4096  }
  0x33   :  { %3930 = vsyncadd [#allocation6], 4294963200 }
  0x34   :  { %3931 = dma.done.wait [#allocation9], 4096  }
  0x35   :  { %3932 = vsyncadd [#allocation9], 4294963200 }
  0x36   :  { %3933 = dma.done.wait [#allocation12], 2048  }
  0x37   :  { %3934 = vsyncadd [#allocation12], 4294965248 }
  0x38   :  { %3935 = dma.done.wait [#allocation15], 2048  }
  0x39   :  { %3936 = vsyncadd [#allocation15], 4294965248 }
  0x3a   :  { %3937 = dma.done.wait [#allocation18], 2048  }
  0x3b   :  { %3938 = vsyncadd [#allocation18], 4294965248  ;;  %v3958_v0 = vmov 0   ;;  %s5016_s5 = sld [smem:[#allocation47_spill]]  ;;  %v267_v2 = vld [vmem:[#allocation2 + $0x38] sm:$0xff]  ;;  %v266_v4 = vld [vmem:[#allocation2 + $0x30] sm:$0xff]  ;;  %v244_v55 = vlaneseq }
  0x3c   :  { %3515 = vset.pattern.permute.xlu0 %v3958_v0  ;;  %283 = vmatpush.msra.mxu0 %v267_v2  ;;  %v305_v3 = vld [vmem:[#allocation5 + $0x38] sm:$0xff]  ;;  %v304_v5 = vld [vmem:[#allocation5 + $0x30] sm:$0xff]  ;;  %v265_v6 = vld [vmem:[#allocation2 + $0x28] sm:$0xff]  ;;  %vm268_vm0 = vcmask 523264   ;;  %v3959_v58 = vmov 0.0   ;;  %s5017_s26 = sld [smem:[#allocation48_spill]] }
  0x3d   :  { %314 = vmatpush.msra.mxu1 %v305_v3  ;;  %v303_v7 = vld [vmem:[#allocation5 + $0x28] sm:$0xff]  ;;  %v264_v9 = vld [vmem:[#allocation2 + $0x20] sm:$0xff]  ;;  %v263_v11 = vld [vmem:[#allocation2 + $0x18] sm:$0xff]  ;;  %v245_v56 = vand.u32 127, %v244_v55  ;;  %s5018_s18 = sld [smem:[#allocation52_spill]]  ;;  %vm621_vm3 = vcmask 1043456  }
  0x3e   :  { %284 = vmatpush.msra.mxu0 %v266_v4  ;;  %v302_v10 = vld [vmem:[#allocation5 + $0x20] sm:$0xff]  ;;  %v301_v12 = vld [vmem:[#allocation5 + $0x18] sm:$0xff]  ;;  %v262_v13 = vld [vmem:[#allocation2 + $0x10] sm:$0xff]  ;;  %vm598_vm4 = vcmask 64512   ;;  %s5057_s3 = smov 8  }
  0x3f   :  { %315 = vmatpush.msra.mxu1 %v304_v5  ;;  %v300_v14 = vld [vmem:[#allocation5 + $0x10] sm:$0xff]  ;;  %v261_v15 = vld [vmem:[#allocation2 + $0x8] sm:$0xff]  ;;  %v260_v17 = vld [vmem:[#allocation2] sm:$0xff] }
  0x40   :  { %285 = vmatpush.msra.mxu0 %v265_v6  ;;  %v299_v16 = vld [vmem:[#allocation5 + $0x8] sm:$0xff]  ;;  %v298_v18 = vld [vmem:[#allocation5] sm:$0xff]  ;;  %v3412_v20 = vld [vmem:[#allocation7 + $0xb0] sm:$0xf0] }
  0x41   :  { %v246_v1 = vld [vmem:[%s5016_s5] sm:$0xff]  ;;  %v247_v8 = vld [vmem:[%s5016_s5 + $0x8] sm:$0xff]  ;;  %316 = vmatpush.msra.mxu1 %v303_v7  ;;  %v3054_v23 = vld [vmem:[#allocation7 + $0xb4] sm:$0xf0]  ;;  %s2942_s5 = sshll.u32 %s4973_s22, 4  ;;  %s2943_s5 = int_to_ptr.hbm [resolvable:$true] %s2942_s5 }
  0x42   :  { %249 = vperm.xlu0 %3515, %v246_v1   ;;  %286 = vmatpush.msra.mxu0 %v264_v9  ;;  %v3052_v19 = vld [vmem:[#allocation7 + $0xa8] sm:$0xf]  ;;  %v3411_v21 = vld [vmem:[#allocation7 + $0xac] sm:$0xf]  ;;  %v3060_v24 = vld [vmem:[#allocation7 + $0xb0] sm:$0xf] }
  0x43   :  { %317 = vmatpush.msra.mxu1 %v302_v10  ;;  %v4143_v22 = vor.u32 %v3412_v20, %v3052_v19  ;;  %v3413_v25 = vld [vmem:[#allocation7 + $0xb8] sm:$0xf0]  ;;  %v4145_v26 = vor.u32 %v3411_v21, %v3054_v23  ;;  %v3040_v28 = vld [vmem:[#allocation7 + $0x90] sm:$0xf]  ;;  %v3408_v30 = vld [vmem:[#allocation7 + $0x94] sm:$0xf] }
  0x44   :  { %287 = vmatpush.msra.mxu0 %v263_v11  ;;  %v4147_v27 = vor.u32 %v3413_v25, %v3060_v24  ;;  %v3409_v29 = vld [vmem:[#allocation7 + $0x98] sm:$0xf0]  ;;  %v3042_v32 = vld [vmem:[#allocation7 + $0x9c] sm:$0xf0]  ;;  %v3048_v33 = vld [vmem:[#allocation7 + $0x98] sm:$0xf] }
  0x45   :  { %318 = vmatpush.msra.mxu1 %v301_v12  ;;  %520 = vmatpush.bf16.msra.mxu2 %v4143_v22  ;;  %v4150_v31 = vor.u32 %v3409_v29, %v3040_v28  ;;  %v3410_v34 = vld [vmem:[#allocation7 + $0xa0] sm:$0xf0]  ;;  %v4154_v35 = vor.u32 %v3408_v30, %v3042_v32  ;;  %v3028_v37 = vld [vmem:[#allocation7 + $0x78] sm:$0xf]  ;;  %v3405_v39 = vld [vmem:[#allocation7 + $0x7c] sm:$0xf] }
  0x46   :  { %288 = vmatpush.msra.mxu0 %v262_v13  ;;  %534 = vmatpush.bf16.msra.mxu3 %v4145_v26  ;;  %v4156_v36 = vor.u32 %v3410_v34, %v3048_v33  ;;  %v3406_v38 = vld [vmem:[#allocation7 + $0x80] sm:$0xf0]  ;;  %v3030_v40 = vld [vmem:[#allocation7 + $0x84] sm:$0xf0]  ;;  %v3036_v41 = vld [vmem:[#allocation7 + $0x80] sm:$0xf] }
  0x47   :  { %319 = vmatpush.msra.mxu1 %v300_v14  ;;  %v3407_v42 = vld [vmem:[#allocation7 + $0x88] sm:$0xf0]  ;;  %v4159_v43 = vor.u32 %v3406_v38, %v3028_v37  ;;  %v4163_v44 = vor.u32 %v3405_v39, %v3030_v40  ;;  %v3016_v46 = vld [vmem:[#allocation7 + $0x60] sm:$0xf]  ;;  %v3402_v48 = vld [vmem:[#allocation7 + $0x64] sm:$0xf] }
  0x48   :  { %289 = vmatpush.msra.mxu0 %v261_v15  ;;  %v4165_v45 = vor.u32 %v3407_v42, %v3036_v41  ;;  %v3403_v47 = vld [vmem:[#allocation7 + $0x68] sm:$0xf0]  ;;  %v3018_v49 = vld [vmem:[#allocation7 + $0x6c] sm:$0xf0]  ;;  %v3024_v50 = vld [vmem:[#allocation7 + $0x68] sm:$0xf] }
  0x49   :  { %320 = vmatpush.msra.mxu1 %v299_v16  ;;  %521 = vmatpush.bf16.msra.mxu2 %v4150_v31  ;;  %v3404_v51 = vld [vmem:[#allocation7 + $0x70] sm:$0xf0]  ;;  %v4168_v52 = vor.u32 %v3403_v47, %v3016_v46  ;;  %v4172_v53 = vor.u32 %v3402_v48, %v3018_v49  ;;  %v3004_v62 = vld [vmem:[#allocation7 + $0x48] sm:$0xf]  ;;  %v3399_v0 = vld [vmem:[#allocation7 + $0x4c] sm:$0xf] }
  0x4a   :  { %252 = vperm.xlu0 %3515, %v247_v8   ;;  %290 = vmatpush.msra.mxu0 %v260_v17  ;;  %v4174_v54 = vor.u32 %v3404_v51, %v3024_v50  ;;  %v3400_v63 = vld [vmem:[#allocation7 + $0x50] sm:$0xf0]  ;;  %v3006_v2 = vld [vmem:[#allocation7 + $0x54] sm:$0xf0]  ;;  %v3012_v3 = vld [vmem:[#allocation7 + $0x50] sm:$0xf] }
  0x4b   :  { %321 = vmatpush.msra.mxu1 %v298_v18  ;;  %535 = vmatpush.bf16.msra.mxu3 %v4154_v35  ;;  %v4179_v1 = vor.u32 %v3400_v63, %v3004_v62  ;;  %v3401_v4 = vld [vmem:[#allocation7 + $0x58] sm:$0xf0]  ;;  %v4181_v5 = vor.u32 %v3399_v0, %v3006_v2  ;;  %v2992_v7 = vld [vmem:[#allocation7 + $0x30] sm:$0xf]  ;;  %v3396_v9 = vld [vmem:[#allocation7 + $0x34] sm:$0xf] }
  0x4c   :  { %548 = vmatpush.bf16.msrb.mxu0 %v4147_v27  ;;  %v4183_v6 = vor.u32 %v3401_v4, %v3012_v3  ;;  %v3397_v8 = vld [vmem:[#allocation7 + $0x38] sm:$0xf0]  ;;  %v2994_v11 = vld [vmem:[#allocation7 + $0x3c] sm:$0xf0]  ;;  %v3000_v12 = vld [vmem:[#allocation7 + $0x38] sm:$0xf] }
  0x4d   :  { %522 = vmatpush.bf16.msra.mxu2 %v4159_v43  ;;  %v4188_v10 = vor.u32 %v3397_v8, %v2992_v7  ;;  %v3398_v13 = vld [vmem:[#allocation7 + $0x40] sm:$0xf0]  ;;  %v4190_v14 = vor.u32 %v3396_v9, %v2994_v11  ;;  %v2980_v16 = vld [vmem:[#allocation7 + $0x18] sm:$0xf]  ;;  %v3393_v18 = vld [vmem:[#allocation7 + $0x1c] sm:$0xf] }
  0x4e   :  { %v4192_v15 = vor.u32 %v3398_v13, %v3000_v12  ;;  %v3394_v17 = vld [vmem:[#allocation7 + $0x20] sm:$0xf0]  ;;  %v2982_v20 = vld [vmem:[#allocation7 + $0x24] sm:$0xf0]  ;;  %v2988_v21 = vld [vmem:[#allocation7 + $0x20] sm:$0xf] }
  0x4f   :  { %536 = vmatpush.bf16.msra.mxu3 %v4163_v44  ;;  %v4197_v19 = vor.u32 %v3394_v17, %v2980_v16  ;;  %v3395_v23 = vld [vmem:[#allocation7 + $0x28] sm:$0xf0]  ;;  %v4199_v24 = vor.u32 %v3393_v18, %v2982_v20  ;;  %v2968_v28 = vld [vmem:[#allocation7] sm:$0xf]  ;;  %v3390_v30 = vld [vmem:[#allocation7 + $0x4] sm:$0xf] }
  0x50   :  { %549 = vmatpush.bf16.msrb.mxu0 %v4156_v36  ;;  %v4201_v25 = vor.u32 %v3395_v23, %v2988_v21  ;;  %v3391_v29 = vld [vmem:[#allocation7 + $0x8] sm:$0xf0]  ;;  %v2970_v33 = vld [vmem:[#allocation7 + $0xc] sm:$0xf0]  ;;  %v2976_v34 = vld [vmem:[#allocation7 + $0x8] sm:$0xf] }
  0x51   :  { %523 = vmatpush.bf16.msra.mxu2 %v4168_v52  ;;  %v4206_v32 = vor.u32 %v3391_v29, %v2968_v28  ;;  %v3392_v37 = vld [vmem:[#allocation7 + $0x10] sm:$0xf0]  ;;  %v4208_v38 = vor.u32 %v3390_v30, %v2970_v33  ;;  %v4218_v41 = vld [vmem:[%s5017_s26] sm:$0xff] }
  0x52   :  { %v4210_v39 = vor.u32 %v3392_v37, %v2976_v34 }
  0x53   :  { %537 = vmatpush.bf16.msra.mxu3 %v4172_v53 }
  0x54   :  { %550 = vmatpush.bf16.msrb.mxu0 %v4165_v45 }
  0x55   :  { %524 = vmatpush.bf16.msra.mxu2 %v4179_v1 }
  0x57   :  { %538 = vmatpush.bf16.msra.mxu3 %v4181_v5 }
  0x58   :  { %551 = vmatpush.bf16.msrb.mxu0 %v4174_v54 }
  0x59   :  { %525 = vmatpush.bf16.msra.mxu2 %v4188_v10 }
  0x5b   :  { %539 = vmatpush.bf16.msra.mxu3 %v4190_v14 }
  0x5c   :  { %552 = vmatpush.bf16.msrb.mxu0 %v4183_v6 }
  0x5d   :  { %526 = vmatpush.bf16.msra.mxu2 %v4197_v19 }
  0x5f   :  { %540 = vmatpush.bf16.msra.mxu3 %v4199_v24 }
  0x60   :  { %553 = vmatpush.bf16.msrb.mxu0 %v4192_v15 }
  0x61   :  { %527 = vmatpush.bf16.msra.mxu2 %v4206_v32 }
  0x63   :  { %541 = vmatpush.bf16.msra.mxu3 %v4208_v38 }
  0x64   :  { %554 = vmatpush.bf16.msrb.mxu0 %v4201_v25 }
  0x68   :  { %555 = vmatpush.bf16.msrb.mxu0 %v4210_v39 }
  0xb4   :  { %v250_v57 = vpop.permute.xlu0 %249 }
  0xb5   :  { %vm254_vm1 = vcmp.eq.s32.totalorder %v245_v56, %v250_v57  ;;  %v362_v57 = vld [vmem:[%s5018_s18] sm:$0x7] }
  0xb6   :  { %v2960_v59 = vsel %vm254_vm1, 1.0, %v3959_v58  ;;  %v4239_v0 = vperm.slane %v362_v57, 0 }
  0xb7   :  { %2962 = vmatmul.msk.f32.vlgmr.msra.gmra.mxu0 %vm268_vm0, %v2960_v59  ;;  %2964 = vmatmul.msk.f32.vlgmr.msra.gmra.mxu1 %vm268_vm0, %v2960_v59 }
  0xbc   :  { %v253_v60 = vpop.permute.xlu0 %252 }
  0xbd   :  { %vm255_vm2 = vcmp.eq.s32.totalorder %v245_v56, %v253_v60 }
  0xbe   :  { %v2961_v61 = vsel %vm255_vm2, 1.0, %v3959_v58  ;;  %v4234_v58 = vperm.slane %v362_v57, 2 }
  0xbf   :  { %2963 = vmatmul.msk.f32.gmra.mxu0 %vm268_vm0, %v2961_v61  ;;  %2965 = vmatmul.msk.f32.gmra.mxu1 %vm268_vm0, %v2961_v61  ;;  %v4237_v61 = vperm.slane %v362_v57, 1 }
 0x134   :  { %v292_v40 = vpop.f32.mrf.mxu0  ;;  %v323_v42 = vpop.f32.mrf.mxu1 }
 0x135   :  { %v1270_v46 = vmul.f32 2.0, %v323_v42  ;;  %v380_v48 = vmul.f32 2.0, %v292_v40 }
 0x137   :  { %v4221_v47 = vadd.f32 %v1270_v46, %v4218_v41  ;;  %v4224_v51 = vadd.f32 %v380_v48, %v4218_v41  ;;  %v4280_v46 = vld [vmem:[#allocation8 + $0x38] sm:$0xff] }
 0x138   :  { %751 = vmatpush.bf16.msra.mxu0 %v4280_v46 }
 0x13c   :  { %v295_v49 = vpop.f32.mrf.mxu0 }
 0x13d   :  { %v381_v50 = vmul.f32 2.0, %v295_v49 }
 0x13f   :  { %v4227_v55 = vadd.f32 %v381_v50, %v4218_v41 }
 0x141   :  { %v384_v56 = vpack.c.bf16 %v4227_v55, %v4224_v51 }
 0x143   :  { %528 = vmatmul.bf16.vlgmr.msra.gmra.mxu2 %v384_v56  ;;  %542 = vmatmul.bf16.vlgmr.msra.gmra.mxu3 %v384_v56 }
 0x144   :  { %556 = vmatmul.bf16.vlgmr.msrb.gmra.mxu0 %v384_v56 }
 0x1c1   :  { %v557_v59 = vpop.f32.mrf.mxu0 }
 0x1c2   :  { %v558_v60 = vadd.f32 %v557_v59, %v4234_v58  ;;  %v4285_v59 = vld [vmem:[#allocation8 + $0x30] sm:$0xff] }
 0x1c3   :  { %752 = vmatpush.bf16.msra.mxu0 %v4285_v59 }
 0x1c4   :  { %v564_v62 = vmax.f32 %v558_v60, 0.0 }
 0x1c6   :  { %v616_v63 = vpack.c.bf16 %v564_v62, %v564_v62  ;;  %v543_v2 = vpop.f32.mrf.mxu3  ;;  %v529_v3 = vpop.f32.mrf.mxu2 }
 0x1c7   :  { %v544_v4 = vadd.f32 %v543_v2, %v4237_v61  ;;  %v530_v11 = vadd.f32 %v529_v3, %v4239_v0  ;;  %v4288_v2 = vld [vmem:[#allocation8 + $0x28] sm:$0xff] }
 0x1c8   :  { %v623_v7 = vsel %vm621_vm3, %v616_v63, 0  ;;  %753 = vmatpush.bf16.msra.mxu0 %v4288_v2 }
 0x1c9   :  { %v563_v8 = vmax.f32 %v544_v4, 0.0  ;;  %v559_v9 = vpop.f32.mrf.mxu0  ;;  %632 = vmatpush.bf16.msrb.mxu2 %v623_v7  ;;  %v562_v17 = vmax.f32 %v530_v11, 0.0 }
 0x1ca   :  { %v560_v12 = vadd.f32 %v559_v9, %v4234_v58 }
 0x1cb   :  { %v570_v13 = vpack.c.bf16 %v563_v8, %v563_v8  ;;  %v568_v29 = vpack.c.bf16 %v562_v17, %v562_v17 }
 0x1cc   :  { %v567_v16 = vmax.f32 %v560_v12, 0.0 }
 0x1cd   :  { %815 = vmatpush.bf16.msra.mxu2 %v4145_v26  ;;  %579 = vmatpush.bf16.xpose.msrb.mxu1 %v570_v13  ;;  %v4296_v13 = vld [vmem:[#allocation8 + $0x18] sm:$0xff] }
 0x1ce   :  { %v617_v18 = vpack.c.bf16 %v567_v16, %v567_v16  ;;  %v545_v20 = vpop.f32.mrf.mxu3  ;;  %v531_v30 = vpop.f32.mrf.mxu2 }
 0x1cf   :  { %v546_v21 = vadd.f32 %v545_v20, %v4237_v61 }
 0x1d0   :  { %v642_v23 = vsel %vm621_vm3, %v617_v18, 0  ;;  %v4300_v18 = vld [vmem:[#allocation8 + $0x10] sm:$0xff] }
 0x1d1   :  { %816 = vmatpush.bf16.msra.mxu2 %v4154_v35  ;;  %v566_v28 = vmax.f32 %v546_v21, 0.0  ;;  %651 = vmatpush.bf16.msrb.mxu3 %v642_v23  ;;  %v532_v35 = vadd.f32 %v531_v30, %v4239_v0 }
 0x1d3   :  { %v571_v26 = vpack.c.bf16 %v566_v28, %v566_v28 }
 0x1d4   :  { %580 = vmatmul.bf16.vlgmr.msrb.gmra.mxu1 %v568_v29  ;;  %v4303_v29 = vld [vmem:[#allocation8 + $0x8] sm:$0xff] }
 0x1d5   :  { %829 = vmatpush.bf16.msra.mxu3 %v4147_v27  ;;  %817 = vmatpush.bf16.msra.mxu2 %v4163_v44  ;;  %v565_v27 = vmax.f32 %v532_v35, 0.0  ;;  %v4306_v35 = vld [vmem:[#allocation8] sm:$0xff] }
 0x1d6   :  { %592 = vmatpush.bf16.xpose.msra.mxu1 %v571_v26 }
 0x1d9   :  { %830 = vmatpush.bf16.msra.mxu3 %v4156_v36  ;;  %818 = vmatpush.bf16.msra.mxu2 %v4172_v53 }
 0x1dd   :  { %831 = vmatpush.bf16.msra.mxu3 %v4165_v45  ;;  %819 = vmatpush.bf16.msra.mxu2 %v4181_v5 }
 0x1de   :  { %801 = vmatpush.bf16.msrb.mxu1 %v4143_v22  ;;  %v569_v22 = vpack.c.bf16 %v565_v27, %v565_v27 }
 0x1e1   :  { %832 = vmatpush.bf16.msra.mxu3 %v4174_v54  ;;  %820 = vmatpush.bf16.msra.mxu2 %v4190_v14 }
 0x1e2   :  { %802 = vmatpush.bf16.msrb.mxu1 %v4150_v31  ;;  %v4272_v31 = vpop.f32.mrf.mxu1 }
 0x1e4   :  { %593 = vmatmul.bf16.vlgmr.msra.gmra.mxu1 %v569_v22 }
 0x1e5   :  { %833 = vmatpush.bf16.msra.mxu3 %v4183_v6  ;;  %821 = vmatpush.bf16.msra.mxu2 %v4199_v24 }
 0x1e6   :  { %803 = vmatpush.bf16.msrb.mxu1 %v4159_v43 }
 0x1e9   :  { %834 = vmatpush.bf16.msra.mxu3 %v4192_v15  ;;  %822 = vmatpush.bf16.msra.mxu2 %v4208_v38 }
 0x1ea   :  { %804 = vmatpush.bf16.msrb.mxu1 %v4168_v52 }
 0x1ed   :  { %835 = vmatpush.bf16.msra.mxu3 %v4201_v25 }
 0x1ee   :  { %805 = vmatpush.bf16.msrb.mxu1 %v4179_v1 }
 0x1f1   :  { %836 = vmatpush.bf16.msra.mxu3 %v4210_v39  ;;  %v3960_v39 = vmov 16.0  }
 0x1f2   :  { %806 = vmatpush.bf16.msrb.mxu1 %v4188_v10 }
 0x1f6   :  { %807 = vmatpush.bf16.msrb.mxu1 %v4197_v19 }
 0x1fa   :  { %808 = vmatpush.bf16.msrb.mxu1 %v4206_v32 }
 0x251   :  { %v581_v36 = vpop.f32.mrf.mxu1 }
 0x252   :  { %v599_v45 = vsel %vm598_vm4, %v581_v36, -inf }
 0x259   :  { %v583_v43 = vpop.f32.mrf.mxu1 }
 0x261   :  { %v594_v44 = vpop.f32.mrf.mxu1 }
 0x262   :  { %v600_v52 = vsel %vm598_vm4, %v594_v44, -inf }
 0x263   :  { %v601_v53 = vmax.f32 %v599_v45, %v600_v52 }
 0x265   :  { %v602_v54 = vsub.f32 %v581_v36, %v601_v53  ;;  %v603_v1 = vsub.f32 %v594_v44, %v601_v53 }
 0x267   :  { %v604_v5 = vmul.f32 1.442695, %v602_v54  ;;  %v606_v6 = vmul.f32 1.442695, %v603_v1 }
 0x269   :  { %3523 = vpow2.f32 %v604_v5  ;;  %v596_v10 = vpop.f32.mrf.mxu1 }
 0x26a   :  { %3525 = vpow2.f32 %v606_v6 }
 0x26f   :  { %v3524_v14 = vpop.eup %3523 }
 0x270   :  { %v3526_v15 = vpop.eup %3525  ;;  %v608_v19 = vsel %vm598_vm4, %v3524_v14, 0.0 }
 0x271   :  { %v609_v24 = vsel %vm598_vm4, %v3526_v15, 0.0 }
 0x272   :  { %v610_v25 = vadd.f32 %v609_v24, %v608_v19 }
 0x274   :  { %3527 = vrcp.f32 %v610_v25 }
 0x275   :  { %3529 = vrcp.f32 %v3960_v39 }
 0x27a   :  { %v3528_v32 = vpop.eup %3527 }
 0x27b   :  { %v612_v33 = vmul.f32 %v3528_v32, %v3524_v14  ;;  %v613_v34 = vmul.f32 %v3528_v32, %v3526_v15  ;;  %v3530_v40 = vpop.eup %3529  ;;  %v4313_v32 = vld [vmem:[%s4958_s7] ss:$0 sm:$0xff] }
 0x27c   :  { %v667_v42 = vmul.f32 16.0, %v3530_v40  ;;  %vm671_vm5 = vweird.f32 %v3530_v40 }
 0x27d   :  { %v614_v37 = vpack.c.bf16 %v612_v33, %v612_v33  ;;  %v615_v38 = vpack.c.bf16 %v613_v34, %v613_v34 }
 0x27e   :  { %v668_v57 = vsub.f32 1.0, %v667_v42 }
 0x27f   :  { %3062 = vmatmul.msk.bf16.vlgmr.msrb.gmra.mxu2 %vm598_vm4, %v614_v37  ;;  %3063 = vmatmul.msk.bf16.vlgmr.msrb.gmra.mxu3 %vm598_vm4, %v615_v38 }
 0x280   :  { %v669_v63 = vmul.f32 %v3530_v40, %v668_v57 }
 0x282   :  { %v670_v9 = vadd.f32 %v3530_v40, %v669_v63 }
 0x284   :  { %v4294_v12 = vsel %vm671_vm5, %v3530_v40, %v670_v9 }
 0x285   :  { %5019 = vst [vmem:[#allocation28_spill] sm:$0xff] %v4294_v12 }
 0x302   :  { %v634_v48 = vpop.f32.mrf.mxu2  ;;  %v653_v49 = vpop.f32.mrf.mxu3 }
 0x303   :  { %v657_v50 = vadd.f32 %v634_v48, %v4224_v51  ;;  %v658_v56 = vadd.f32 %v653_v49, %v4227_v55  ;;  %v4291_v51 = vld [vmem:[#allocation8 + $0x20] sm:$0xff] }
 0x304   :  { %754 = vmatpush.bf16.msra.mxu0 %v4291_v51 }
 0x305   :  { %v659_v60 = vadd.f32 %v658_v56, %v657_v50 }
 0x307   :  { %v660_v62 = vrot.slane %v659_v60, 4 }
 0x308   :  { %755 = vmatpush.bf16.msra.mxu0 %v4296_v13 }
 0x309   :  { %v661_v3 = vadd.f32 %v660_v62, %v659_v60 }
 0x30a   :  { %v636_v4 = vpop.f32.mrf.mxu2  ;;  %v655_v7 = vpop.f32.mrf.mxu3 }
 0x30b   :  { %v662_v8 = vrot.slane %v661_v3, 2 }
 0x30c   :  { %756 = vmatpush.bf16.msra.mxu0 %v4300_v18 }
 0x30d   :  { %v663_v55 = vadd.f32 %v662_v8, %v661_v3 }
 0x30f   :  { %v664_v11 = vrot.slane %v663_v55, 1 }
 0x310   :  { %757 = vmatpush.bf16.msra.mxu0 %v4303_v29 }
 0x311   :  { %v665_v16 = vadd.f32 %v664_v11, %v663_v55 }
 0x313   :  { %v673_v17 = vmul.f32 %v4294_v12, %v665_v16 }
 0x314   :  { %758 = vmatpush.bf16.msra.mxu0 %v4306_v35 }
 0x315   :  { %v674_v20 = vsub.f32 %v657_v50, %v673_v17  ;;  %v675_v21 = vsub.f32 %v658_v56, %v673_v17 }
 0x317   :  { %v676_v23 = vmul.f32 %v674_v20, %v674_v20  ;;  %v677_v28 = vmul.f32 %v675_v21, %v675_v21 }
 0x319   :  { %v678_v26 = vadd.f32 %v677_v28, %v676_v23 }
 0x31b   :  { %v679_v30 = vrot.slane %v678_v26, 4 }
 0x31d   :  { %v680_v27 = vadd.f32 %v679_v30, %v678_v26 }
 0x31f   :  { %v681_v22 = vrot.slane %v680_v27, 2 }
 0x321   :  { %v682_v36 = vadd.f32 %v681_v22, %v680_v27 }
 0x323   :  { %v683_v43 = vrot.slane %v682_v36, 1 }
 0x325   :  { %v684_v44 = vadd.f32 %v683_v43, %v682_v36 }
 0x327   :  { %v685_v45 = vmul.f32 %v684_v44, %v4294_v12 }
 0x329   :  { %v686_v52 = vadd.f32 1e-05, %v685_v45 }
 0x32b   :  { %3531 = vrsqrt.f32 %v686_v52  ;;  %vm693_vm7 = vweird.f32 %v686_v52 }
 0x331   :  { %v3532_v53 = vpop.eup %3531 }
 0x332   :  { %v688_v54 = vmul.f32 %v3532_v53, %v686_v52  ;;  %vm694_vm6 = vweird.f32 %v3532_v53 }
 0x333   :  { %vm695_vm8 = vmor %vm693_vm7, %vm694_vm6  ;;  %vm2145_vm7 = vcmask 1041409  }
 0x334   :  { %v689_v1 = vmul.f32 %v3532_v53, %v688_v54 }
 0x336   :  { %v690_v5 = vmul.f32 0.5, %v689_v1 }
 0x338   :  { %v691_v6 = vsub.f32 1.5, %v690_v5 }
 0x33a   :  { %v692_v10 = vmul.f32 %v3532_v53, %v691_v6 }
 0x33c   :  { %v696_v14 = vsel %vm695_vm8, %v3532_v53, %v692_v10  ;;  %vm2147_vm8 = vcmask 1042434  }
 0x33d   :  { %v697_v15 = vmul.f32 %v696_v14, %v674_v20  ;;  %v698_v19 = vmul.f32 %v696_v14, %v675_v21 }
 0x33f   :  { %v699_v24 = vpack.c.bf16 %v698_v19, %v697_v15 }
 0x341   :  { %759 = vmatmul.bf16.vlgmr.msra.gmra.mxu0 %v699_v24 }
 0x3be   :  { %v760_v25 = vpop.f32.mrf.mxu0 }
 0x3bf   :  { %v761_v33 = vadd.f32 %v4313_v32, %v760_v25 }
 0x3c1   :  { %v765_v38 = vadd.f32 %v761_v33, %v697_v15 }
 0x3c6   :  { %v762_v34 = vpop.f32.mrf.mxu0 }
 0x3c7   :  { %v763_v37 = vadd.f32 %v4313_v32, %v762_v34 }
 0x3c9   :  { %v766_v39 = vadd.f32 %v763_v37, %v698_v19 }
 0x3cb   :  { %v767_v40 = vadd.f32 %v766_v39, %v765_v38 }
 0x3cd   :  { %v768_v42 = vrot.slane %v767_v40, 4 }
 0x3cf   :  { %v769_v48 = vadd.f32 %v768_v42, %v767_v40 }
 0x3d1   :  { %v770_v49 = vrot.slane %v769_v48, 2 }
 0x3d3   :  { %v771_v50 = vadd.f32 %v770_v49, %v769_v48 }
 0x3d5   :  { %v772_v56 = vrot.slane %v771_v50, 1 }
 0x3d7   :  { %v773_v57 = vadd.f32 %v772_v56, %v771_v50 }
 0x3d9   :  { %v774_v60 = vmul.f32 %v773_v57, %v4294_v12 }
 0x3db   :  { %v775_v62 = vsub.f32 %v765_v38, %v774_v60  ;;  %v776_v63 = vsub.f32 %v766_v39, %v774_v60  ;;  %v3441_v60 = vld [vmem:[#allocation10 + $0x98] sm:$0xf0] }
 0x3dd   :  { %v777_v3 = vmul.f32 %v775_v62, %v775_v62  ;;  %v778_v4 = vmul.f32 %v776_v63, %v776_v63 }
 0x3df   :  { %v779_v7 = vadd.f32 %v778_v4, %v777_v3  ;;  %v3200_v4 = vld [vmem:[#allocation10 + $0x48] sm:$0xf] }
 0x3e1   :  { %v780_v8 = vrot.slane %v779_v7, 4 }
 0x3e3   :  { %v781_v9 = vadd.f32 %v780_v8, %v779_v7  ;;  %v3432_v7 = vld [vmem:[#allocation10 + $0x50] sm:$0xf0] }
 0x3e4   :  { %v4353_v8 = vor.u32 %v3432_v7, %v3200_v4 }
 0x3e5   :  { %v782_v55 = vrot.slane %v781_v9, 2 }
 0x3e7   :  { %v783_v11 = vadd.f32 %v782_v55, %v781_v9  ;;  %v3188_v9 = vld [vmem:[#allocation10 + $0x30] sm:$0xf]  ;;  %v3429_v55 = vld [vmem:[#allocation10 + $0x38] sm:$0xf0] }
 0x3e9   :  { %v784_v16 = vrot.slane %v783_v11, 1 }
 0x3eb   :  { %v785_v17 = vadd.f32 %v784_v16, %v783_v11  ;;  %v4356_v11 = vor.u32 %v3429_v55, %v3188_v9  ;;  %v3437_v9 = vld [vmem:[#allocation10 + $0x7c] sm:$0xf]  ;;  %v3226_v55 = vld [vmem:[#allocation10 + $0x84] sm:$0xf0] }
 0x3ed   :  { %v786_v20 = vmul.f32 %v785_v17, %v4294_v12 }
 0x3ef   :  { %v787_v21 = vadd.f32 1e-05, %v786_v20  ;;  %v3176_v20 = vld [vmem:[#allocation10 + $0x18] sm:$0xf] }
 0x3f1   :  { %3533 = vrsqrt.f32 %v787_v21  ;;  %vm794_vm10 = vweird.f32 %v787_v21 }
 0x3f7   :  { %v3534_v23 = vpop.eup %3533 }
 0x3f8   :  { %v789_v28 = vmul.f32 %v3534_v23, %v787_v21  ;;  %vm795_vm9 = vweird.f32 %v3534_v23  ;;  %v3426_v21 = vld [vmem:[#allocation10 + $0x20] sm:$0xf0] }
 0x3f9   :  { %vm796_vm11 = vmor %vm794_vm10, %vm795_vm9  ;;  %vm2149_vm9 = vcmask 1043459   ;;  %vm2151_vm10 = vcmask 1044484  }
 0x3fa   :  { %v790_v26 = vmul.f32 %v3534_v23, %v789_v28 }
 0x3fc   :  { %v791_v30 = vmul.f32 0.5, %v790_v26 }
 0x3fe   :  { %v792_v27 = vsub.f32 1.5, %v791_v30  ;;  %v4361_v30 = vor.u32 %v3426_v21, %v3176_v20  ;;  %v3434_v21 = vld [vmem:[#allocation10 + $0x64] sm:$0xf] }
 0x400   :  { %v793_v22 = vmul.f32 %v3534_v23, %v792_v27 }
 0x402   :  { %v797_v36 = vsel %vm796_vm11, %v3534_v23, %v793_v22  ;;  %vm2153_vm11 = vcmask 1045509  }
 0x403   :  { %v4319_v43 = vmul.f32 %v797_v36, %v775_v62  ;;  %v4321_v44 = vmul.f32 %v797_v36, %v776_v63  ;;  %v3164_v36 = vld [vmem:[#allocation10] sm:$0xf] }
 0x405   :  { %v800_v45 = vpack.c.bf16 %v4321_v44, %v4319_v43 }
 0x407   :  { %809 = vmatmul.bf16.vlgmr.msrb.gmra.mxu1 %v800_v45  ;;  %823 = vmatmul.bf16.vlgmr.msra.gmra.mxu2 %v800_v45 }
 0x408   :  { %837 = vmatmul.bf16.vlgmr.msra.gmra.mxu3 %v800_v45  ;;  %v3423_v45 = vld [vmem:[#allocation10 + $0x8] sm:$0xf0] }
 0x484   :  { %v810_v52 = vpop.f32.mrf.mxu1 }
 0x485   :  { %v811_v10 = vadd.f32 %v810_v52, %v4239_v0 }
 0x487   :  { %v843_v24 = vmax.f32 %v811_v10, 0.0 }
 0x489   :  { %v849_v42 = vpack.c.bf16 %v843_v24, %v843_v24 }
 0x48a   :  { %v824_v53 = vpop.f32.mrf.mxu2 }
 0x48b   :  { %v825_v54 = vadd.f32 %v824_v53, %v4237_v61  ;;  %v838_v1 = vpop.f32.mrf.mxu3 }
 0x48c   :  { %v839_v5 = vadd.f32 %v838_v1, %v4234_v58  ;;  %v812_v34 = vpop.f32.mrf.mxu1 }
 0x48d   :  { %v844_v6 = vmax.f32 %v825_v54, 0.0  ;;  %v813_v48 = vadd.f32 %v812_v34, %v4239_v0  ;;  %v3444_v0 = vld [vmem:[#allocation10 + $0xb0] sm:$0xf0]  ;;  %v4364_v54 = vor.u32 %v3423_v45, %v3164_v36  ;;  %v3202_v36 = vld [vmem:[#allocation10 + $0x54] sm:$0xf0] }
 0x48e   :  { %v845_v14 = vmax.f32 %v839_v5, 0.0 }
 0x48f   :  { %v851_v15 = vpack.c.bf16 %v844_v6, %v844_v6  ;;  %v846_v57 = vmax.f32 %v813_v48, 0.0 }
 0x490   :  { %v896_v19 = vpack.c.bf16 %v845_v14, %v845_v14 }
 0x491   :  { %860 = vmatpush.bf16.xpose.msrb.mxu0 %v851_v15 }
 0x492   :  { %v826_v25 = vpop.f32.mrf.mxu2  ;;  %v902_v33 = vsel %vm621_vm3, %v896_v19, 0 }
 0x493   :  { %v827_v37 = vadd.f32 %v826_v25, %v4237_v61  ;;  %v840_v38 = vpop.f32.mrf.mxu3  ;;  %911 = vmatpush.bf16.msrb.mxu2 %v902_v33  ;;  %v850_v61 = vpack.c.bf16 %v846_v57, %v846_v57 }
 0x494   :  { %v841_v39 = vadd.f32 %v840_v38, %v4234_v58  ;;  %v3248_v58 = vld [vmem:[#allocation10 + $0xa8] sm:$0xf] }
 0x495   :  { %v847_v40 = vmax.f32 %v827_v37, 0.0  ;;  %v1271_v37 = vmul.f32 2.0, %v4272_v31 }
 0x496   :  { %v848_v49 = vmax.f32 %v841_v39, 0.0 }
 0x497   :  { %v852_v50 = vpack.c.bf16 %v847_v40, %v847_v40  ;;  %v4373_v38 = vadd.f32 %v1271_v37, %v4218_v41 }
 0x498   :  { %v897_v56 = vpack.c.bf16 %v848_v49, %v848_v49  ;;  %861 = vmatmul.bf16.vlgmr.msrb.gmra.mxu0 %v849_v42 }
 0x499   :  { %972 = vmatpush.bf16.msra.mxu0 %v4280_v46  ;;  %873 = vmatpush.bf16.xpose.msra.mxu1 %v852_v50  ;;  %v4377_v39 = vpack.c.bf16 %v4373_v38, %v4221_v47 }
 0x49a   :  { %v921_v46 = vsel %vm621_vm3, %v897_v56, 0 }
 0x49b   :  { %930 = vmatpush.bf16.msrb.mxu3 %v921_v46 }
 0x49d   :  { %973 = vmatpush.bf16.msra.mxu0 %v4285_v59  ;;  %v4341_v59 = vor.u32 %v3444_v0, %v3248_v58  ;;  %v3443_v0 = vld [vmem:[#allocation10 + $0xac] sm:$0xf] }
 0x49f   :  { %1410 = vmatpush.bf16.msra.mxu3 %v4341_v59 }
 0x4a0   :  { %874 = vmatmul.bf16.vlgmr.msra.gmra.mxu1 %v850_v61 }
 0x4a1   :  { %974 = vmatpush.bf16.msra.mxu0 %v4288_v2  ;;  %v3236_v2 = vld [vmem:[#allocation10 + $0x90] sm:$0xf] }
 0x4a2   :  { %v4344_v62 = vor.u32 %v3441_v60, %v3236_v2  ;;  %v3250_v2 = vld [vmem:[#allocation10 + $0xb4] sm:$0xf0] }
 0x4a3   :  { %v4382_v60 = vor.u32 %v3443_v0, %v3250_v2  ;;  %v3483_v0 = vld [vmem:[#allocation13 + $0x28] sm:$0xff]  ;;  %v3482_v2 = vld [vmem:[#allocation13 + $0x20] sm:$0xff] }
 0x4a4   :  { %1411 = vmatpush.bf16.msra.mxu3 %v4344_v62 }
 0x4a5   :  { %975 = vmatpush.bf16.msra.mxu0 %v4291_v51  ;;  %v3224_v51 = vld [vmem:[#allocation10 + $0x78] sm:$0xf] }
 0x4a9   :  { %976 = vmatpush.bf16.msra.mxu0 %v4296_v13  ;;  %v3438_v13 = vld [vmem:[#allocation10 + $0x80] sm:$0xf0] }
 0x4aa   :  { %v4347_v63 = vor.u32 %v3438_v13, %v3224_v51 }
 0x4ac   :  { %1412 = vmatpush.bf16.msra.mxu3 %v4347_v63 }
 0x4ad   :  { %977 = vmatpush.bf16.msra.mxu0 %v4300_v18 }
 0x4b1   :  { %978 = vmatpush.bf16.msra.mxu0 %v4303_v29  ;;  %v3212_v29 = vld [vmem:[#allocation10 + $0x60] sm:$0xf] }
 0x4b5   :  { %979 = vmatpush.bf16.msra.mxu0 %v4306_v35  ;;  %v3435_v35 = vld [vmem:[#allocation10 + $0x68] sm:$0xf0] }
 0x4b6   :  { %v4350_v3 = vor.u32 %v3435_v35, %v3212_v29 }
 0x4b8   :  { %1413 = vmatpush.bf16.msra.mxu3 %v4350_v3 }
 0x4b9   :  { %1424 = vmatpush.bf16.msrb.mxu0 %v4382_v60 }
 0x4bc   :  { %1414 = vmatpush.bf16.msra.mxu3 %v4353_v8 }
 0x4c0   :  { %1415 = vmatpush.bf16.msra.mxu3 %v4356_v11 }
 0x4c4   :  { %1416 = vmatpush.bf16.msra.mxu3 %v4361_v30 }
 0x4c8   :  { %1417 = vmatpush.bf16.msra.mxu3 %v4364_v54 }
 0x515   :  { %v862_v18 = vpop.f32.mrf.mxu0 }
 0x516   :  { %v879_v23 = vsel %vm598_vm4, %v862_v18, -inf }
 0x51d   :  { %v864_v16 = vpop.f32.mrf.mxu0  ;;  %v875_v17 = vpop.f32.mrf.mxu1 }
 0x51e   :  { %v880_v28 = vsel %vm598_vm4, %v875_v17, -inf  ;;  %v4389_v16 = vor.u32 %v3437_v9, %v3226_v55  ;;  %v3474_v55 = vld [vmem:[#allocation11 + $0x20] sm:$0xff] }
 0x51f   :  { %v881_v26 = vmax.f32 %v879_v23, %v880_v28  ;;  %v3214_v23 = vld [vmem:[#allocation10 + $0x6c] sm:$0xf0] }
 0x520   :  { %v4392_v28 = vor.u32 %v3434_v21, %v3214_v23 }
 0x521   :  { %v882_v27 = vsub.f32 %v862_v18, %v881_v26  ;;  %v883_v22 = vsub.f32 %v875_v17, %v881_v26  ;;  %v3238_v18 = vld [vmem:[#allocation10 + $0x9c] sm:$0xf0] }
 0x523   :  { %v884_v52 = vmul.f32 1.442695, %v882_v27  ;;  %v886_v53 = vmul.f32 1.442695, %v883_v22  ;;  %v3431_v22 = vld [vmem:[#allocation10 + $0x4c] sm:$0xf] }
 0x524   :  { %v4395_v45 = vor.u32 %v3431_v22, %v3202_v36 }
 0x525   :  { %3535 = vpow2.f32 %v884_v52  ;;  %v877_v1 = vpop.f32.mrf.mxu1 }
 0x526   :  { %3537 = vpow2.f32 %v886_v53  ;;  %v3428_v53 = vld [vmem:[#allocation10 + $0x34] sm:$0xf]  ;;  %v3190_v1 = vld [vmem:[#allocation10 + $0x3c] sm:$0xf0] }
 0x52b   :  { %v3536_v5 = vpop.eup %3535 }
 0x52c   :  { %v3538_v6 = vpop.eup %3537  ;;  %v888_v10 = vsel %vm598_vm4, %v3536_v5, 0.0 }
 0x52d   :  { %v889_v14 = vsel %vm598_vm4, %v3538_v6, 0.0 }
 0x52e   :  { %v890_v15 = vadd.f32 %v889_v14, %v888_v10  ;;  %v3425_v10 = vld [vmem:[#allocation10 + $0x1c] sm:$0xf]  ;;  %v3178_v14 = vld [vmem:[#allocation10 + $0x24] sm:$0xf0] }
 0x530   :  { %3539 = vrcp.f32 %v890_v15 }
 0x536   :  { %v3540_v19 = vpop.eup %3539 }
 0x537   :  { %v893_v24 = vmul.f32 %v3540_v19, %v3538_v6  ;;  %v892_v25 = vmul.f32 %v3540_v19, %v3536_v5  ;;  %v4398_v5 = vor.u32 %v3428_v53, %v3190_v1  ;;  %v4401_v19 = vor.u32 %v3425_v10, %v3178_v14  ;;  %v3472_v1 = vld [vmem:[#allocation11 + $0x10] sm:$0xff] }
 0x539   :  { %v895_v33 = vpack.c.bf16 %v893_v24, %v893_v24  ;;  %v894_v34 = vpack.c.bf16 %v892_v25, %v892_v25  ;;  %v3422_v25 = vld [vmem:[#allocation10 + $0x4] sm:$0xf] }
 0x53b   :  { %3096 = vmatmul.msk.bf16.vlgmr.msrb.gmra.mxu2 %vm598_vm4, %v894_v34  ;;  %3097 = vmatmul.msk.bf16.vlgmr.msrb.gmra.mxu3 %vm598_vm4, %v895_v33  ;;  %v3166_v33 = vld [vmem:[#allocation10 + $0xc] sm:$0xf0] }
 0x53c   :  { %v4405_v37 = vor.u32 %v3422_v25, %v3166_v33 }
 0x54b   :  { %1418 = vmatmul.bf16.vlgmr.msra.gmra.mxu3 %v4377_v39 }
 0x5be   :  { %v913_v40 = vpop.f32.mrf.mxu2  ;;  %v932_v42 = vpop.f32.mrf.mxu3 }
 0x5bf   :  { %v936_v48 = vadd.f32 %v913_v40, %v4319_v43  ;;  %v937_v49 = vadd.f32 %v932_v42, %v4321_v44  ;;  %v3440_v43 = vld [vmem:[#allocation10 + $0x94] sm:$0xf]  ;;  %v3485_v42 = vld [vmem:[#allocation13 + $0x38] sm:$0xff] }
 0x5c0   :  { %v4386_v44 = vor.u32 %v3440_v43, %v3238_v18  ;;  %1256 = vmatpush.bf16.msra.mxu2 %v3485_v42  ;;  %v3479_v43 = vld [vmem:[#allocation13 + $0x8] sm:$0xff]  ;;  %v3478_v18 = vld [vmem:[#allocation13] sm:$0xff]  ;;  %v3256_v42 = vld [vmem:[#allocation10 + $0xb0] sm:$0xf] }
 0x5c1   :  { %v938_v50 = vadd.f32 %v937_v49, %v936_v48 }
 0x5c2   :  { %1425 = vmatpush.bf16.msrb.mxu0 %v4386_v44 }
 0x5c3   :  { %v939_v56 = vrot.slane %v938_v50, 4 }
 0x5c5   :  { %v940_v57 = vadd.f32 %v939_v56, %v938_v50 }
 0x5c6   :  { %v915_v46 = vpop.f32.mrf.mxu2  ;;  %v934_v31 = vpop.f32.mrf.mxu3  ;;  %1426 = vmatpush.bf16.msrb.mxu0 %v4389_v16 }
 0x5c7   :  { %v941_v61 = vrot.slane %v940_v57, 2 }
 0x5c9   :  { %v942_v41 = vadd.f32 %v941_v61, %v940_v57 }
 0x5ca   :  { %1427 = vmatpush.bf16.msrb.mxu0 %v4392_v28 }
 0x5cb   :  { %v943_v58 = vrot.slane %v942_v41, 1 }
 0x5cd   :  { %v944_v51 = vadd.f32 %v943_v58, %v942_v41 }
 0x5ce   :  { %1428 = vmatpush.bf16.msrb.mxu0 %v4395_v45 }
 0x5cf   :  { %v945_v13 = vmul.f32 %v944_v51, %v4294_v12  ;;  %v3481_v51 = vld [vmem:[#allocation13 + $0x18] sm:$0xff] }
 0x5d1   :  { %v946_v29 = vsub.f32 %v936_v48, %v945_v13  ;;  %v947_v35 = vsub.f32 %v937_v49, %v945_v13  ;;  %v3484_v49 = vld [vmem:[#allocation13 + $0x30] sm:$0xff] }
 0x5d2   :  { %1429 = vmatpush.bf16.msrb.mxu0 %v4398_v5  ;;  %1257 = vmatpush.bf16.msra.mxu2 %v3484_v49  ;;  %v3480_v13 = vld [vmem:[#allocation13 + $0x10] sm:$0xff] }
 0x5d3   :  { %v948_v4 = vmul.f32 %v946_v29, %v946_v29  ;;  %v949_v7 = vmul.f32 %v947_v35, %v947_v35 }
 0x5d5   :  { %v950_v17 = vadd.f32 %v949_v7, %v948_v4  ;;  %v3477_v4 = vld [vmem:[#allocation11 + $0x38] sm:$0xff]  ;;  %v3475_v7 = vld [vmem:[#allocation11 + $0x28] sm:$0xff] }
 0x5d6   :  { %1430 = vmatpush.bf16.msrb.mxu0 %v4401_v19  ;;  %1258 = vmatpush.bf16.msra.mxu2 %v3483_v0  ;;  %v3442_v0 = vld [vmem:[#allocation10 + $0xa0] sm:$0xf0] }
 0x5d7   :  { %v951_v20 = vrot.slane %v950_v17, 4  ;;  %1174 = vmatpush.bf16.msrb.mxu1 %v3477_v4 }
 0x5d9   :  { %v952_v26 = vadd.f32 %v951_v20, %v950_v17 }
 0x5da   :  { %1431 = vmatpush.bf16.msrb.mxu0 %v4405_v37  ;;  %1259 = vmatpush.bf16.msra.mxu2 %v3482_v2 }
 0x5db   :  { %v953_v27 = vrot.slane %v952_v26, 2 }
 0x5dd   :  { %v954_v52 = vadd.f32 %v953_v27, %v952_v26  ;;  %v3473_v26 = vld [vmem:[#allocation11 + $0x18] sm:$0xff]  ;;  %v4414_v27 = vld [vmem:[%s4960_s9] sm:$0x7] }
 0x5de   :  { %1260 = vmatpush.bf16.msra.mxu2 %v3481_v51  ;;  %v4417_v36 = vperm.slane %v4414_v27, 1 }
 0x5df   :  { %v955_v6 = vrot.slane %v954_v52, 1 }
 0x5e0   :  { %5020 = vst [vmem:[#allocation29_spill] sm:$0xff] %v4417_v36 }
 0x5e1   :  { %v956_v15 = vadd.f32 %v955_v6, %v954_v52  ;;  %v4419_v52 = vpop.f32.mrf.mxu3 }
 0x5e2   :  { %1261 = vmatpush.bf16.msra.mxu2 %v3480_v13 }
 0x5e3   :  { %v957_v24 = vmul.f32 %v956_v15, %v4294_v12 }
 0x5e5   :  { %v958_v34 = vadd.f32 1e-05, %v957_v24  ;;  %v3471_v24 = vld [vmem:[#allocation11 + $0x8] sm:$0xff] }
 0x5e6   :  { %1262 = vmatpush.bf16.msra.mxu2 %v3479_v43 }
 0x5e7   :  { %3541 = vrsqrt.f32 %v958_v34  ;;  %vm965_vm13 = vweird.f32 %v958_v34 }
 0x5ea   :  { %1263 = vmatpush.bf16.msra.mxu2 %v3478_v18 }
 0x5ed   :  { %v3542_v40 = vpop.eup %3541 }
 0x5ee   :  { %v960_v48 = vmul.f32 %v3542_v40, %v958_v34  ;;  %vm966_vm12 = vweird.f32 %v3542_v40 }
 0x5ef   :  { %vm967_vm14 = vmor %vm965_vm13, %vm966_vm12  ;;  %vm2155_vm12 = vcmask 1046534   ;;  %vm2157_vm13 = vcmask 1047559  }
 0x5f0   :  { %v961_v50 = vmul.f32 %v3542_v40, %v960_v48  ;;  %v3445_v48 = vld [vmem:[#allocation10 + $0xb8] sm:$0xf0] }
 0x5f2   :  { %v962_v56 = vmul.f32 0.5, %v961_v50  ;;  %v4422_v50 = vor.u32 %v3445_v48, %v3256_v42 }
 0x5f4   :  { %v963_v57 = vsub.f32 1.5, %v962_v56  ;;  %v1421_v56 = vpop.f32.mrf.mxu3 }
 0x5f6   :  { %v964_v46 = vmul.f32 %v3542_v40, %v963_v57 }
 0x5f8   :  { %v968_v31 = vsel %vm967_vm14, %v3542_v40, %v964_v46  ;;  %v3470_v40 = vld [vmem:[#allocation11] sm:$0xff] }
 0x5f9   :  { %v969_v61 = vmul.f32 %v968_v31, %v946_v29  ;;  %v970_v41 = vmul.f32 %v968_v31, %v947_v35  ;;  %v3476_v29 = vld [vmem:[#allocation11 + $0x30] sm:$0xff]  ;;  %v4426_v31 = vperm.slane %v4414_v27, 0 }
 0x5fa   :  { %1175 = vmatpush.bf16.msrb.mxu1 %v3476_v29 }
 0x5fb   :  { %v971_v58 = vpack.c.bf16 %v970_v41, %v969_v61  ;;  %5021 = vst [vmem:[#allocation30_spill] sm:$0xff] %v4426_v31  ;;  %v1422_v2 = vadd.f32 %v1421_v56, %v4426_v31  ;;  %v3172_v56 = vld [vmem:[#allocation10 + $0x8] sm:$0xf] }
 0x5fd   :  { %980 = vmatmul.bf16.vlgmr.msra.gmra.mxu0 %v971_v58  ;;  %v3244_v58 = vld [vmem:[#allocation10 + $0x98] sm:$0xf] }
 0x5fe   :  { %1176 = vmatpush.bf16.msrb.mxu1 %v3475_v7  ;;  %v4431_v51 = vor.u32 %v3442_v0, %v3244_v58  ;;  %v3439_v7 = vld [vmem:[#allocation10 + $0x88] sm:$0xf0] }
 0x602   :  { %1177 = vmatpush.bf16.msrb.mxu1 %v3474_v55 }
 0x606   :  { %1178 = vmatpush.bf16.msrb.mxu1 %v3473_v26  ;;  %v3220_v26 = vld [vmem:[#allocation10 + $0x68] sm:$0xf] }
 0x60a   :  { %1179 = vmatpush.bf16.msrb.mxu1 %v3472_v1 }
 0x60d   :  { %1432 = vmatmul.bf16.vlgmr.msrb.gmra.mxu0 %v4377_v39 }
 0x60e   :  { %1180 = vmatpush.bf16.msrb.mxu1 %v3471_v24  ;;  %v3430_v24 = vld [vmem:[#allocation10 + $0x40] sm:$0xf0] }
 0x612   :  { %1181 = vmatpush.bf16.msrb.mxu1 %v3470_v40  ;;  %v3427_v40 = vld [vmem:[#allocation10 + $0x28] sm:$0xf0] }
 0x616   :  { %1438 = vmatpush.bf16.msra.mxu1 %v4422_v50 }
 0x61a   :  { %1439 = vmatpush.bf16.msra.mxu1 %v4431_v51 }
 0x67a   :  { %v981_v35 = vpop.f32.mrf.mxu0 }
 0x67b   :  { %v982_v9 = vadd.f32 %v4313_v32, %v981_v35  ;;  %v3232_v35 = vld [vmem:[#allocation10 + $0x80] sm:$0xf] }
 0x67c   :  { %v4434_v55 = vor.u32 %v3439_v7, %v3232_v35 }
 0x67d   :  { %v986_v21 = vadd.f32 %v982_v9, %v969_v61  ;;  %v1455_v9 = vmax.f32 %v1422_v2, 0.0 }
 0x67e   :  { %1440 = vmatpush.bf16.msra.mxu1 %v4434_v55 }
 0x682   :  { %v983_v17 = vpop.f32.mrf.mxu0 }
 0x683   :  { %v984_v20 = vadd.f32 %v4313_v32, %v983_v17 }
 0x685   :  { %v987_v23 = vadd.f32 %v984_v20, %v970_v41 }
 0x687   :  { %v988_v22 = vadd.f32 %v987_v23, %v986_v21 }
 0x689   :  { %v989_v53 = vrot.slane %v988_v22, 4 }
 0x68a   :  { %v1433_v6 = vpop.f32.mrf.mxu0 }
 0x68b   :  { %v990_v32 = vadd.f32 %v989_v53, %v988_v22  ;;  %v1434_v10 = vadd.f32 %v1433_v6, %v4417_v36  ;;  %v3436_v22 = vld [vmem:[#allocation10 + $0x70] sm:$0xf0]  ;;  %v1459_v53 = vpack.c.bf16 %v1455_v9, %v1455_v9  ;;  %v3208_v6 = vld [vmem:[#allocation10 + $0x50] sm:$0xf] }
 0x68d   :  { %v991_v14 = vrot.slane %v990_v32, 2  ;;  %v1453_v15 = vmax.f32 %v1434_v10, 0.0 }
 0x68f   :  { %v992_v25 = vadd.f32 %v991_v14, %v990_v32  ;;  %v1460_v33 = vpack.c.bf16 %v1453_v15, %v1453_v15  ;;  %v3433_v32 = vld [vmem:[#allocation10 + $0x58] sm:$0xf0]  ;;  %v3196_v15 = vld [vmem:[#allocation10 + $0x38] sm:$0xf] }
 0x690   :  { %v4440_v10 = vor.u32 %v3433_v32, %v3208_v6 }
 0x691   :  { %v993_v34 = vrot.slane %v992_v25, 1  ;;  %1469 = vmatpush.bf16.xpose.msrb.mxu2 %v1460_v33 }
 0x692   :  { %v1435_v49 = vpop.f32.mrf.mxu0 }
 0x693   :  { %v994_v57 = vadd.f32 %v993_v34, %v992_v25  ;;  %v1436_v46 = vadd.f32 %v1435_v49, %v4417_v36  ;;  %v4443_v25 = vor.u32 %v3430_v24, %v3196_v15  ;;  %v3184_v34 = vld [vmem:[#allocation10 + $0x20] sm:$0xf] }
 0x694   :  { %v4446_v48 = vor.u32 %v3427_v40, %v3184_v34 }
 0x695   :  { %v995_v61 = vmul.f32 %v994_v57, %v4294_v12  ;;  %v1456_v41 = vmax.f32 %v1436_v46, 0.0  ;;  %v3424_v57 = vld [vmem:[#allocation10 + $0x10] sm:$0xf0] }
 0x696   :  { %5022 = vst [vmem:[#allocation31_spill] sm:$0xff] %v4446_v48 }
 0x697   :  { %v996_v13 = vsub.f32 %v986_v21, %v995_v61  ;;  %v997_v43 = vsub.f32 %v987_v23, %v995_v61  ;;  %v1461_v18 = vpack.c.bf16 %v1456_v41, %v1456_v41  ;;  %v4437_v21 = vor.u32 %v3436_v22, %v3220_v26 }
 0x698   :  { %v4450_v61 = vor.u32 %v3424_v57, %v3172_v56 }
 0x699   :  { %v998_v4 = vmul.f32 %v996_v13, %v996_v13  ;;  %v999_v29 = vmul.f32 %v997_v43, %v997_v43  ;;  %1482 = vmatpush.bf16.xpose.msrb.mxu3 %v1461_v18  ;;  %1441 = vmatpush.bf16.msra.mxu1 %v4437_v21 }
 0x69a   :  { %5023 = vst [vmem:[#allocation32_spill] sm:$0xff] %v4450_v61 }
 0x69b   :  { %v1000_v17 = vadd.f32 %v999_v29, %v998_v4 }
 0x69d   :  { %v1001_v20 = vrot.slane %v1000_v17, 4  ;;  %1442 = vmatpush.bf16.msra.mxu1 %v4440_v10 }
 0x69f   :  { %v1002_v23 = vadd.f32 %v1001_v20, %v1000_v17  ;;  %v1420_v17 = vadd.f32 %v4419_v52, %v4426_v31  ;;  %v3518_v52 = vld [vmem:[%s4964_s13] ss:$0 sm:$0xff] }
 0x6a0   :  { %1483 = vmatmul.bf16.vlgmr.msrb.gmra.mxu3 %v1459_v53 }
 0x6a1   :  { %v1003_v1 = vrot.slane %v1002_v23, 2  ;;  %1443 = vmatpush.bf16.msra.mxu1 %v4443_v25  ;;  %v1452_v20 = vmax.f32 %v1420_v17, 0.0 }
 0x6a3   :  { %v1004_v14 = vadd.f32 %v1003_v1, %v1002_v23  ;;  %v1458_v26 = vpack.c.bf16 %v1452_v20, %v1452_v20  ;;  %v3517_v23 = vld [vmem:[%s4962_s11] ss:$0 sm:$0xff] }
 0x6a5   :  { %v1005_v33 = vrot.slane %v1004_v14, 1  ;;  %1444 = vmatpush.bf16.msra.mxu1 %v4446_v48 }
 0x6a7   :  { %v1006_v42 = vadd.f32 %v1005_v33, %v1004_v14 }
 0x6a9   :  { %v1007_v49 = vmul.f32 %v1006_v42, %v4294_v12  ;;  %1445 = vmatpush.bf16.msra.mxu1 %v4450_v61 }
 0x6ab   :  { %v1008_v46 = vadd.f32 1e-05, %v1007_v49 }
 0x6ad   :  { %3543 = vrsqrt.f32 %v1008_v46  ;;  %vm1015_vm0 = vweird.f32 %v1008_v46 }
 0x6b3   :  { %v3544_v41 = vpop.eup %3543 }
 0x6b4   :  { %v1010_v58 = vmul.f32 %v3544_v41, %v1008_v46  ;;  %vm1016_vm15 = vweird.f32 %v3544_v41 }
 0x6b5   :  { %vm1017_vm1 = vmor %vm1015_vm0, %vm1016_vm15 }
 0x6b6   :  { %v1011_v0 = vmul.f32 %v3544_v41, %v1010_v58 }
 0x6b8   :  { %v1012_v2 = vmul.f32 0.5, %v1011_v0 }
 0x6ba   :  { %v1013_v18 = vsub.f32 1.5, %v1012_v2 }
 0x6bc   :  { %v1014_v4 = vmul.f32 %v3544_v41, %v1013_v18 }
 0x6be   :  { %v1018_v29 = vsel %vm1017_vm1, %v3544_v41, %v1014_v4 }
 0x6bf   :  { %v1019_v35 = vmul.f32 %v1018_v29, %v996_v13  ;;  %v1020_v7 = vmul.f32 %v1018_v29, %v997_v43 }
 0x6c1   :  { %v1105_v9 = vpack.c.bf16 %v1020_v7, %v1019_v35 }
 0x6c3   :  { %1182 = vmatmul.bf16.vlgmr.msrb.gmra.mxu1 %v1105_v9  ;;  %1264 = vmatmul.bf16.vlgmr.msra.gmra.mxu2 %v1105_v9 }
 0x6d3   :  { %1446 = vmatmul.bf16.vlgmr.msra.gmra.mxu1 %v4377_v39  ;;  %1470 = vmatmul.bf16.vlgmr.msrb.gmra.mxu2 %v1458_v26 }
 0x723   :  { %v4456_v22 = vpop.f32.mrf.mxu3 }
 0x72b   :  { %v1486_v53 = vpop.f32.mrf.mxu3 }
 0x740   :  { %v1183_v13 = vpop.f32.mrf.mxu1 }
 0x741   :  { %v1184_v43 = vadd.f32 %v3517_v23, %v1183_v13 }
 0x743   :  { %v1648_v1 = vrot.slane %v1184_v43, 1  ;;  %v1649_v6 = vrot.slane %v1184_v43, 2  ;;  %v1650_v32 = vrot.slane %v1184_v43, 3  ;;  %v1651_v14 = vrot.slane %v1184_v43, 4 }
 0x744   :  { %v1652_v15 = vrot.slane %v1184_v43, 5  ;;  %v1653_v39 = vrot.slane %v1184_v43, 6  ;;  %v1654_v24 = vrot.slane %v1184_v43, 7  ;;  %v1662_v33 = vperm.slane %v1184_v43, 0 }
 0x745   :  { %v1663_v40 = vperm.slane %v1648_v1, 0  ;;  %v1664_v42 = vperm.slane %v1649_v6, 0  ;;  %v1665_v49 = vperm.slane %v1650_v32, 0  ;;  %v1666_v57 = vperm.slane %v1651_v14, 0 }
 0x746   :  { %v1265_v34 = vpop.f32.mrf.mxu2  ;;  %v1667_v46 = vperm.slane %v1652_v15, 0  ;;  %v1668_v41 = vperm.slane %v1653_v39, 0  ;;  %v1669_v58 = vperm.slane %v1654_v24, 0 }
 0x747   :  { %v1266_v56 = vadd.f32 %v3518_v52, %v1265_v34 }
 0x748   :  { %v1185_v20 = vpop.f32.mrf.mxu1 }
 0x749   :  { %v4464_v0 = vmul.f32 %v1662_v33, %v1266_v56  ;;  %v4466_v2 = vmul.f32 %v1663_v40, %v1266_v56  ;;  %v4468_v18 = vmul.f32 %v1664_v42, %v1266_v56  ;;  %v4470_v4 = vmul.f32 %v1665_v49, %v1266_v56 }
 0x74a   :  { %v4472_v29 = vmul.f32 %v1666_v57, %v1266_v56  ;;  %v4474_v35 = vmul.f32 %v1667_v46, %v1266_v56  ;;  %v4476_v7 = vmul.f32 %v1668_v41, %v1266_v56  ;;  %v4478_v9 = vmul.f32 %v1669_v58, %v1266_v56 }
 0x74b   :  { %v1186_v53 = vadd.f32 %v3517_v23, %v1185_v20 }
 0x74d   :  { %v1655_v13 = vrot.slane %v1186_v53, 1  ;;  %v1656_v43 = vrot.slane %v1186_v53, 2  ;;  %v1657_v1 = vrot.slane %v1186_v53, 3  ;;  %v1658_v6 = vrot.slane %v1186_v53, 4 }
 0x74e   :  { %v1267_v17 = vpop.f32.mrf.mxu2  ;;  %v1659_v14 = vrot.slane %v1186_v53, 5  ;;  %v1660_v15 = vrot.slane %v1186_v53, 6  ;;  %v1661_v39 = vrot.slane %v1186_v53, 7  ;;  %v1670_v24 = vperm.slane %v1186_v53, 0 }
 0x74f   :  { %v1268_v32 = vadd.f32 %v3518_v52, %v1267_v17  ;;  %v1671_v34 = vperm.slane %v1655_v13, 0  ;;  %v1672_v40 = vperm.slane %v1656_v43, 0  ;;  %v1673_v42 = vperm.slane %v1657_v1, 0 }
 0x750   :  { %v1674_v49 = vperm.slane %v1658_v6, 0  ;;  %v1675_v56 = vperm.slane %v1659_v14, 0  ;;  %v1676_v57 = vperm.slane %v1660_v15, 0  ;;  %v1677_v46 = vperm.slane %v1661_v39, 0  ;;  %v1447_v43 = vpop.f32.mrf.mxu1 }
 0x751   :  { %v4480_v41 = vmul.f32 %v1670_v24, %v1268_v32  ;;  %v4482_v23 = vmul.f32 %v1671_v34, %v1268_v32  ;;  %v4484_v58 = vmul.f32 %v1672_v40, %v1268_v32  ;;  %v4486_v20 = vmul.f32 %v1673_v42, %v1268_v32 }
 0x752   :  { %v4488_v52 = vmul.f32 %v1674_v49, %v1268_v32  ;;  %v4490_v17 = vmul.f32 %v1675_v56, %v1268_v32  ;;  %v4492_v53 = vmul.f32 %v1676_v57, %v1268_v32  ;;  %v4494_v13 = vmul.f32 %v1677_v46, %v1268_v32 }
 0x753   :  { %v4497_v1 = vperm.slane %v4414_v27, 2  ;;  %v1489_v24 = vsel %vm598_vm4, %v4456_v22, -inf }
 0x755   :  { %5024 = vst [vmem:[#allocation33_spill] sm:$0xff] %v4497_v1  ;;  %v1448_v14 = vadd.f32 %v1447_v43, %v4497_v1 }
 0x756   :  { %v1471_v26 = vpop.f32.mrf.mxu2 }
 0x757   :  { %v1454_v39 = vmax.f32 %v1448_v14, 0.0 }
 0x758   :  { %v1449_v6 = vpop.f32.mrf.mxu1 }
 0x759   :  { %v1450_v15 = vadd.f32 %v1449_v6, %v4497_v1  ;;  %v1505_v40 = vpack.c.bf16 %v1454_v39, %v1454_v39 }
 0x75b   :  { %v1457_v34 = vmax.f32 %v1450_v15, 0.0  ;;  %v1511_v27 = vsel %vm621_vm3, %v1505_v40, 0 }
 0x75c   :  { %1520 = vmatpush.bf16.msra.mxu2 %v1511_v27 }
 0x75d   :  { %v1506_v32 = vpack.c.bf16 %v1457_v34, %v1457_v34 }
 0x75e   :  { %v1473_v33 = vpop.f32.mrf.mxu2 }
 0x75f   :  { %v1488_v33 = vsel %vm598_vm4, %v1471_v26, -inf  ;;  %v1530_v57 = vsel %vm621_vm3, %v1506_v32, 0 }
 0x760   :  { %v1490_v42 = vmax.f32 %v1488_v33, %v1489_v24  ;;  %1539 = vmatpush.bf16.msra.mxu3 %v1530_v57 }
 0x762   :  { %v1491_v49 = vsub.f32 %v1471_v26, %v1490_v42  ;;  %v1492_v56 = vsub.f32 %v4456_v22, %v1490_v42  ;;  %v3452_v42 = vld [vmem:[#allocation14 + $0x30] sm:$0xff] }
 0x764   :  { %v1493_v46 = vmul.f32 1.442695, %v1491_v49  ;;  %v1495_v43 = vmul.f32 1.442695, %v1492_v56  ;;  %2367 = vmatpush.bf16.msrb.mxu3 %v4341_v59 }
 0x766   :  { %3545 = vpow2.f32 %v1493_v46  ;;  %v3450_v46 = vld [vmem:[#allocation14 + $0x20] sm:$0xff] }
 0x767   :  { %3547 = vpow2.f32 %v1495_v43 }
 0x768   :  { %2368 = vmatpush.bf16.msrb.mxu3 %v4344_v62 }
 0x76c   :  { %v3546_v6 = vpop.eup %3545  ;;  %2369 = vmatpush.bf16.msrb.mxu3 %v4347_v63 }
 0x76d   :  { %v3548_v14 = vpop.eup %3547  ;;  %v1497_v26 = vsel %vm598_vm4, %v3546_v6, 0.0 }
 0x76e   :  { %v1498_v22 = vsel %vm598_vm4, %v3548_v14, 0.0 }
 0x76f   :  { %v1499_v15 = vadd.f32 %v1498_v22, %v1497_v26  ;;  %v3448_v22 = vld [vmem:[#allocation14 + $0x10] sm:$0xff] }
 0x770   :  { %2370 = vmatpush.bf16.msrb.mxu3 %v4350_v3  ;;  %v4519_v3 = vld [vmem:[#allocation14 + $0x38] sm:$0xff] }
 0x771   :  { %3549 = vrcp.f32 %v1499_v15  ;;  %1632 = vmatpush.bf16.msra.mxu0 %v4519_v3 }
 0x774   :  { %2371 = vmatpush.bf16.msrb.mxu3 %v4353_v8 }
 0x775   :  { %1633 = vmatpush.bf16.msra.mxu0 %v3452_v42 }
 0x777   :  { %v3550_v39 = vpop.eup %3549 }
 0x778   :  { %v1501_v59 = vmul.f32 %v3550_v39, %v3546_v6  ;;  %v1502_v24 = vmul.f32 %v3550_v39, %v3548_v14  ;;  %2372 = vmatpush.bf16.msrb.mxu3 %v4356_v11 }
 0x77a   :  { %v1503_v62 = vpack.c.bf16 %v1501_v59, %v1501_v59  ;;  %v1504_v33 = vpack.c.bf16 %v1502_v24, %v1502_v24  ;;  %v3447_v24 = vld [vmem:[#allocation14 + $0x8] sm:$0xff] }
 0x77c   :  { %3258 = vmatmul.msk.bf16.vlgmr.msra.gmra.mxu2 %vm598_vm4, %v1503_v62  ;;  %3259 = vmatmul.msk.bf16.vlgmr.msra.gmra.mxu3 %vm598_vm4, %v1504_v33 }
 0x77d   :  { %2373 = vmatpush.bf16.msrb.mxu3 %v4361_v30  ;;  %v3451_v30 = vld [vmem:[#allocation14 + $0x28] sm:$0xff] }
 0x77e   :  { %1634 = vmatpush.bf16.msra.mxu0 %v3451_v30 }
 0x781   :  { %2374 = vmatpush.bf16.msrb.mxu3 %v4364_v54 }
 0x782   :  { %1635 = vmatpush.bf16.msra.mxu0 %v3450_v46 }
 0x7ff   :  { %v1522_v63 = vpop.f32.mrf.mxu2  ;;  %v1541_v34 = vpop.f32.mrf.mxu3 }
 0x800   :  { %v1545_v8 = vadd.f32 %v1522_v63, %v4221_v47  ;;  %v1546_v40 = vadd.f32 %v1541_v34, %v4373_v38  ;;  %v3449_v47 = vld [vmem:[#allocation14 + $0x18] sm:$0xff]  ;;  %v3446_v63 = vld [vmem:[#allocation14] sm:$0xff] }
 0x801   :  { %1636 = vmatpush.bf16.msra.mxu0 %v3449_v47 }
 0x802   :  { %v1547_v11 = vadd.f32 %v1546_v40, %v1545_v8 }
 0x804   :  { %v1548_v32 = vrot.slane %v1547_v11, 4 }
 0x805   :  { %1637 = vmatpush.bf16.msra.mxu0 %v3448_v22 }
 0x806   :  { %v1549_v49 = vadd.f32 %v1548_v32, %v1547_v11 }
 0x807   :  { %v1524_v56 = vpop.f32.mrf.mxu2  ;;  %v1543_v27 = vpop.f32.mrf.mxu3 }
 0x808   :  { %v1550_v57 = vrot.slane %v1549_v49, 2 }
 0x809   :  { %1638 = vmatpush.bf16.msra.mxu0 %v3447_v24 }
 0x80a   :  { %v1551_v54 = vadd.f32 %v1550_v57, %v1549_v49 }
 0x80c   :  { %v1552_v43 = vrot.slane %v1551_v54, 1 }
 0x80d   :  { %1639 = vmatpush.bf16.msra.mxu0 %v3446_v63 }
 0x80e   :  { %v1553_v6 = vadd.f32 %v1552_v43, %v1551_v54 }
 0x810   :  { %v1554_v38 = vmul.f32 %v1553_v6, %v4294_v12 }
 0x811   :  { %2381 = vmatpush.bf16.msrb.mxu0 %v4382_v60 }
 0x812   :  { %v1555_v14 = vsub.f32 %v1545_v8, %v1554_v38  ;;  %v1556_v26 = vsub.f32 %v1546_v40, %v1554_v38 }
 0x814   :  { %v1557_v15 = vmul.f32 %v1555_v14, %v1555_v14  ;;  %v1558_v39 = vmul.f32 %v1556_v26, %v1556_v26 }
 0x815   :  { %2382 = vmatpush.bf16.msrb.mxu0 %v4386_v44 }
 0x816   :  { %v1559_v59 = vadd.f32 %v1558_v39, %v1557_v15 }
 0x818   :  { %v1560_v62 = vrot.slane %v1559_v59, 4 }
 0x819   :  { %2383 = vmatpush.bf16.msrb.mxu0 %v4389_v16 }
 0x81a   :  { %v1561_v33 = vadd.f32 %v1560_v62, %v1559_v59 }
 0x81c   :  { %v1562_v34 = vrot.slane %v1561_v33, 2 }
 0x81d   :  { %2384 = vmatpush.bf16.msrb.mxu0 %v4392_v28 }
 0x81e   :  { %v1563_v11 = vadd.f32 %v1562_v34, %v1561_v33 }
 0x820   :  { %v1564_v32 = vrot.slane %v1563_v11, 1 }
 0x821   :  { %2385 = vmatpush.bf16.msrb.mxu0 %v4395_v45  ;;  %v1710_v45 = vrot.slane %v4464_v0, 4 }
 0x822   :  { %v1565_v49 = vadd.f32 %v1564_v32, %v1563_v11  ;;  %v1770_v32 = vrot.slane %v4484_v58, 4 }
 0x823   :  { %v1711_v38 = vmax.f32 %v4464_v0, %v1710_v45 }
 0x824   :  { %v1566_v8 = vmul.f32 %v1565_v49, %v4294_v12 }
 0x825   :  { %2386 = vmatpush.bf16.msrb.mxu0 %v4398_v5  ;;  %v1716_v5 = vrot.slane %v4466_v2, 4 }
 0x826   :  { %v1567_v40 = vadd.f32 1e-05, %v1566_v8 }
 0x828   :  { %3551 = vrsqrt.f32 %v1567_v40  ;;  %vm1574_vm5 = vweird.f32 %v1567_v40 }
 0x829   :  { %2387 = vmatpush.bf16.msrb.mxu0 %v4401_v19  ;;  %v1722_v19 = vrot.slane %v4468_v18, 4 }
 0x82d   :  { %2388 = vmatpush.bf16.msrb.mxu0 %v4405_v37  ;;  %v1728_v37 = vrot.slane %v4470_v4, 4 }
 0x82e   :  { %v3552_v56 = vpop.eup %3551 }
 0x82f   :  { %v1569_v27 = vmul.f32 %v3552_v56, %v1567_v40  ;;  %vm1575_vm2 = vweird.f32 %v3552_v56  ;;  %v1776_v40 = vrot.slane %v4486_v20, 4 }
 0x830   :  { %vm1576_vm6 = vmor %vm1574_vm5, %vm1575_vm2 }
 0x831   :  { %v1570_v57 = vmul.f32 %v3552_v56, %v1569_v27 }
 0x833   :  { %v1571_v60 = vmul.f32 0.5, %v1570_v57 }
 0x835   :  { %v1572_v54 = vsub.f32 1.5, %v1571_v60  ;;  %v1782_v60 = vrot.slane %v4488_v52, 4 }
 0x837   :  { %v1573_v44 = vmul.f32 %v3552_v56, %v1572_v54 }
 0x839   :  { %v1577_v43 = vsel %vm1576_vm6, %v3552_v56, %v1573_v44 }
 0x83a   :  { %v4533_v16 = vmul.f32 %v1577_v43, %v1555_v14  ;;  %v4535_v6 = vmul.f32 %v1577_v43, %v1556_v26  ;;  %v1734_v14 = vrot.slane %v4472_v29, 4  ;;  %v1752_v26 = vrot.slane %v4478_v9, 4 }
 0x83c   :  { %5025 = vst [vmem:[#allocation34_spill] sm:$0xff] %v4533_v16  ;;  %v1580_v28 = vpack.c.bf16 %v4535_v6, %v4533_v16  ;;  %v1735_v15 = vmax.f32 %v4472_v29, %v1734_v14  ;;  %v1753_v11 = vmax.f32 %v4478_v9, %v1752_v26 }
 0x83d   :  { %5026 = vst [vmem:[#allocation35_spill] sm:$0xff] %v4535_v6 }
 0x83e   :  { %1640 = vmatmul.bf16.vlgmr.msra.gmra.mxu0 %v1580_v28  ;;  %v1736_v8 = vrot.slane %v1735_v15, 2  ;;  %v1788_v28 = vrot.slane %v4490_v17, 4 }
 0x83f   :  { %2538 = vmatpush.bf16.msra.mxu0 %v4519_v3  ;;  %v1717_v3 = vmax.f32 %v4466_v2, %v1716_v5  ;;  %v1754_v5 = vrot.slane %v1753_v11, 2 }
 0x840   :  { %v1737_v14 = vmax.f32 %v1735_v15, %v1736_v8 }
 0x841   :  { %v1718_v39 = vrot.slane %v1717_v3, 2 }
 0x842   :  { %v1738_v8 = vrot.slane %v1737_v14, 1 }
 0x843   :  { %2539 = vmatpush.bf16.msra.mxu0 %v3452_v42  ;;  %v1740_v42 = vrot.slane %v4474_v35, 4  ;;  %v1719_v56 = vmax.f32 %v1717_v3, %v1718_v39  ;;  %v1777_v3 = vmax.f32 %v4486_v20, %v1776_v40 }
 0x845   :  { %v1741_v59 = vmax.f32 %v4474_v35, %v1740_v42  ;;  %v1800_v42 = vrot.slane %v4494_v13, 4  ;;  %v1778_v40 = vrot.slane %v1777_v3, 2 }
 0x847   :  { %2540 = vmatpush.bf16.msra.mxu0 %v3451_v30  ;;  %v1723_v30 = vmax.f32 %v4468_v18, %v1722_v19  ;;  %v1742_v27 = vrot.slane %v1741_v59, 2  ;;  %v1771_v19 = vmax.f32 %v4484_v58, %v1770_v32  ;;  %v1801_v1 = vmax.f32 %v4494_v13, %v1800_v42 }
 0x849   :  { %v1724_v62 = vrot.slane %v1723_v30, 2  ;;  %v1743_v26 = vmax.f32 %v1741_v59, %v1742_v27  ;;  %v1772_v32 = vrot.slane %v1771_v19, 2 }
 0x84b   :  { %2541 = vmatpush.bf16.msra.mxu0 %v3450_v46  ;;  %v1746_v46 = vrot.slane %v4476_v7, 4  ;;  %v1725_v54 = vmax.f32 %v1723_v30, %v1724_v62  ;;  %v1744_v59 = vrot.slane %v1743_v26, 1  ;;  %v1773_v61 = vmax.f32 %v1771_v19, %v1772_v32 }
 0x84d   :  { %v1747_v33 = vmax.f32 %v4476_v7, %v1746_v46  ;;  %v1720_v46 = vrot.slane %v1719_v56, 1  ;;  %v1726_v39 = vrot.slane %v1725_v54, 1  ;;  %v1745_v48 = vmax.f32 %v1743_v26, %v1744_v59 }
 0x84e   :  { %v1774_v19 = vrot.slane %v1773_v61, 1 }
 0x84f   :  { %2542 = vmatpush.bf16.msra.mxu0 %v3449_v47  ;;  %v1729_v47 = vmax.f32 %v4470_v4, %v1728_v37  ;;  %v1748_v44 = vrot.slane %v1747_v33, 2  ;;  %v1794_v37 = vrot.slane %v4492_v53, 4  ;;  %v1721_v36 = vmax.f32 %v1719_v56, %v1720_v46 }
 0x850   :  { %v1811_v26 = vsub.f32 %v4474_v35, %v1745_v48 }
 0x851   :  { %v1730_v34 = vrot.slane %v1729_v47, 2  ;;  %v1795_v31 = vmax.f32 %v4492_v53, %v1794_v37  ;;  %v1807_v42 = vsub.f32 %v4466_v2, %v1721_v36 }
 0x853   :  { %2543 = vmatpush.bf16.msra.mxu0 %v3448_v22  ;;  %v1712_v22 = vrot.slane %v1711_v38, 2  ;;  %v1731_v45 = vmax.f32 %v1729_v47, %v1730_v34  ;;  %v1789_v47 = vmax.f32 %v4490_v17, %v1788_v28  ;;  %v1755_v34 = vmax.f32 %v1753_v11, %v1754_v5 }
 0x854   :  { %v1796_v11 = vrot.slane %v1795_v31, 2  ;;  %v1739_v5 = vmax.f32 %v1737_v14, %v1738_v8  ;;  %v1824_v36 = vmul.f32 1.442695, %v1807_v42 }
 0x855   :  { %v1713_v49 = vmax.f32 %v1711_v38, %v1712_v22  ;;  %v1783_v22 = vmax.f32 %v4488_v52, %v1782_v60  ;;  %v1727_v60 = vmax.f32 %v1725_v54, %v1726_v39  ;;  %v1756_v28 = vrot.slane %v1755_v34, 1 }
 0x856   :  { %v1810_v14 = vsub.f32 %v4472_v29, %v1739_v5 }
 0x857   :  { %2544 = vmatpush.bf16.msra.mxu0 %v3447_v24  ;;  %v1758_v24 = vrot.slane %v4480_v41, 4  ;;  %v1714_v38 = vrot.slane %v1713_v49, 1  ;;  %v1784_v12 = vrot.slane %v1783_v22, 2  ;;  %v1808_v54 = vsub.f32 %v4468_v18, %v1727_v60 }
 0x858   :  { %v1757_v39 = vmax.f32 %v1755_v34, %v1756_v28  ;;  %v1830_v29 = vmul.f32 1.442695, %v1810_v14 }
 0x859   :  { %v1759_v57 = vmax.f32 %v4480_v41, %v1758_v24  ;;  %v1749_v24 = vmax.f32 %v1747_v33, %v1748_v44  ;;  %v1715_v15 = vmax.f32 %v1713_v49, %v1714_v38  ;;  %v1790_v44 = vrot.slane %v1789_v47, 2 }
 0x85a   :  { %v1779_v49 = vmax.f32 %v1777_v3, %v1778_v40  ;;  %v1802_v38 = vrot.slane %v1801_v1, 2  ;;  %v1785_v46 = vmax.f32 %v1783_v22, %v1784_v12  ;;  %v1826_v18 = vmul.f32 1.442695, %v1808_v54 }
 0x85b   :  { %2545 = vmatpush.bf16.msra.mxu0 %v3446_v63  ;;  %v1764_v63 = vrot.slane %v4482_v23, 4  ;;  %v1760_v30 = vrot.slane %v1759_v57, 2  ;;  %v1750_v6 = vrot.slane %v1749_v24, 1  ;;  %v1806_v37 = vsub.f32 %v4464_v0, %v1715_v15 }
 0x85c   :  { %v1780_v3 = vrot.slane %v1779_v49, 1  ;;  %v1786_v12 = vrot.slane %v1785_v46, 1 }
 0x85d   :  { %v1765_v43 = vmax.f32 %v4482_v23, %v1764_v63  ;;  %v1732_v63 = vrot.slane %v1731_v45, 1  ;;  %v1761_v27 = vmax.f32 %v1759_v57, %v1760_v30  ;;  %v1751_v57 = vmax.f32 %v1749_v24, %v1750_v6 }
 0x85e   :  { %v1822_v0 = vmul.f32 1.442695, %v1806_v37  ;;  %v1781_v34 = vmax.f32 %v1779_v49, %v1780_v3  ;;  %v1787_v48 = vmax.f32 %v1785_v46, %v1786_v12 }
 0x85f   :  { %v1766_v62 = vrot.slane %v1765_v43, 2  ;;  %v1733_v16 = vmax.f32 %v1731_v45, %v1732_v63  ;;  %v1762_v56 = vrot.slane %v1761_v27, 1  ;;  %v1803_v63 = vmax.f32 %v1801_v1, %v1802_v38 }
 0x860   :  { %v1812_v6 = vsub.f32 %v4476_v7, %v1751_v57  ;;  %3553 = vpow2.f32 %v1822_v0  ;;  %v1832_v1 = vmul.f32 1.442695, %v1811_v26  ;;  %v1818_v60 = vsub.f32 %v4488_v52, %v1787_v48 }
 0x861   :  { %v1767_v33 = vmax.f32 %v1765_v43, %v1766_v62  ;;  %v1791_v43 = vmax.f32 %v1789_v47, %v1790_v44  ;;  %v1809_v45 = vsub.f32 %v4470_v4, %v1733_v16  ;;  %v1797_v62 = vmax.f32 %v1795_v31, %v1796_v11 }
 0x862   :  { %v1763_v2 = vmax.f32 %v1761_v27, %v1762_v56  ;;  %v1813_v47 = vsub.f32 %v4478_v9, %v1757_v39  ;;  %v1775_v16 = vmax.f32 %v1773_v61, %v1774_v19  ;;  %v1804_v32 = vrot.slane %v1803_v63, 1 }
 0x863   :  { %v1768_v30 = vrot.slane %v1767_v33, 1  ;;  %v1792_v24 = vrot.slane %v1791_v43, 1  ;;  %v1828_v4 = vmul.f32 1.442695, %v1809_v45  ;;  %v1798_v31 = vrot.slane %v1797_v62, 1 }
 0x864   :  { %3555 = vpow2.f32 %v1824_v36  ;;  %v1814_v35 = vsub.f32 %v4480_v41, %v1763_v2  ;;  %v1834_v15 = vmul.f32 1.442695, %v1812_v6  ;;  %v1836_v40 = vmul.f32 1.442695, %v1813_v47 }
 0x865   :  { %v1769_v22 = vmax.f32 %v1767_v33, %v1768_v30  ;;  %3557 = vpow2.f32 %v1826_v18  ;;  %v1793_v7 = vmax.f32 %v1791_v43, %v1792_v24  ;;  %v1799_v9 = vmax.f32 %v1797_v62, %v1798_v31  ;;  %v4626_v24 = vld [vmem:[#allocation16 + $0x38] sm:$0xff] }
 0x866   :  { %3559 = vpow2.f32 %v1828_v4  ;;  %v1816_v61 = vsub.f32 %v4484_v58, %v1775_v16  ;;  %v1805_v59 = vmax.f32 %v1803_v63, %v1804_v32  ;;  %v1817_v27 = vsub.f32 %v4486_v20, %v1781_v34  ;;  %v4586_v44 = vpop.eup %3553  ;;  %2216 = vmatpush.bf16.msrb.mxu1 %v4626_v24 }
 0x867   :  { %v1815_v8 = vsub.f32 %v4482_v23, %v1769_v22  ;;  %3561 = vpow2.f32 %v1830_v29  ;;  %v1838_v33 = vmul.f32 1.442695, %v1814_v35  ;;  %v1819_v41 = vsub.f32 %v4490_v17, %v1793_v7 }
 0x868   :  { %3563 = vpow2.f32 %v1832_v1  ;;  %v1820_v11 = vsub.f32 %v4492_v53, %v1799_v9  ;;  %v1842_v5 = vmul.f32 1.442695, %v1816_v61  ;;  %v1821_v20 = vsub.f32 %v4494_v13, %v1805_v59 }
 0x869   :  { %3565 = vpow2.f32 %v1834_v15  ;;  %v1840_v28 = vmul.f32 1.442695, %v1815_v8  ;;  %v1844_v37 = vmul.f32 1.442695, %v1817_v27  ;;  %v1846_v52 = vmul.f32 1.442695, %v1818_v60 }
 0x86a   :  { %v4589_v23 = vpop.eup %3555  ;;  %3567 = vpow2.f32 %v1836_v40  ;;  %v1854_v38 = vrot.slane %v4586_v44, 4  ;;  %v1848_v17 = vmul.f32 1.442695, %v1819_v41  ;;  %v1850_v46 = vmul.f32 1.442695, %v1820_v11 }
 0x86b   :  { %v4592_v58 = vpop.eup %3557  ;;  %3569 = vpow2.f32 %v1838_v33  ;;  %v1860_v56 = vrot.slane %v4589_v23, 4  ;;  %v1852_v54 = vmul.f32 1.442695, %v1821_v20 }
 0x86c   :  { %v4595_v49 = vpop.eup %3559  ;;  %3571 = vpow2.f32 %v1840_v28  ;;  %v1866_v57 = vrot.slane %v4592_v58, 4  ;;  %v1855_v39 = vadd.f32 %v4586_v44, %v1854_v38 }
 0x86d   :  { %v4598_v42 = vpop.eup %3561  ;;  %3573 = vpow2.f32 %v1842_v5  ;;  %v1872_v30 = vrot.slane %v4595_v49, 4  ;;  %v1861_v19 = vadd.f32 %v4589_v23, %v1860_v56 }
 0x86e   :  { %v4601_v53 = vpop.eup %3563  ;;  %3575 = vpow2.f32 %v1844_v37  ;;  %v1878_v45 = vrot.slane %v4598_v42, 4  ;;  %v1867_v0 = vadd.f32 %v4592_v58, %v1866_v57  ;;  %v1856_v12 = vrot.slane %v1855_v39, 2 }
 0x86f   :  { %v4604_v13 = vpop.eup %3565  ;;  %3577 = vpow2.f32 %v1846_v52  ;;  %v1884_v62 = vrot.slane %v4601_v53, 4  ;;  %v1873_v26 = vadd.f32 %v4595_v49, %v1872_v30  ;;  %v1862_v22 = vrot.slane %v1861_v19, 2  ;;  %v4652_v30 = vld [vmem:[#allocation16 + $0x30] sm:$0xff] }
 0x870   :  { %v4607_v43 = vpop.eup %3567  ;;  %3579 = vpow2.f32 %v1848_v17  ;;  %v1890_v3 = vrot.slane %v4604_v13, 4  ;;  %v1879_v6 = vadd.f32 %v4598_v42, %v1878_v45  ;;  %v1868_v29 = vrot.slane %v1867_v0, 2  ;;  %5027 = vst [vmem:[#allocation36_spill] sm:$0xff] %v4652_v30  ;;  %2217 = vmatpush.bf16.msrb.mxu1 %v4652_v30 }
 0x871   :  { %v4613_v14 = vpop.eup %3569  ;;  %3581 = vpow2.f32 %v1850_v46  ;;  %v1896_v36 = vrot.slane %v4607_v43, 4  ;;  %v1885_v4 = vadd.f32 %v4601_v53, %v1884_v62  ;;  %v1874_v1 = vrot.slane %v1873_v26, 2 }
 0x872   :  { %v4617_v63 = vpop.eup %3571  ;;  %3583 = vpow2.f32 %v1852_v54  ;;  %v1902_v47 = vrot.slane %v4613_v14, 4  ;;  %v1891_v34 = vadd.f32 %v4604_v13, %v1890_v3  ;;  %v1857_v7 = vadd.f32 %v1856_v12, %v1855_v39 }
 0x873   :  { %v4621_v2 = vpop.eup %3573  ;;  %v1908_v31 = vrot.slane %v4617_v63, 4  ;;  %v1897_v48 = vadd.f32 %v4607_v43, %v1896_v36  ;;  %v1880_v8 = vrot.slane %v1879_v6, 2  ;;  %v1863_v61 = vadd.f32 %v1862_v22, %v1861_v19 }
 0x874   :  { %v4624_v18 = vpop.eup %3575  ;;  %v1914_v35 = vrot.slane %v4621_v2, 4  ;;  %v1903_v59 = vadd.f32 %v4613_v14, %v1902_v47  ;;  %v1886_v27 = vrot.slane %v1885_v4, 2  ;;  %v1869_v41 = vadd.f32 %v1868_v29, %v1867_v0 }
 0x875   :  { %v4630_v16 = vpop.eup %3577  ;;  %v1920_v40 = vrot.slane %v4624_v18, 4  ;;  %v1909_v33 = vadd.f32 %v4617_v63, %v1908_v31  ;;  %v1892_v28 = vrot.slane %v1891_v34, 2  ;;  %v1875_v5 = vadd.f32 %v1874_v1, %v1873_v26  ;;  %v4657_v26 = vld [vmem:[#allocation16 + $0x28] sm:$0xff] }
 0x876   :  { %v4634_v32 = vpop.eup %3579  ;;  %v1926_v60 = vrot.slane %v4630_v16, 4  ;;  %v1898_v20 = vrot.slane %v1897_v48, 2  ;;  %v1915_v37 = vadd.f32 %v4621_v2, %v1914_v35  ;;  %v1858_v38 = vrot.slane %v1857_v7, 1  ;;  %2218 = vmatpush.bf16.msrb.mxu1 %v4657_v26 }
 0x877   :  { %v4639_v15 = vpop.eup %3581  ;;  %v1932_v11 = vrot.slane %v4634_v32, 4  ;;  %v1881_v17 = vadd.f32 %v1880_v8, %v1879_v6  ;;  %v1921_v56 = vadd.f32 %v4624_v18, %v1920_v40  ;;  %v1864_v57 = vrot.slane %v1863_v61, 1 }
 0x878   :  { %v4642_v9 = vpop.eup %3583  ;;  %v1938_v52 = vrot.slane %v4639_v15, 4  ;;  %v1904_v54 = vrot.slane %v1903_v59, 2  ;;  %v1887_v39 = vadd.f32 %v1886_v27, %v1885_v4  ;;  %v1927_v45 = vadd.f32 %v4630_v16, %v1926_v60 }
 0x879   :  { %v1944_v46 = vrot.slane %v4642_v9, 4  ;;  %v1910_v19 = vrot.slane %v1909_v33, 2  ;;  %v1870_v62 = vrot.slane %v1869_v41, 1  ;;  %v1893_v0 = vadd.f32 %v1892_v28, %v1891_v34 }
 0x87a   :  { %v1933_v3 = vadd.f32 %v4634_v32, %v1932_v11  ;;  %v1876_v36 = vrot.slane %v1875_v5, 1  ;;  %v1899_v12 = vadd.f32 %v1898_v20, %v1897_v48  ;;  %v1916_v6 = vrot.slane %v1915_v37, 2  ;;  %v4662_v11 = vld [vmem:[#allocation16 + $0x20] sm:$0xff] }
 0x87b   :  { %v1939_v22 = vadd.f32 %v4639_v15, %v1938_v52  ;;  %v1859_v47 = vadd.f32 %v1858_v38, %v1857_v7  ;;  %v1882_v31 = vrot.slane %v1881_v17, 1  ;;  %v1922_v29 = vrot.slane %v1921_v56, 2  ;;  %2219 = vmatpush.bf16.msrb.mxu1 %v4662_v11 }
 0x87c   :  { %v1945_v4 = vadd.f32 %v4642_v9, %v1944_v46  ;;  %v1865_v1 = vadd.f32 %v1864_v57, %v1863_v61  ;;  %v1905_v35 = vadd.f32 %v1904_v54, %v1903_v59  ;;  %v1888_v8 = vrot.slane %v1887_v39, 1 }
 0x87d   :  { %v1928_v34 = vrot.slane %v1927_v45, 2  ;;  %v1911_v40 = vadd.f32 %v1910_v19, %v1909_v33  ;;  %v1871_v27 = vadd.f32 %v1870_v62, %v1869_v41  ;;  %v1894_v60 = vrot.slane %v1893_v0, 1  ;;  %v4665_v19 = vld [vmem:[#allocation16 + $0x18] sm:$0xff] }
 0x87e   :  { %v1934_v28 = vrot.slane %v1933_v3, 2  ;;  %v1877_v48 = vadd.f32 %v1876_v36, %v1875_v5  ;;  %v1900_v20 = vrot.slane %v1899_v12, 1  ;;  %v1917_v52 = vadd.f32 %v1916_v6, %v1915_v37 }
 0x87f   :  { %v1940_v7 = vrot.slane %v1939_v22, 2  ;;  %3585 = vrcp.f32 %v1859_v47  ;;  %v1883_v38 = vadd.f32 %v1882_v31, %v1881_v17  ;;  %v1923_v30 = vadd.f32 %v1922_v29, %v1921_v56  ;;  %2220 = vmatpush.bf16.msrb.mxu1 %v4665_v19 }
 0x880   :  { %v1946_v46 = vrot.slane %v1945_v4, 2  ;;  %3587 = vrcp.f32 %v1865_v1  ;;  %v1906_v61 = vrot.slane %v1905_v35, 1  ;;  %v1889_v59 = vadd.f32 %v1888_v8, %v1887_v39 }
 0x881   :  { %v1929_v57 = vadd.f32 %v1928_v34, %v1927_v45  ;;  %v1912_v33 = vrot.slane %v1911_v40, 1  ;;  %v1895_v41 = vadd.f32 %v1894_v60, %v1893_v0  ;;  %v1935_v54 = vadd.f32 %v1934_v28, %v1933_v3  ;;  %v4668_v3 = vld [vmem:[#allocation16 + $0x10] sm:$0xff]  ;;  %v4676_v60 = vld [vmem:[#allocation16 + $0x8] sm:$0xff] }
 0x882   :  { %3589 = vrcp.f32 %v1871_v27  ;;  %v1901_v5 = vadd.f32 %v1900_v20, %v1899_v12  ;;  %v1918_v62 = vrot.slane %v1917_v52, 1  ;;  %v1941_v37 = vadd.f32 %v1940_v7, %v1939_v22  ;;  %v4673_v27 = vld [vmem:[%s4966_s15] ss:$0 sm:$0xff] }
 0x883   :  { %3591 = vrcp.f32 %v1877_v48  ;;  %v1924_v36 = vrot.slane %v1923_v30, 1  ;;  %v1947_v17 = vadd.f32 %v1946_v46, %v1945_v4  ;;  %v1907_v56 = vadd.f32 %v1906_v61, %v1905_v35  ;;  %2221 = vmatpush.bf16.msrb.mxu1 %v4668_v3 }
 0x884   :  { %3593 = vrcp.f32 %v1883_v38  ;;  %v1930_v6 = vrot.slane %v1929_v57, 1  ;;  %v1913_v45 = vadd.f32 %v1912_v33, %v1911_v40  ;;  %v1936_v47 = vrot.slane %v1935_v54, 1 }
 0x885   :  { %3595 = vrcp.f32 %v1889_v59  ;;  %v3586_v39 = vpop.eup %3585  ;;  %v1919_v31 = vadd.f32 %v1918_v62, %v1917_v52  ;;  %v1942_v12 = vrot.slane %v1941_v37, 1  ;;  %v1925_v29 = vadd.f32 %v1924_v36, %v1923_v30 }
 0x886   :  { %3597 = vrcp.f32 %v1895_v41  ;;  %v3588_v0 = vpop.eup %3587  ;;  %v1948_v1 = vrot.slane %v1947_v17, 1  ;;  %v1931_v35 = vadd.f32 %v1930_v6, %v1929_v57  ;;  %v1937_v34 = vadd.f32 %v1936_v47, %v1935_v54  ;;  %v4689_v57 = vld [vmem:[#allocation16] sm:$0xff] }
 0x887   :  { %3599 = vrcp.f32 %v1901_v5  ;;  %v1943_v28 = vadd.f32 %v1942_v12, %v1941_v37  ;;  %v4679_v7 = vmul.f32 %v3586_v39, %v4586_v44  ;;  %v4682_v38 = vmul.f32 %v3588_v0, %v4589_v23  ;;  %2222 = vmatpush.bf16.msrb.mxu1 %v4676_v60 }
 0x888   :  { %v3590_v22 = vpop.eup %3589  ;;  %3601 = vrcp.f32 %v1907_v56  ;;  %v1949_v48 = vadd.f32 %v1948_v1, %v1947_v17 }
 0x889   :  { %v3592_v4 = vpop.eup %3591  ;;  %3603 = vrcp.f32 %v1913_v45  ;;  %v4685_v46 = vmul.f32 %v3590_v22, %v4592_v58 }
 0x88a   :  { %v3594_v8 = vpop.eup %3593  ;;  %3605 = vrcp.f32 %v1919_v31  ;;  %v4692_v33 = vmul.f32 %v3592_v4, %v4595_v49 }
 0x88b   :  { %v3596_v40 = vpop.eup %3595  ;;  %3607 = vrcp.f32 %v1925_v29  ;;  %v4695_v44 = vmul.f32 %v3594_v8, %v4598_v42  ;;  %2223 = vmatpush.bf16.msrb.mxu1 %v4689_v57 }
 0x88c   :  { %v3598_v30 = vpop.eup %3597  ;;  %3609 = vrcp.f32 %v1931_v35  ;;  %5028 = vst [vmem:[#allocation37_spill] sm:$0xff] %v4692_v33  ;;  %v4698_v41 = vmul.f32 %v3596_v40, %v4601_v53 }
 0x88d   :  { %v3600_v20 = vpop.eup %3599  ;;  %3611 = vrcp.f32 %v1937_v34  ;;  %5029 = vst [vmem:[#allocation38_spill] sm:$0xff] %v4695_v44  ;;  %v4701_v58 = vmul.f32 %v3598_v30, %v4604_v13 }
 0x88e   :  { %v3602_v61 = vpop.eup %3601  ;;  %3613 = vrcp.f32 %v1943_v28  ;;  %5030 = vst [vmem:[#allocation39_spill] sm:$0xff] %v4698_v41  ;;  %v4704_v54 = vmul.f32 %v3600_v20, %v4607_v43 }
 0x88f   :  { %v3604_v23 = vpop.eup %3603  ;;  %3615 = vrcp.f32 %v1949_v48  ;;  %5031 = vst [vmem:[#allocation40_spill] sm:$0xff] %v4701_v58  ;;  %2395 = vmatpush.bf16.msra.mxu1 %v4422_v50 }
 0x890   :  { %5032 = vst [vmem:[#allocation41_spill] sm:$0xff] %v4704_v54  ;;  %v3606_v5 = vpop.eup %3605 }
 0x891   :  { %v3608_v36 = vpop.eup %3607 }
 0x892   :  { %v3610_v43 = vpop.eup %3609 }
 0x893   :  { %v3612_v0 = vpop.eup %3611  ;;  %2396 = vmatpush.bf16.msra.mxu1 %v4431_v51 }
 0x894   :  { %v3614_v29 = vpop.eup %3613 }
 0x895   :  { %v3616_v34 = vpop.eup %3615 }
 0x897   :  { %2397 = vmatpush.bf16.msra.mxu1 %v4434_v55 }
 0x89b   :  { %2398 = vmatpush.bf16.msra.mxu1 %v4437_v21 }
 0x89f   :  { %2399 = vmatpush.bf16.msra.mxu1 %v4440_v10 }
 0x8a3   :  { %2400 = vmatpush.bf16.msra.mxu1 %v4443_v25 }
 0x8bb   :  { %v1641_v52 = vpop.f32.mrf.mxu0 }
 0x8bc   :  { %v1642_v59 = vadd.f32 %v4673_v27, %v1641_v52  ;;  %v4717_v52 = vmul.f32 %v3602_v61, %v4613_v14  ;;  %v4728_v14 = vmul.f32 %v3608_v36, %v4624_v18  ;;  %v4731_v61 = vmul.f32 %v3610_v43, %v4630_v16 }
 0x8be   :  { %v1982_v62 = vmul.f32 %v4679_v7, %v1642_v59  ;;  %v1983_v49 = vmul.f32 %v4682_v38, %v1642_v59  ;;  %v1984_v37 = vmul.f32 %v4685_v46, %v1642_v59  ;;  %v1985_v42 = vmul.f32 %v4692_v33, %v1642_v59  ;;  %5033 = vst [vmem:[#allocation42_spill] sm:$0xff] %v4728_v14 }
 0x8bf   :  { %v1986_v17 = vmul.f32 %v4695_v44, %v1642_v59  ;;  %v1987_v53 = vmul.f32 %v4698_v41, %v1642_v59  ;;  %v1988_v13 = vmul.f32 %v4701_v58, %v1642_v59  ;;  %v1989_v56 = vmul.f32 %v4704_v54, %v1642_v59  ;;  %5034 = vst [vmem:[#allocation43_spill] sm:$0xff] %v4731_v61 }
 0x8c0   :  { %v1998_v6 = vrot.slane %v1982_v62, 4  ;;  %v2004_v39 = vrot.slane %v1983_v49, 4  ;;  %v2010_v45 = vrot.slane %v1984_v37, 4  ;;  %v2016_v47 = vrot.slane %v1985_v42, 4 }
 0x8c1   :  { %v2022_v31 = vrot.slane %v1986_v17, 4  ;;  %v2028_v12 = vrot.slane %v1987_v53, 4  ;;  %v2034_v22 = vrot.slane %v1988_v13, 4  ;;  %v2040_v20 = vrot.slane %v1989_v56, 4 }
 0x8c2   :  { %v1999_v1 = vadd.f32 %v1998_v6, %v1982_v62  ;;  %v2005_v4 = vadd.f32 %v2004_v39, %v1983_v49  ;;  %v2011_v35 = vadd.f32 %v2010_v45, %v1984_v37  ;;  %v2017_v8 = vadd.f32 %v2016_v47, %v1985_v42 }
 0x8c3   :  { %v1643_v40 = vpop.f32.mrf.mxu0  ;;  %v2023_v28 = vadd.f32 %v2022_v31, %v1986_v17  ;;  %v2029_v30 = vadd.f32 %v2028_v12, %v1987_v53  ;;  %v2035_v48 = vadd.f32 %v2034_v22, %v1988_v13  ;;  %v4722_v49 = vmul.f32 %v3604_v23, %v4617_v63 }
 0x8c4   :  { %v2000_v59 = vrot.slane %v1999_v1, 2  ;;  %v2006_v54 = vrot.slane %v2005_v4, 2  ;;  %v2012_v58 = vrot.slane %v2011_v35, 2  ;;  %v2018_v41 = vrot.slane %v2017_v8, 2 }
 0x8c5   :  { %v2024_v44 = vrot.slane %v2023_v28, 2  ;;  %v2030_v50 = vrot.slane %v2029_v30, 2  ;;  %v2036_v33 = vrot.slane %v2035_v48, 2  ;;  %v1644_v62 = vadd.f32 %v4673_v27, %v1643_v40 }
 0x8c6   :  { %v4725_v37 = vmul.f32 %v3606_v5, %v4621_v2  ;;  %v4734_v42 = vmul.f32 %v3612_v0, %v4634_v32  ;;  %v4737_v17 = vmul.f32 %v3614_v29, %v4639_v15  ;;  %v2041_v51 = vadd.f32 %v2040_v20, %v1989_v56 }
 0x8c7   :  { %v4740_v53 = vmul.f32 %v3616_v34, %v4642_v9  ;;  %v2001_v63 = vadd.f32 %v2000_v59, %v1999_v1  ;;  %v2007_v23 = vadd.f32 %v2006_v54, %v2005_v4  ;;  %v4742_v2 = vadd.f32 %v2012_v58, %v2011_v35 }
 0x8c8   :  { %5035 = vst [vmem:[#allocation44_spill] sm:$0xff] %v4734_v42  ;;  %v4744_v5 = vadd.f32 %v2018_v41, %v2017_v8  ;;  %v4746_v18 = vadd.f32 %v2024_v44, %v2023_v28  ;;  %v4748_v16 = vadd.f32 %v2030_v50, %v2029_v30  ;;  %v4750_v36 = vadd.f32 %v2036_v33, %v2035_v48 }
 0x8c9   :  { %5036 = vst [vmem:[#allocation45_spill] sm:$0xff] %v4737_v17  ;;  %v1990_v32 = vmul.f32 %v4717_v52, %v1644_v62  ;;  %v1991_v15 = vmul.f32 %v4722_v49, %v1644_v62  ;;  %v1992_v9 = vmul.f32 %v4725_v37, %v1644_v62  ;;  %v1993_v54 = vmul.f32 %v4728_v14, %v1644_v62 }
 0x8ca   :  { %5037 = vst [vmem:[#allocation46_spill] sm:$0xff] %v4740_v53  ;;  %v1994_v58 = vmul.f32 %v4731_v61, %v1644_v62  ;;  %v1995_v41 = vmul.f32 %v4734_v42, %v1644_v62  ;;  %v1996_v44 = vmul.f32 %v4737_v17, %v1644_v62  ;;  %v2042_v13 = vrot.slane %v2041_v51, 2 }
 0x8cb   :  { %v1997_v33 = vmul.f32 %v4740_v53, %v1644_v62  ;;  %v2002_v56 = vrot.slane %v2001_v63, 1  ;;  %v2008_v43 = vrot.slane %v2007_v23, 1  ;;  %v2014_v55 = vrot.slane %v4742_v2, 1 }
 0x8cc   :  { %v2020_v6 = vrot.slane %v4744_v5, 1  ;;  %v2026_v39 = vrot.slane %v4746_v18, 1  ;;  %v2032_v45 = vrot.slane %v4748_v16, 1  ;;  %v2038_v47 = vrot.slane %v4750_v36, 1 }
 0x8cd   :  { %v2046_v0 = vrot.slane %v1990_v32, 4  ;;  %v2052_v31 = vrot.slane %v1991_v15, 4  ;;  %v2058_v12 = vrot.slane %v1992_v9, 4  ;;  %v2064_v22 = vrot.slane %v1993_v54, 4 }
 0x8ce   :  { %v2043_v29 = vadd.f32 %v2042_v13, %v2041_v51  ;;  %v2070_v1 = vrot.slane %v1994_v58, 4  ;;  %v2076_v4 = vrot.slane %v1995_v41, 4  ;;  %v2082_v35 = vrot.slane %v1996_v44, 4 }
 0x8cf   :  { %v2047_v8 = vadd.f32 %v2046_v0, %v1990_v32  ;;  %v2053_v34 = vadd.f32 %v2052_v31, %v1991_v15  ;;  %v2059_v40 = vadd.f32 %v2058_v12, %v1992_v9  ;;  %v2065_v28 = vadd.f32 %v2064_v22, %v1993_v54 }
 0x8d0   :  { %v2071_v30 = vadd.f32 %v2070_v1, %v1994_v58  ;;  %v2077_v48 = vadd.f32 %v2076_v4, %v1995_v41  ;;  %v2083_v20 = vadd.f32 %v2082_v35, %v1996_v44  ;;  %v2088_v59 = vrot.slane %v1997_v33, 4 }
 0x8d1   :  { %v2048_v50 = vrot.slane %v2047_v8, 2  ;;  %v2054_v21 = vrot.slane %v2053_v34, 2  ;;  %v2060_v62 = vrot.slane %v2059_v40, 2  ;;  %v2066_v53 = vrot.slane %v2065_v28, 2 }
 0x8d2   :  { %v2072_v17 = vrot.slane %v2071_v30, 2  ;;  %v2078_v42 = vrot.slane %v2077_v48, 2  ;;  %v2084_v51 = vrot.slane %v2083_v20, 2  ;;  %v2089_v13 = vadd.f32 %v2088_v59, %v1997_v33 }
 0x8d3   :  { %v2049_v61 = vadd.f32 %v2048_v50, %v2047_v8  ;;  %v2055_v14 = vadd.f32 %v2054_v21, %v2053_v34  ;;  %v2061_v32 = vadd.f32 %v2060_v62, %v2059_v40  ;;  %v2067_v15 = vadd.f32 %v2066_v53, %v2065_v28  ;;  %v5038_v28 = vld [vmem:[#allocation31_spill] sm:$0xff] }
 0x8d4   :  { %v2073_v9 = vadd.f32 %v2072_v17, %v2071_v30  ;;  %v2079_v54 = vadd.f32 %v2078_v42, %v2077_v48  ;;  %v2085_v58 = vadd.f32 %v2084_v51, %v2083_v20  ;;  %v2090_v41 = vrot.slane %v2089_v13, 2  ;;  %2401 = vmatpush.bf16.msra.mxu1 %v5038_v28  ;;  %v5039_v51 = vld [vmem:[#allocation32_spill] sm:$0xff] }
 0x8d5   :  { %v2003_v44 = vadd.f32 %v2002_v56, %v2001_v63  ;;  %v2050_v10 = vrot.slane %v2049_v61, 1  ;;  %v2056_v0 = vrot.slane %v2055_v14, 1  ;;  %v2062_v31 = vrot.slane %v2061_v32, 1 }
 0x8d6   :  { %v2009_v12 = vadd.f32 %v2008_v43, %v2007_v23  ;;  %v2044_v22 = vrot.slane %v2043_v29, 1  ;;  %v2068_v1 = vrot.slane %v2067_v15, 1  ;;  %v2091_v4 = vadd.f32 %v2090_v41, %v2089_v13 }
 0x8d7   :  { %v2015_v33 = vadd.f32 %v2014_v55, %v4742_v2  ;;  %v2051_v35 = vadd.f32 %v2050_v10, %v2049_v61  ;;  %v2057_v8 = vadd.f32 %v2056_v0, %v2055_v14  ;;  %v2074_v34 = vrot.slane %v2073_v9, 1 }
 0x8d8   :  { %v2063_v53 = vadd.f32 %v2062_v31, %v2061_v32  ;;  %v2080_v17 = vrot.slane %v2079_v54, 1  ;;  %v2086_v42 = vrot.slane %v2085_v58, 1  ;;  %v2092_v40 = vrot.slane %v2091_v4, 1  ;;  %2402 = vmatpush.bf16.msra.mxu1 %v5039_v51  ;;  %v4810_v51 = vld [vmem:[#allocation17 + $0x30] sm:$0xff] }
 0x8d9   :  { %v2021_v25 = vadd.f32 %v2020_v6, %v4744_v5  ;;  %v2027_v63 = vadd.f32 %v2026_v39, %v4746_v18  ;;  %v2033_v23 = vadd.f32 %v2032_v45, %v4748_v16  ;;  %v2039_v56 = vadd.f32 %v2038_v47, %v4750_v36 }
 0x8da   :  { %v2045_v43 = vadd.f32 %v2044_v22, %v2043_v29  ;;  %v2069_v30 = vadd.f32 %v2068_v1, %v2067_v15  ;;  %v2094_v2 = vpack.c.bf16 %v2003_v44, %v2003_v44  ;;  %v2095_v61 = vpack.c.bf16 %v2009_v12, %v2009_v12 }
 0x8db   :  { %v2075_v14 = vadd.f32 %v2074_v34, %v2073_v9  ;;  %v2096_v55 = vpack.c.bf16 %v2015_v33, %v2015_v33  ;;  %v2102_v48 = vpack.c.bf16 %v2051_v35, %v2051_v35  ;;  %v2103_v20 = vpack.c.bf16 %v2057_v8, %v2057_v8 }
 0x8dc   :  { %v2081_v59 = vadd.f32 %v2080_v17, %v2079_v54  ;;  %v2087_v50 = vadd.f32 %v2086_v42, %v2085_v58  ;;  %v2093_v21 = vadd.f32 %v2092_v40, %v2091_v4  ;;  %v2104_v62 = vpack.c.bf16 %v2063_v53, %v2063_v53 }
 0x8dd   :  { %v2097_v5 = vpack.c.bf16 %v2021_v25, %v2021_v25  ;;  %v2098_v18 = vpack.c.bf16 %v2027_v63, %v2027_v63  ;;  %v2099_v6 = vpack.c.bf16 %v2033_v23, %v2033_v23  ;;  %v2100_v16 = vpack.c.bf16 %v2039_v56, %v2039_v56 }
 0x8de   :  { %v2101_v39 = vpack.c.bf16 %v2045_v43, %v2045_v43  ;;  %v2105_v36 = vpack.c.bf16 %v2069_v30, %v2069_v30  ;;  %v2129_v45 = vunpack.c.l.b16 %v2094_v2  ;;  %v2130_v47 = vunpack.c.l.b16 %v2095_v61 }
 0x8df   :  { %v2106_v29 = vpack.c.bf16 %v2075_v14, %v2075_v14  ;;  %v2131_v13 = vunpack.c.l.b16 %v2096_v55  ;;  %v2137_v32 = vunpack.c.l.b16 %v2102_v48  ;;  %v2138_v15 = vunpack.c.l.b16 %v2103_v20  ;;  %v5040_v14 = vld [vmem:[#allocation36_spill] sm:$0xff]  ;;  %v4801_v48 = vld [vmem:[%s4968_s17] ss:$0 sm:$0xff] }
 0x8e0   :  { %v2107_v9 = vpack.c.bf16 %v2081_v59, %v2081_v59  ;;  %v2108_v41 = vpack.c.bf16 %v2087_v50, %v2087_v50  ;;  %v2109_v54 = vpack.c.bf16 %v2093_v21, %v2093_v21  ;;  %v2139_v58 = vunpack.c.l.b16 %v2104_v62 }
 0x8e1   :  { %v2132_v44 = vunpack.c.l.b16 %v2097_v5  ;;  %v2133_v10 = vunpack.c.l.b16 %v2098_v18  ;;  %v2134_v0 = vunpack.c.l.b16 %v2099_v6  ;;  %v2146_v31 = vsel %vm2145_vm7, %v2130_v47, %v2129_v45  ;;  %v4813_v6 = vld [vmem:[#allocation17 + $0x28] sm:$0xff]  ;;  %v4817_v45 = vld [vmem:[#allocation17 + $0x20] sm:$0xff] }
 0x8e2   :  { %v2140_v12 = vunpack.c.l.b16 %v2105_v36  ;;  %v2148_v22 = vsel %vm2147_vm8, %v2131_v13, %v2146_v31  ;;  %v2159_v1 = vsel %vm2145_vm7, %v2138_v15, %v2137_v32  ;;  %v2141_v4 = vunpack.c.l.b16 %v2106_v29  ;;  %v4820_v15 = vld [vmem:[#allocation17 + $0x18] sm:$0xff]  ;;  %v4829_v31 = vld [vmem:[#allocation17] sm:$0xff] }
 0x8e3   :  { %v2150_v33 = vsel %vm2149_vm9, %v2132_v44, %v2148_v22  ;;  %v2160_v35 = vsel %vm2147_vm8, %v2139_v58, %v2159_v1  ;;  %v2135_v8 = vunpack.c.l.b16 %v2100_v16  ;;  %v2142_v34 = vunpack.c.l.b16 %v2107_v9  ;;  %v4826_v44 = vld [vmem:[#allocation17 + $0x8] sm:$0xff] }
 0x8e4   :  { %v2152_v53 = vsel %vm2151_vm10, %v2133_v10, %v2150_v33  ;;  %v2161_v17 = vsel %vm2149_vm9, %v2140_v12, %v2160_v35  ;;  %v2143_v42 = vunpack.c.l.b16 %v2108_v41  ;;  %v2136_v25 = vunpack.c.l.b16 %v2101_v39  ;;  %v5043_v39 = vld [vmem:[#allocation28_spill] sm:$0xff] }
 0x8e5   :  { %v2154_v40 = vsel %vm2153_vm11, %v2134_v0, %v2152_v53  ;;  %v2162_v28 = vsel %vm2151_vm10, %v2141_v4, %v2161_v17  ;;  %v2144_v63 = vunpack.c.l.b16 %v2109_v54  ;;  %v4823_v54 = vld [vmem:[#allocation17 + $0x10] sm:$0xff] }
 0x8e6   :  { %v2156_v23 = vsel %vm2155_vm12, %v2135_v8, %v2154_v40  ;;  %v2163_v56 = vsel %vm2153_vm11, %v2142_v34, %v2162_v28 }
 0x8e7   :  { %v2164_v43 = vsel %vm2155_vm12, %v2143_v42, %v2163_v56  ;;  %v2158_v30 = vsel %vm2157_vm13, %v2136_v25, %v2156_v23  ;;  %v4836_v23 = vld [vmem:[%s4970_s19] ss:$0 sm:$0xff] }
 0x8e8   :  { %v2165_v2 = vsel %vm2157_vm13, %v2144_v63, %v2164_v43 }
 0x8e9   :  { %v2166_v61 = vpack.c.b16 %v2165_v2, %v2158_v30 }
 0x8eb   :  { %2224 = vmatmul.bf16.vlgmr.msrb.gmra.mxu1 %v2166_v61 }
 0x8ec   :  { %2728 = vmatpush.bf16.msrb.mxu1 %v4626_v24 }
 0x8f0   :  { %2729 = vmatpush.bf16.msrb.mxu1 %v5040_v14 }
 0x8f4   :  { %2730 = vmatpush.bf16.msrb.mxu1 %v4657_v26 }
 0x8f8   :  { %2731 = vmatpush.bf16.msrb.mxu1 %v4662_v11  ;;  %v5041_v11 = vld [vmem:[#allocation34_spill] sm:$0xff] }
 0x8fc   :  { %2732 = vmatpush.bf16.msrb.mxu1 %v4665_v19  ;;  %v5042_v19 = vld [vmem:[#allocation35_spill] sm:$0xff] }
 0x900   :  { %2733 = vmatpush.bf16.msrb.mxu1 %v4668_v3 }
 0x904   :  { %2734 = vmatpush.bf16.msrb.mxu1 %v4676_v60  ;;  %v4807_v60 = vld [vmem:[#allocation17 + $0x38] sm:$0xff] }
 0x905   :  { %2317 = vmatpush.bf16.msrb.mxu2 %v4807_v60 }
 0x908   :  { %2735 = vmatpush.bf16.msrb.mxu1 %v4689_v57 }
 0x909   :  { %2318 = vmatpush.bf16.msrb.mxu2 %v4810_v51 }
 0x90d   :  { %2319 = vmatpush.bf16.msrb.mxu2 %v4813_v6 }
 0x911   :  { %2320 = vmatpush.bf16.msrb.mxu2 %v4817_v45 }
 0x915   :  { %2321 = vmatpush.bf16.msrb.mxu2 %v4820_v15 }
 0x919   :  { %2322 = vmatpush.bf16.msrb.mxu2 %v4823_v54 }
 0x91d   :  { %2323 = vmatpush.bf16.msrb.mxu2 %v4826_v44 }
 0x921   :  { %2324 = vmatpush.bf16.msrb.mxu2 %v4829_v31 }
 0x968   :  { %v2225_v55 = vpop.f32.mrf.mxu1 }
 0x969   :  { %v2226_v24 = vadd.f32 %v4801_v48, %v2225_v55 }
 0x96b   :  { %v2230_v59 = vadd.f32 %v2226_v24, %v5041_v11 }
 0x970   :  { %v2227_v20 = vpop.f32.mrf.mxu1 }
 0x971   :  { %v2228_v26 = vadd.f32 %v4801_v48, %v2227_v20 }
 0x973   :  { %v2231_v50 = vadd.f32 %v2228_v26, %v5042_v19 }
 0x975   :  { %v2232_v3 = vadd.f32 %v2231_v50, %v2230_v59 }
 0x977   :  { %v2233_v21 = vrot.slane %v2232_v3, 4 }
 0x979   :  { %v2234_v57 = vadd.f32 %v2233_v21, %v2232_v3 }
 0x97b   :  { %v2235_v62 = vrot.slane %v2234_v57, 2 }
 0x97d   :  { %v2236_v5 = vadd.f32 %v2235_v62, %v2234_v57 }
 0x97f   :  { %v2237_v18 = vrot.slane %v2236_v5, 1 }
 0x981   :  { %v2238_v16 = vadd.f32 %v2237_v18, %v2236_v5 }
 0x983   :  { %v2239_v36 = vmul.f32 %v2238_v16, %v5043_v39 }
 0x985   :  { %v2240_v47 = vsub.f32 %v2230_v59, %v2239_v36  ;;  %v2241_v29 = vsub.f32 %v2231_v50, %v2239_v36 }
 0x987   :  { %v2242_v13 = vmul.f32 %v2240_v47, %v2240_v47  ;;  %v2243_v32 = vmul.f32 %v2241_v29, %v2241_v29 }
 0x989   :  { %v2244_v9 = vadd.f32 %v2243_v32, %v2242_v13 }
 0x98b   :  { %v2245_v41 = vrot.slane %v2244_v9, 4 }
 0x98d   :  { %v2246_v58 = vadd.f32 %v2245_v41, %v2244_v9 }
 0x98f   :  { %v2247_v10 = vrot.slane %v2246_v58, 2 }
 0x991   :  { %v2248_v0 = vadd.f32 %v2247_v10, %v2246_v58 }
 0x993   :  { %v2249_v12 = vrot.slane %v2248_v0, 1 }
 0x995   :  { %v2250_v22 = vadd.f32 %v2249_v12, %v2248_v0 }
 0x997   :  { %v2251_v1 = vmul.f32 %v2250_v22, %v5043_v39 }
 0x999   :  { %v2252_v4 = vadd.f32 1e-05, %v2251_v1 }
 0x99b   :  { %3617 = vrsqrt.f32 %v2252_v4  ;;  %vm2259_vm15 = vweird.f32 %v2252_v4 }
 0x9a1   :  { %v3618_v33 = vpop.eup %3617 }
 0x9a2   :  { %v2254_v35 = vmul.f32 %v3618_v33, %v2252_v4  ;;  %vm2260_vm14 = vweird.f32 %v3618_v33 }
 0x9a3   :  { %vm2261_vm0 = vmor %vm2259_vm15, %vm2260_vm14 }
 0x9a4   :  { %v2255_v8 = vmul.f32 %v3618_v33, %v2254_v35 }
 0x9a6   :  { %v2256_v34 = vmul.f32 0.5, %v2255_v8  ;;  %v5044_v8 = vld [vmem:[#allocation29_spill] sm:$0xff] }
 0x9a8   :  { %v2257_v53 = vsub.f32 1.5, %v2256_v34 }
 0x9aa   :  { %v2258_v17 = vmul.f32 %v3618_v33, %v2257_v53 }
 0x9ac   :  { %v2262_v42 = vsel %vm2261_vm0, %v3618_v33, %v2258_v17  ;;  %v5045_v17 = vld [vmem:[#allocation33_spill] sm:$0xff] }
 0x9ad   :  { %v2263_v40 = vmul.f32 %v2262_v42, %v2240_v47  ;;  %v2264_v28 = vmul.f32 %v2262_v42, %v2241_v29 }
 0x9af   :  { %v2265_v25 = vpack.c.bf16 %v2264_v28, %v2263_v40 }
 0x9b1   :  { %2325 = vmatmul.bf16.vlgmr.msrb.gmra.mxu2 %v2265_v25 }
 0xa34   :  { %v2326_v63 = vpop.f32.mrf.mxu2 }
 0xa35   :  { %v2327_v56 = vadd.f32 %v4836_v23, %v2326_v63 }
 0xa37   :  { %v2331_v2 = vadd.f32 %v2327_v56, %v2263_v40 }
 0xa3c   :  { %v2328_v43 = vpop.f32.mrf.mxu2 }
 0xa3d   :  { %v2329_v30 = vadd.f32 %v4836_v23, %v2328_v43  ;;  %v5046_v43 = vld [vmem:[#allocation30_spill] sm:$0xff] }
 0xa3f   :  { %v2332_v61 = vadd.f32 %v2329_v30, %v2264_v28 }
 0xa41   :  { %v2333_v14 = vadd.f32 %v2332_v61, %v2331_v2 }
 0xa43   :  { %v2334_v55 = vrot.slane %v2333_v14, 4 }
 0xa45   :  { %v2335_v24 = vadd.f32 %v2334_v55, %v2333_v14 }
 0xa47   :  { %v2336_v20 = vrot.slane %v2335_v24, 2 }
 0xa49   :  { %v2337_v26 = vadd.f32 %v2336_v20, %v2335_v24 }
 0xa4b   :  { %v2338_v11 = vrot.slane %v2337_v26, 1 }
 0xa4d   :  { %v2339_v59 = vadd.f32 %v2338_v11, %v2337_v26 }
 0xa4f   :  { %v2340_v19 = vmul.f32 %v2339_v59, %v5043_v39 }
 0xa51   :  { %v2341_v50 = vsub.f32 %v2331_v2, %v2340_v19  ;;  %v2342_v3 = vsub.f32 %v2332_v61, %v2340_v19 }
 0xa53   :  { %v2343_v21 = vmul.f32 %v2341_v50, %v2341_v50  ;;  %v2344_v57 = vmul.f32 %v2342_v3, %v2342_v3 }
 0xa55   :  { %v2345_v62 = vadd.f32 %v2344_v57, %v2343_v21 }
 0xa57   :  { %v2346_v5 = vrot.slane %v2345_v62, 4 }
 0xa59   :  { %v2347_v18 = vadd.f32 %v2346_v5, %v2345_v62 }
 0xa5b   :  { %v2348_v16 = vrot.slane %v2347_v18, 2 }
 0xa5d   :  { %v2349_v36 = vadd.f32 %v2348_v16, %v2347_v18 }
 0xa5f   :  { %v2350_v47 = vrot.slane %v2349_v36, 1 }
 0xa61   :  { %v2351_v29 = vadd.f32 %v2350_v47, %v2349_v36 }
 0xa63   :  { %v2352_v13 = vmul.f32 %v2351_v29, %v5043_v39 }
 0xa65   :  { %v2353_v32 = vadd.f32 1e-05, %v2352_v13 }
 0xa67   :  { %3619 = vrsqrt.f32 %v2353_v32  ;;  %vm2360_vm2 = vweird.f32 %v2353_v32 }
 0xa6d   :  { %v3620_v9 = vpop.eup %3619 }
 0xa6e   :  { %v2355_v41 = vmul.f32 %v3620_v9, %v2353_v32  ;;  %vm2361_vm1 = vweird.f32 %v3620_v9 }
 0xa6f   :  { %vm2362_vm5 = vmor %vm2360_vm2, %vm2361_vm1 }
 0xa70   :  { %v2356_v58 = vmul.f32 %v3620_v9, %v2355_v41 }
 0xa72   :  { %v2357_v10 = vmul.f32 0.5, %v2356_v58 }
 0xa74   :  { %v2358_v0 = vsub.f32 1.5, %v2357_v10 }
 0xa76   :  { %v2359_v12 = vmul.f32 %v3620_v9, %v2358_v0 }
 0xa78   :  { %v2363_v22 = vsel %vm2362_vm5, %v3620_v9, %v2359_v12 }
 0xa79   :  { %v4842_v1 = vmul.f32 %v2363_v22, %v2341_v50  ;;  %v4844_v4 = vmul.f32 %v2363_v22, %v2342_v3 }
 0xa7b   :  { %v2366_v33 = vpack.c.bf16 %v4844_v4, %v4842_v1 }
 0xa7d   :  { %2375 = vmatmul.bf16.vlgmr.msrb.gmra.mxu3 %v2366_v33  ;;  %2389 = vmatmul.bf16.vlgmr.msrb.gmra.mxu0 %v2366_v33 }
 0xa7e   :  { %2403 = vmatmul.bf16.vlgmr.msra.gmra.mxu1 %v2366_v33 }
 0xafa   :  { %v2390_v35 = vpop.f32.mrf.mxu0 }
 0xafb   :  { %v2391_v34 = vadd.f32 %v2390_v35, %v5044_v8  ;;  %v2404_v53 = vpop.f32.mrf.mxu1 }
 0xafc   :  { %v2405_v42 = vadd.f32 %v2404_v53, %v5045_v17 }
 0xafd   :  { %v2410_v40 = vmax.f32 %v2391_v34, 0.0 }
 0xafe   :  { %v2411_v28 = vmax.f32 %v2405_v42, 0.0 }
 0xaff   :  { %v2417_v25 = vpack.c.bf16 %v2410_v40, %v2410_v40 }
 0xb00   :  { %v2462_v63 = vpack.c.bf16 %v2411_v28, %v2411_v28  ;;  %v2376_v56 = vpop.f32.mrf.mxu3 }
 0xb01   :  { %v2377_v30 = vadd.f32 %v2376_v56, %v5046_v43  ;;  %2426 = vmatpush.bf16.xpose.msra.mxu2 %v2417_v25 }
 0xb02   :  { %v2392_v2 = vpop.f32.mrf.mxu0  ;;  %v2468_v61 = vsel %vm621_vm3, %v2462_v63, 0 }
 0xb03   :  { %v2409_v14 = vmax.f32 %v2377_v30, 0.0  ;;  %v2393_v55 = vadd.f32 %v2392_v2, %v5044_v8  ;;  %v2406_v24 = vpop.f32.mrf.mxu1 }
 0xb04   :  { %v2407_v20 = vadd.f32 %v2406_v24, %v5045_v17 }
 0xb05   :  { %v2415_v26 = vpack.c.bf16 %v2409_v14, %v2409_v14  ;;  %v2413_v11 = vmax.f32 %v2393_v55, 0.0 }
 0xb06   :  { %v2414_v59 = vmax.f32 %v2407_v20, 0.0 }
 0xb07   :  { %v2418_v19 = vpack.c.bf16 %v2413_v11, %v2413_v11 }
 0xb08   :  { %v2463_v50 = vpack.c.bf16 %v2414_v59, %v2414_v59  ;;  %v2378_v3 = vpop.f32.mrf.mxu3  ;;  %2427 = vmatmul.bf16.vlgmr.msra.gmra.mxu2 %v2415_v26 }
 0xb09   :  { %2477 = vmatpush.bf16.msrb.mxu2 %v2468_v61  ;;  %v2379_v21 = vadd.f32 %v2378_v3, %v5046_v43  ;;  %2439 = vmatpush.bf16.xpose.msra.mxu3 %v2418_v19 }
 0xb0a   :  { %v2487_v57 = vsel %vm621_vm3, %v2463_v50, 0 }
 0xb0b   :  { %v2412_v62 = vmax.f32 %v2379_v21, 0.0 }
 0xb0d   :  { %2778 = vmatpush.bf16.msra.mxu2 %v4807_v60  ;;  %v2416_v5 = vpack.c.bf16 %v2412_v62, %v2412_v62 }
 0xb10   :  { %2440 = vmatmul.bf16.vlgmr.msra.gmra.mxu3 %v2416_v5 }
 0xb11   :  { %2496 = vmatpush.bf16.msrb.mxu3 %v2487_v57  ;;  %2779 = vmatpush.bf16.msra.mxu2 %v4810_v51 }
 0xb15   :  { %2780 = vmatpush.bf16.msra.mxu2 %v4813_v6 }
 0xb19   :  { %2781 = vmatpush.bf16.msra.mxu2 %v4817_v45 }
 0xb1d   :  { %2782 = vmatpush.bf16.msra.mxu2 %v4820_v15 }
 0xb21   :  { %2783 = vmatpush.bf16.msra.mxu2 %v4823_v54 }
 0xb25   :  { %2784 = vmatpush.bf16.msra.mxu2 %v4826_v44 }
 0xb29   :  { %2785 = vmatpush.bf16.msra.mxu2 %v4829_v31 }
 0xb8b   :  { %v2428_v60 = vpop.f32.mrf.mxu2 }
 0xb8c   :  { %v2445_v36 = vsel %vm598_vm4, %v2428_v60, -inf }
 0xb93   :  { %v2430_v18 = vpop.f32.mrf.mxu2  ;;  %v2441_v16 = vpop.f32.mrf.mxu3 }
 0xb94   :  { %v2446_v51 = vsel %vm598_vm4, %v2441_v16, -inf }
 0xb95   :  { %v2447_v47 = vmax.f32 %v2445_v36, %v2446_v51 }
 0xb97   :  { %v2448_v29 = vsub.f32 %v2428_v60, %v2447_v47  ;;  %v2449_v6 = vsub.f32 %v2441_v16, %v2447_v47 }
 0xb99   :  { %v2450_v13 = vmul.f32 1.442695, %v2448_v29  ;;  %v2452_v45 = vmul.f32 1.442695, %v2449_v6 }
 0xb9b   :  { %3621 = vpow2.f32 %v2450_v13  ;;  %v2443_v15 = vpop.f32.mrf.mxu3 }
 0xb9c   :  { %3623 = vpow2.f32 %v2452_v45  ;;  %v5047_v45 = vld [vmem:[#allocation37_spill] sm:$0xff] }
 0xba1   :  { %v3622_v54 = vpop.eup %3621 }
 0xba2   :  { %v3624_v32 = vpop.eup %3623  ;;  %v2454_v44 = vsel %vm598_vm4, %v3622_v54, 0.0 }
 0xba3   :  { %v2455_v31 = vsel %vm598_vm4, %v3624_v32, 0.0 }
 0xba4   :  { %v2456_v9 = vadd.f32 %v2455_v31, %v2454_v44  ;;  %v5049_v44 = vld [vmem:[#allocation39_spill] sm:$0xff] }
 0xba6   :  { %3625 = vrcp.f32 %v2456_v9  ;;  %v5050_v9 = vld [vmem:[#allocation40_spill] sm:$0xff] }
 0xbac   :  { %v3626_v41 = vpop.eup %3625 }
 0xbad   :  { %v2459_v58 = vmul.f32 %v3626_v41, %v3624_v32  ;;  %v2458_v10 = vmul.f32 %v3626_v41, %v3622_v54  ;;  %v5048_v54 = vld [vmem:[#allocation38_spill] sm:$0xff] }
 0xbaf   :  { %v2461_v0 = vpack.c.bf16 %v2459_v58, %v2459_v58  ;;  %v2460_v12 = vpack.c.bf16 %v2458_v10, %v2458_v10  ;;  %v5051_v58 = vld [vmem:[#allocation41_spill] sm:$0xff] }
 0xbb1   :  { %3356 = vmatmul.msk.bf16.vlgmr.msrb.gmra.mxu2 %vm598_vm4, %v2460_v12  ;;  %3357 = vmatmul.msk.bf16.vlgmr.msrb.gmra.mxu3 %vm598_vm4, %v2461_v0 }
 0xc34   :  { %v2479_v22 = vpop.f32.mrf.mxu2  ;;  %v2498_v33 = vpop.f32.mrf.mxu3 }
 0xc35   :  { %v2502_v35 = vadd.f32 %v2479_v22, %v4842_v1  ;;  %v2503_v8 = vadd.f32 %v2498_v33, %v4844_v4 }
 0xc37   :  { %v2504_v34 = vadd.f32 %v2503_v8, %v2502_v35 }
 0xc39   :  { %v2505_v53 = vrot.slane %v2504_v34, 4 }
 0xc3b   :  { %v2506_v17 = vadd.f32 %v2505_v53, %v2504_v34 }
 0xc3c   :  { %v2481_v42 = vpop.f32.mrf.mxu2  ;;  %v2500_v40 = vpop.f32.mrf.mxu3 }
 0xc3d   :  { %v2507_v28 = vrot.slane %v2506_v17, 2 }
 0xc3f   :  { %v2508_v25 = vadd.f32 %v2507_v28, %v2506_v17 }
 0xc41   :  { %v2509_v63 = vrot.slane %v2508_v25, 1 }
 0xc43   :  { %v2510_v56 = vadd.f32 %v2509_v63, %v2508_v25 }
 0xc45   :  { %v2511_v43 = vmul.f32 %v2510_v56, %v5043_v39 }
 0xc47   :  { %v2512_v30 = vsub.f32 %v2502_v35, %v2511_v43  ;;  %v2513_v2 = vsub.f32 %v2503_v8, %v2511_v43 }
 0xc49   :  { %v2514_v61 = vmul.f32 %v2512_v30, %v2512_v30  ;;  %v2515_v14 = vmul.f32 %v2513_v2, %v2513_v2 }
 0xc4b   :  { %v2516_v55 = vadd.f32 %v2515_v14, %v2514_v61 }
 0xc4d   :  { %v2517_v24 = vrot.slane %v2516_v55, 4 }
 0xc4f   :  { %v2518_v1 = vadd.f32 %v2517_v24, %v2516_v55 }
 0xc51   :  { %v2519_v20 = vrot.slane %v2518_v1, 2 }
 0xc53   :  { %v2520_v4 = vadd.f32 %v2519_v20, %v2518_v1 }
 0xc55   :  { %v2521_v26 = vrot.slane %v2520_v4, 1 }
 0xc57   :  { %v2522_v11 = vadd.f32 %v2521_v26, %v2520_v4 }
 0xc59   :  { %v2523_v59 = vmul.f32 %v2522_v11, %v5043_v39 }
 0xc5b   :  { %v2524_v19 = vadd.f32 1e-05, %v2523_v59 }
 0xc5d   :  { %3627 = vrsqrt.f32 %v2524_v19  ;;  %vm2531_vm4 = vweird.f32 %v2524_v19 }
 0xc63   :  { %v3628_v50 = vpop.eup %3627 }
 0xc64   :  { %v2526_v3 = vmul.f32 %v3628_v50, %v2524_v19  ;;  %vm2532_vm3 = vweird.f32 %v3628_v50 }
 0xc65   :  { %vm2533_vm6 = vmor %vm2531_vm4, %vm2532_vm3 }
 0xc66   :  { %v2527_v21 = vmul.f32 %v3628_v50, %v2526_v3 }
 0xc68   :  { %v2528_v57 = vmul.f32 0.5, %v2527_v21 }
 0xc6a   :  { %v2529_v62 = vsub.f32 1.5, %v2528_v57 }
 0xc6c   :  { %v2530_v5 = vmul.f32 %v3628_v50, %v2529_v62  ;;  %v5053_v62 = vld [vmem:[#allocation43_spill] sm:$0xff] }
 0xc6e   :  { %v2534_v60 = vsel %vm2533_vm6, %v3628_v50, %v2530_v5 }
 0xc6f   :  { %v4874_v18 = vmul.f32 %v2534_v60, %v2512_v30  ;;  %v4876_v16 = vmul.f32 %v2534_v60, %v2513_v2  ;;  %v5054_v60 = vld [vmem:[#allocation44_spill] sm:$0xff] }
 0xc71   :  { %v2537_v36 = vpack.c.bf16 %v4876_v16, %v4874_v18 }
 0xc73   :  { %2546 = vmatmul.bf16.vlgmr.msra.gmra.mxu0 %v2537_v36 }
 0xcf0   :  { %v2547_v51 = vpop.f32.mrf.mxu0 }
 0xcf1   :  { %v2548_v47 = vadd.f32 %v4673_v27, %v2547_v51  ;;  %v5055_v51 = vld [vmem:[#allocation45_spill] sm:$0xff] }
 0xcf3   :  { %v2552_v29 = vmul.f32 %v2548_v47, %v4679_v7  ;;  %v2553_v6 = vmul.f32 %v2548_v47, %v4682_v38  ;;  %v2554_v13 = vmul.f32 %v2548_v47, %v4685_v46  ;;  %v2555_v15 = vmul.f32 %v2548_v47, %v5047_v45 }
 0xcf4   :  { %v2556_v32 = vmul.f32 %v2548_v47, %v5048_v54  ;;  %v2557_v31 = vmul.f32 %v2548_v47, %v5049_v44  ;;  %v2558_v41 = vmul.f32 %v2548_v47, %v5050_v9  ;;  %v2559_v10 = vmul.f32 %v2548_v47, %v5051_v58 }
 0xcf5   :  { %v2568_v0 = vrot.slane %v2552_v29, 4  ;;  %v2574_v12 = vrot.slane %v2553_v6, 4  ;;  %v2580_v22 = vrot.slane %v2554_v13, 4  ;;  %v2586_v33 = vrot.slane %v2555_v15, 4 }
 0xcf6   :  { %v2592_v35 = vrot.slane %v2556_v32, 4  ;;  %v2598_v7 = vrot.slane %v2557_v31, 4  ;;  %v2604_v8 = vrot.slane %v2558_v41, 4  ;;  %v2610_v38 = vrot.slane %v2559_v10, 4 }
 0xcf7   :  { %v2569_v34 = vadd.f32 %v2568_v0, %v2552_v29  ;;  %v2575_v46 = vadd.f32 %v2574_v12, %v2553_v6  ;;  %v2581_v53 = vadd.f32 %v2580_v22, %v2554_v13  ;;  %v2587_v17 = vadd.f32 %v2586_v33, %v2555_v15 }
 0xcf8   :  { %v2549_v42 = vpop.f32.mrf.mxu0  ;;  %v2593_v40 = vadd.f32 %v2592_v35, %v2556_v32  ;;  %v2599_v28 = vadd.f32 %v2598_v7, %v2557_v31  ;;  %v2605_v43 = vadd.f32 %v2604_v8, %v2558_v41  ;;  %v2611_v14 = vadd.f32 %v2610_v38, %v2559_v10 }
 0xcf9   :  { %v2570_v25 = vrot.slane %v2569_v34, 2  ;;  %v2576_v63 = vrot.slane %v2575_v46, 2  ;;  %v2582_v56 = vrot.slane %v2581_v53, 2  ;;  %v2550_v30 = vadd.f32 %v4673_v27, %v2549_v42  ;;  %v5052_v27 = vld [vmem:[#allocation42_spill] sm:$0xff] }
 0xcfa   :  { %v2588_v2 = vrot.slane %v2587_v17, 2  ;;  %v2594_v61 = vrot.slane %v2593_v40, 2  ;;  %v2600_v55 = vrot.slane %v2599_v28, 2  ;;  %v2606_v4 = vrot.slane %v2605_v43, 2 }
 0xcfb   :  { %v2571_v24 = vadd.f32 %v2570_v25, %v2569_v34  ;;  %v2577_v1 = vadd.f32 %v2576_v63, %v2575_v46  ;;  %v2583_v20 = vadd.f32 %v2582_v56, %v2581_v53  ;;  %v2560_v26 = vmul.f32 %v2550_v30, %v4717_v52  ;;  %v5056_v52 = vld [vmem:[#allocation46_spill] sm:$0xff] }
 0xcfc   :  { %v4891_v11 = vadd.f32 %v2588_v2, %v2587_v17  ;;  %v4893_v59 = vadd.f32 %v2594_v61, %v2593_v40  ;;  %v2612_v19 = vrot.slane %v2611_v14, 2  ;;  %v2561_v50 = vmul.f32 %v2550_v30, %v4722_v49 }
 0xcfd   :  { %v2562_v3 = vmul.f32 %v2550_v30, %v4725_v37  ;;  %v2563_v21 = vmul.f32 %v2550_v30, %v5052_v27  ;;  %v2572_v57 = vrot.slane %v2571_v24, 1  ;;  %v2564_v5 = vmul.f32 %v2550_v30, %v5053_v62 }
 0xcfe   :  { %v2565_v36 = vmul.f32 %v2550_v30, %v5054_v60  ;;  %v2566_v47 = vmul.f32 %v2550_v30, %v5055_v51  ;;  %v2578_v29 = vrot.slane %v2577_v1, 1  ;;  %v2567_v6 = vmul.f32 %v2550_v30, %v5056_v52 }
 0xcff   :  { %v2584_v13 = vrot.slane %v2583_v20, 1  ;;  %v2601_v45 = vadd.f32 %v2600_v55, %v2599_v28  ;;  %v4902_v15 = vadd.f32 %v2606_v4, %v2605_v43  ;;  %v4904_v54 = vadd.f32 %v2572_v57, %v2571_v24 }
 0xd00   :  { %v2590_v49 = vrot.slane %v4891_v11, 1  ;;  %v2596_v37 = vrot.slane %v4893_v59, 1  ;;  %v2613_v32 = vadd.f32 %v2612_v19, %v2611_v14  ;;  %v2616_v44 = vrot.slane %v2560_v26, 4 }
 0xd01   :  { %v2622_v31 = vrot.slane %v2561_v50, 4  ;;  %v2628_v9 = vrot.slane %v2562_v3, 4  ;;  %v2634_v41 = vrot.slane %v2563_v21, 4  ;;  %v4908_v58 = vadd.f32 %v2578_v29, %v2577_v1 }
 0xd02   :  { %v2640_v10 = vrot.slane %v2564_v5, 4  ;;  %v2646_v0 = vrot.slane %v2565_v36, 4  ;;  %v2652_v12 = vrot.slane %v2566_v47, 4  ;;  %v2617_v22 = vadd.f32 %v2616_v44, %v2560_v26 }
 0xd03   :  { %v2623_v33 = vadd.f32 %v2622_v31, %v2561_v50  ;;  %v2629_v35 = vadd.f32 %v2628_v9, %v2562_v3  ;;  %v2635_v7 = vadd.f32 %v2634_v41, %v2563_v21  ;;  %v2658_v46 = vrot.slane %v2567_v6, 4 }
 0xd04   :  { %v2641_v8 = vadd.f32 %v2640_v10, %v2564_v5  ;;  %v2647_v38 = vadd.f32 %v2646_v0, %v2565_v36  ;;  %v2653_v34 = vadd.f32 %v2652_v12, %v2566_v47  ;;  %v2618_v53 = vrot.slane %v2617_v22, 2 }
 0xd05   :  { %v2624_v17 = vrot.slane %v2623_v33, 2  ;;  %v2630_v42 = vrot.slane %v2629_v35, 2  ;;  %v2636_v40 = vrot.slane %v2635_v7, 2  ;;  %v2659_v56 = vadd.f32 %v2658_v46, %v2567_v6 }
 0xd06   :  { %v2642_v28 = vrot.slane %v2641_v8, 2  ;;  %v2648_v25 = vrot.slane %v2647_v38, 2  ;;  %v2654_v63 = vrot.slane %v2653_v34, 2  ;;  %v2619_v43 = vadd.f32 %v2618_v53, %v2617_v22 }
 0xd07   :  { %v2625_v30 = vadd.f32 %v2624_v17, %v2623_v33  ;;  %v2631_v2 = vadd.f32 %v2630_v42, %v2629_v35  ;;  %v2637_v61 = vadd.f32 %v2636_v40, %v2635_v7  ;;  %v2660_v1 = vrot.slane %v2659_v56, 2 }
 0xd08   :  { %v2643_v14 = vadd.f32 %v2642_v28, %v2641_v8  ;;  %v2649_v55 = vadd.f32 %v2648_v25, %v2647_v38  ;;  %v2655_v24 = vadd.f32 %v2654_v63, %v2653_v34  ;;  %v2620_v4 = vrot.slane %v2619_v43, 1 }
 0xd09   :  { %v2626_v26 = vrot.slane %v2625_v30, 1  ;;  %v2632_v19 = vrot.slane %v2631_v2, 1  ;;  %v2638_v50 = vrot.slane %v2637_v61, 1  ;;  %v2585_v3 = vadd.f32 %v2584_v13, %v2583_v20 }
 0xd0a   :  { %v2602_v27 = vrot.slane %v2601_v45, 1  ;;  %v2644_v21 = vrot.slane %v2643_v14, 1  ;;  %v2661_v57 = vadd.f32 %v2660_v1, %v2659_v56  ;;  %v2621_v62 = vadd.f32 %v2620_v4, %v2619_v43 }
 0xd0b   :  { %v2627_v5 = vadd.f32 %v2626_v26, %v2625_v30  ;;  %v2633_v60 = vadd.f32 %v2632_v19, %v2631_v2  ;;  %v2650_v36 = vrot.slane %v2649_v55, 1  ;;  %v2608_v51 = vrot.slane %v4902_v15, 1 }
 0xd0c   :  { %v2614_v47 = vrot.slane %v2613_v32, 1  ;;  %v2656_v29 = vrot.slane %v2655_v24, 1  ;;  %v2662_v52 = vrot.slane %v2661_v57, 1  ;;  %v2591_v6 = vadd.f32 %v2590_v49, %v4891_v11 }
 0xd0d   :  { %v2639_v44 = vadd.f32 %v2638_v50, %v2637_v61  ;;  %v2664_v31 = vpack.c.bf16 %v4904_v54, %v4904_v54  ;;  %v2665_v20 = vpack.c.bf16 %v4908_v58, %v4908_v58  ;;  %v2597_v13 = vadd.f32 %v2596_v37, %v4893_v59 }
 0xd0e   :  { %v2603_v9 = vadd.f32 %v2602_v27, %v2601_v45  ;;  %v2645_v41 = vadd.f32 %v2644_v21, %v2643_v14  ;;  %v2666_v10 = vpack.c.bf16 %v2585_v3, %v2585_v3  ;;  %v2651_v0 = vadd.f32 %v2650_v36, %v2649_v55 }
 0xd0f   :  { %v2672_v12 = vpack.c.bf16 %v2621_v62, %v2621_v62  ;;  %v2673_v22 = vpack.c.bf16 %v2627_v5, %v2627_v5  ;;  %v2674_v33 = vpack.c.bf16 %v2633_v60, %v2633_v60  ;;  %v2609_v35 = vadd.f32 %v2608_v51, %v4902_v15 }
 0xd10   :  { %v2615_v7 = vadd.f32 %v2614_v47, %v2613_v32  ;;  %v2657_v11 = vadd.f32 %v2656_v29, %v2655_v24  ;;  %v2663_v49 = vadd.f32 %v2662_v52, %v2661_v57  ;;  %v2667_v8 = vpack.c.bf16 %v2591_v6, %v2591_v6 }
 0xd11   :  { %v2675_v38 = vpack.c.bf16 %v2639_v44, %v2639_v44  ;;  %v2696_v54 = vunpack.c.l.b16 %v2664_v31  ;;  %v2697_v34 = vunpack.c.l.b16 %v2665_v20  ;;  %v2668_v46 = vpack.c.bf16 %v2597_v13, %v2597_v13 }
 0xd12   :  { %v2669_v58 = vpack.c.bf16 %v2603_v9, %v2603_v9  ;;  %v2676_v53 = vpack.c.bf16 %v2645_v41, %v2645_v41  ;;  %v2698_v59 = vunpack.c.l.b16 %v2666_v10  ;;  %v2677_v45 = vpack.c.bf16 %v2651_v0, %v2651_v0 }
 0xd13   :  { %v2704_v37 = vunpack.c.l.b16 %v2672_v12  ;;  %v2705_v17 = vunpack.c.l.b16 %v2673_v22  ;;  %v2706_v42 = vunpack.c.l.b16 %v2674_v33  ;;  %v2670_v40 = vpack.c.bf16 %v2609_v35, %v2609_v35 }
 0xd14   :  { %v2671_v28 = vpack.c.bf16 %v2615_v7, %v2615_v7  ;;  %v2678_v25 = vpack.c.bf16 %v2657_v11, %v2657_v11  ;;  %v2679_v63 = vpack.c.bf16 %v2663_v49, %v2663_v49  ;;  %v2699_v15 = vunpack.c.l.b16 %v2667_v8 }
 0xd15   :  { %v2707_v32 = vunpack.c.l.b16 %v2675_v38  ;;  %v2712_v56 = vsel %vm2145_vm7, %v2697_v34, %v2696_v54  ;;  %v2719_v43 = vsel %vm2145_vm7, %v2705_v17, %v2704_v37  ;;  %v2700_v30 = vunpack.c.l.b16 %v2668_v46 }
 0xd16   :  { %v2708_v2 = vunpack.c.l.b16 %v2676_v53  ;;  %v2713_v61 = vsel %vm2147_vm8, %v2698_v59, %v2712_v56  ;;  %v2720_v14 = vsel %vm2147_vm8, %v2706_v42, %v2719_v43  ;;  %v2701_v55 = vunpack.c.l.b16 %v2669_v58 }
 0xd17   :  { %v2709_v24 = vunpack.c.l.b16 %v2677_v45  ;;  %v2714_v1 = vsel %vm2149_vm9, %v2699_v15, %v2713_v61  ;;  %v2721_v4 = vsel %vm2149_vm9, %v2707_v32, %v2720_v14  ;;  %v2702_v26 = vunpack.c.l.b16 %v2670_v40 }
 0xd18   :  { %v2710_v19 = vunpack.c.l.b16 %v2678_v25  ;;  %v2715_v50 = vsel %vm2151_vm10, %v2700_v30, %v2714_v1  ;;  %v2722_v3 = vsel %vm2151_vm10, %v2708_v2, %v2721_v4  ;;  %v2703_v27 = vunpack.c.l.b16 %v2671_v28  ;;  %v3492_v4 = vld [vmem:[#allocation19 + $0x30] sm:$0xff] }
 0xd19   :  { %v2711_v21 = vunpack.c.l.b16 %v2679_v63  ;;  %v2716_v57 = vsel %vm2153_vm11, %v2701_v55, %v2715_v50  ;;  %v2723_v62 = vsel %vm2153_vm11, %v2709_v24, %v2722_v3  ;;  %v3493_v55 = vld [vmem:[#allocation19 + $0x38] sm:$0xff]  ;;  %v3491_v50 = vld [vmem:[#allocation19 + $0x28] sm:$0xff] }
 0xd1a   :  { %v2717_v5 = vsel %vm2155_vm12, %v2702_v26, %v2716_v57  ;;  %v2724_v60 = vsel %vm2155_vm12, %v2710_v19, %v2723_v62  ;;  %2896 = vmatpush.bf16.msra.mxu3 %v3493_v55 }
 0xd1b   :  { %v2718_v36 = vsel %vm2157_vm13, %v2703_v27, %v2717_v5  ;;  %v2725_v51 = vsel %vm2157_vm13, %v2711_v21, %v2724_v60  ;;  %v3490_v21 = vld [vmem:[#allocation19 + $0x20] sm:$0xff]  ;;  %v3489_v60 = vld [vmem:[#allocation19 + $0x18] sm:$0xff] }
 0xd1c   :  { %v2726_v47 = vpack.c.b16 %v2725_v51, %v2718_v36 }
 0xd1e   :  { %2736 = vmatmul.bf16.vlgmr.msrb.gmra.mxu1 %v2726_v47  ;;  %2897 = vmatpush.bf16.msra.mxu3 %v3492_v4  ;;  %v3488_v47 = vld [vmem:[#allocation19 + $0x10] sm:$0xff] }
 0xd22   :  { %2898 = vmatpush.bf16.msra.mxu3 %v3491_v50 }
 0xd26   :  { %2899 = vmatpush.bf16.msra.mxu3 %v3490_v21 }
 0xd2a   :  { %2900 = vmatpush.bf16.msra.mxu3 %v3489_v60 }
 0xd2e   :  { %2901 = vmatpush.bf16.msra.mxu3 %v3488_v47 }
 0xd9b   :  { %v2737_v29 = vpop.f32.mrf.mxu1 }
 0xd9c   :  { %v2738_v52 = vadd.f32 %v4801_v48, %v2737_v29 }
 0xd9e   :  { %v2742_v31 = vadd.f32 %v2738_v52, %v4874_v18  ;;  %v3487_v52 = vld [vmem:[#allocation19 + $0x8] sm:$0xff] }
 0xd9f   :  { %2902 = vmatpush.bf16.msra.mxu3 %v3487_v52 }
 0xda3   :  { %v2739_v6 = vpop.f32.mrf.mxu1 }
 0xda4   :  { %v2740_v44 = vadd.f32 %v4801_v48, %v2739_v6 }
 0xda6   :  { %v2743_v20 = vadd.f32 %v2740_v44, %v4876_v16 }
 0xda8   :  { %v2744_v13 = vadd.f32 %v2743_v20, %v2742_v31 }
 0xdaa   :  { %v2745_v9 = vrot.slane %v2744_v13, 4 }
 0xdac   :  { %v2746_v41 = vadd.f32 %v2745_v9, %v2744_v13 }
 0xdae   :  { %v2747_v10 = vrot.slane %v2746_v41, 2 }
 0xdb0   :  { %v2748_v0 = vadd.f32 %v2747_v10, %v2746_v41 }
 0xdb2   :  { %v2749_v12 = vrot.slane %v2748_v0, 1 }
 0xdb4   :  { %v2750_v22 = vadd.f32 %v2749_v12, %v2748_v0 }
 0xdb6   :  { %v2751_v33 = vmul.f32 %v2750_v22, %v5043_v39 }
 0xdb8   :  { %v2752_v35 = vsub.f32 %v2742_v31, %v2751_v33  ;;  %v2753_v7 = vsub.f32 %v2743_v20, %v2751_v33  ;;  %v3486_v31 = vld [vmem:[#allocation19] sm:$0xff] }
 0xdb9   :  { %2903 = vmatpush.bf16.msra.mxu3 %v3486_v31 }
 0xdba   :  { %v2754_v11 = vmul.f32 %v2752_v35, %v2752_v35  ;;  %v2755_v49 = vmul.f32 %v2753_v7, %v2753_v7 }
 0xdbc   :  { %v2756_v8 = vadd.f32 %v2755_v49, %v2754_v11 }
 0xdbe   :  { %v2757_v38 = vrot.slane %v2756_v8, 4 }
 0xdc0   :  { %v2758_v48 = vadd.f32 %v2757_v38, %v2756_v8 }
 0xdc2   :  { %v2759_v54 = vrot.slane %v2758_v48, 2 }
 0xdc4   :  { %v2760_v18 = vadd.f32 %v2759_v54, %v2758_v48 }
 0xdc6   :  { %v2761_v34 = vrot.slane %v2760_v18, 1 }
 0xdc8   :  { %v2762_v16 = vadd.f32 %v2761_v34, %v2760_v18 }
 0xdca   :  { %v2763_v46 = vmul.f32 %v2762_v16, %v5043_v39 }
 0xdcc   :  { %v2764_v58 = vadd.f32 1e-05, %v2763_v46 }
 0xdce   :  { %3629 = vrsqrt.f32 %v2764_v58  ;;  %vm2771_vm8 = vweird.f32 %v2764_v58 }
 0xdd4   :  { %v3630_v53 = vpop.eup %3629 }
 0xdd5   :  { %v2766_v59 = vmul.f32 %v3630_v53, %v2764_v58  ;;  %vm2772_vm7 = vweird.f32 %v3630_v53 }
 0xdd6   :  { %vm2773_vm9 = vmor %vm2771_vm8, %vm2772_vm7 }
 0xdd7   :  { %v2767_v45 = vmul.f32 %v3630_v53, %v2766_v59 }
 0xdd9   :  { %v2768_v37 = vmul.f32 0.5, %v2767_v45 }
 0xddb   :  { %v2769_v17 = vsub.f32 1.5, %v2768_v37 }
 0xddd   :  { %v2770_v42 = vmul.f32 %v3630_v53, %v2769_v17 }
 0xddf   :  { %v2774_v40 = vsel %vm2773_vm9, %v3630_v53, %v2770_v42 }
 0xde0   :  { %v2775_v28 = vmul.f32 %v2774_v40, %v2752_v35  ;;  %v2776_v25 = vmul.f32 %v2774_v40, %v2753_v7 }
 0xde2   :  { %v2777_v63 = vpack.c.bf16 %v2776_v25, %v2775_v28 }
 0xde4   :  { %2786 = vmatmul.bf16.vlgmr.msra.gmra.mxu2 %v2777_v63 }
 0xe67   :  { %v2787_v15 = vpop.f32.mrf.mxu2 }
 0xe68   :  { %v2788_v32 = vadd.f32 %v4836_v23, %v2787_v15 }
 0xe6a   :  { %v2792_v30 = vadd.f32 %v2788_v32, %v2775_v28 }
 0xe6f   :  { %v2789_v56 = vpop.f32.mrf.mxu2 }
 0xe70   :  { %v2790_v43 = vadd.f32 %v4836_v23, %v2789_v56 }
 0xe72   :  { %v2793_v2 = vadd.f32 %v2790_v43, %v2776_v25 }
 0xe74   :  { %v2794_v61 = vadd.f32 %v2793_v2, %v2792_v30 }
 0xe76   :  { %v2795_v14 = vrot.slane %v2794_v61, 4 }
 0xe78   :  { %v2796_v24 = vadd.f32 %v2795_v14, %v2794_v61 }
 0xe7a   :  { %v2797_v1 = vrot.slane %v2796_v24, 2 }
 0xe7c   :  { %v2798_v26 = vadd.f32 %v2797_v1, %v2796_v24 }
 0xe7e   :  { %v2799_v19 = vrot.slane %v2798_v26, 1 }
 0xe80   :  { %v2800_v3 = vadd.f32 %v2799_v19, %v2798_v26 }
 0xe82   :  { %v2801_v27 = vmul.f32 %v2800_v3, %v5043_v39 }
 0xe84   :  { %v2802_v57 = vsub.f32 %v2792_v30, %v2801_v27  ;;  %v2803_v23 = vsub.f32 %v2793_v2, %v2801_v27 }
 0xe86   :  { %v2804_v62 = vmul.f32 %v2802_v57, %v2802_v57  ;;  %v2805_v5 = vmul.f32 %v2803_v23, %v2803_v23 }
 0xe88   :  { %v2806_v36 = vadd.f32 %v2805_v5, %v2804_v62 }
 0xe8a   :  { %v2807_v51 = vrot.slane %v2806_v36, 4 }
 0xe8c   :  { %v2808_v29 = vadd.f32 %v2807_v51, %v2806_v36 }
 0xe8e   :  { %v2809_v6 = vrot.slane %v2808_v29, 2 }
 0xe90   :  { %v2810_v44 = vadd.f32 %v2809_v6, %v2808_v29 }
 0xe92   :  { %v2811_v20 = vrot.slane %v2810_v44, 1 }
 0xe94   :  { %v2812_v13 = vadd.f32 %v2811_v20, %v2810_v44 }
 0xe96   :  { %v2813_v9 = vmul.f32 %v2812_v13, %v5043_v39  ;;  %v3522_v39 = vld [vmem:[%s4972_s21] ss:$0 sm:$0xff]  ;;  %s3961_s21 = smov [#allocation20]  }
 0xe97   :  { %s2940_s25 = sshll.u32 %s3961_s21, 4  ;;  %s2941_s25 = int_to_ptr.vmem [resolvable:$true] %s2940_s25 }
 0xe98   :  { %v2814_v41 = vadd.f32 1e-05, %v2813_v9 }
 0xe9a   :  { %3631 = vrsqrt.f32 %v2814_v41  ;;  %vm2821_vm11 = vweird.f32 %v2814_v41 }
 0xea0   :  { %v3632_v10 = vpop.eup %3631 }
 0xea1   :  { %v2816_v0 = vmul.f32 %v3632_v10, %v2814_v41  ;;  %vm2822_vm10 = vweird.f32 %v3632_v10 }
 0xea2   :  { %vm2823_vm12 = vmor %vm2821_vm11, %vm2822_vm10 }
 0xea3   :  { %v2817_v12 = vmul.f32 %v3632_v10, %v2816_v0 }
 0xea5   :  { %v2818_v22 = vmul.f32 0.5, %v2817_v12 }
 0xea7   :  { %v2819_v33 = vsub.f32 1.5, %v2818_v22 }
 0xea9   :  { %v2820_v35 = vmul.f32 %v3632_v10, %v2819_v33 }
 0xeab   :  { %v2824_v7 = vsel %vm2823_vm12, %v3632_v10, %v2820_v35 }
 0xeac   :  { %v2825_v11 = vmul.f32 %v2824_v7, %v2802_v57  ;;  %v2826_v49 = vmul.f32 %v2824_v7, %v2803_v23 }
 0xeae   :  { %v2827_v8 = vpack.c.bf16 %v2826_v49, %v2825_v11 }
 0xeb0   :  { %2904 = vmatmul.bf16.vlgmr.msra.gmra.mxu3 %v2827_v8 }
 0xf33   :  { %v2905_v38 = vpop.f32.mrf.mxu3 }
 0xf34   :  { %v2906_v54 = vadd.f32 %v3522_v39, %v2905_v38 }
 0xf3b   :  { %v2907_v48 = vpop.f32.mrf.mxu3 }
 0xf3c   :  { %v2908_v18 = vadd.f32 %v3522_v39, %v2907_v48 }
 0xf3e   :  { %v2910_v34 = vmax.f32 %v2906_v54, %v2908_v18 }
 0xf40   :  { %v2911_v16 = vsub.f32 %v2906_v54, %v2910_v34  ;;  %v2912_v46 = vsub.f32 %v2908_v18, %v2910_v34 }
 0xf42   :  { %v2913_v58 = vmul.f32 1.442695, %v2911_v16  ;;  %v2915_v53 = vmul.f32 1.442695, %v2912_v46 }
 0xf44   :  { %3633 = vpow2.f32 %v2913_v58 }
 0xf45   :  { %3635 = vpow2.f32 %v2915_v53 }
 0xf4a   :  { %v3634_v59 = vpop.eup %3633 }
 0xf4b   :  { %v3636_v45 = vpop.eup %3635 }
 0xf4c   :  { %v2917_v37 = vadd.f32 %v3636_v45, %v3634_v59 }
 0xf4e   :  { %3637 = vrcp.f32 %v2917_v37  ;;  %v2929_v28 = vand.u32 2147483648, %v2917_v37  ;;  %v2927_v63 = vand.u32 2147483647, %v2917_v37  ;;  %vm2923_vm14 = vweird.f32 %v2917_v37 }
 0xf50   :  { %v2930_v32 = vor.u32 1.1754944e-38, %v2929_v28  ;;  %vm2928_vm0 = vcmp.eq.f32.partialorder %v2927_v63, 8.507059e+37 }
 0xf54   :  { %v3638_v17 = vpop.eup %3637 }
 0xf55   :  { %v2919_v42 = vmul.f32 %v3638_v17, %v2917_v37  ;;  %vm2924_vm13 = vweird.f32 %v3638_v17 }
 0xf56   :  { %vm2925_vm15 = vmor %vm2923_vm14, %vm2924_vm13 }
 0xf57   :  { %v2920_v40 = vsub.f32 1.0, %v2919_v42 }
 0xf59   :  { %v2921_v25 = vmul.f32 %v3638_v17, %v2920_v40 }
 0xf5b   :  { %v2922_v15 = vadd.f32 %v3638_v17, %v2921_v25 }
 0xf5d   :  { %v2926_v56 = vsel %vm2925_vm15, %v3638_v17, %v2922_v15 }
 0xf5e   :  { %v2931_v43 = vsel %vm2928_vm0, %v2930_v32, %v2926_v56 }
 0xf5f   :  { %v2932_v30 = vmul.f32 %v3634_v59, %v2931_v43  ;;  %v2933_v2 = vmul.f32 %v3636_v45, %v2931_v43 }
 0xf61   :  { %2934 = vst [vmem:[#allocation20] sm:$0xff] %v2932_v30 }
 0xf62   :  { %2935 = vst [vmem:[#allocation20 + $0x8] sm:$0xff] %v2933_v2 }
 0xf63   :  { %2948 = dma.vmem_to_hbm [thread:$0]  %s2941_s25, 256, %s2943_s5, [#allocation4], %s5014_s6, %s5014_s6, %s5057_s3  }
 0xf64   :  { %3939 = dma.done.wait [#allocation4], 256  }
 0xf65   :  { %3940 = vsyncadd [#allocation4], 4294967040 }
 0xf66   :  { %2953 = vsyncpa [#allocation3], 1 }
 0xf67   :  { %2954 = vsyncpa [#allocation6], 1 }
 0xf68   :  { %2955 = vsyncpa [#allocation9], 1 }
 0xf69   :  { %2956 = vsyncpa [#allocation12], 1 }
 0xf6a   :  { %2957 = vsyncpa [#allocation15], 1 }
 0xf6b   :  { %2958 = vsyncpa [#allocation18], 1 }
 0xf6c   :  { %2959 = vsyncpa [#allocation4], 1 }

</bundles_post_ra>
